<compile_context>
chip_gen: v7x
topology: tpu7x:2x2x1
jax: 0.10.0
libtpu: 0.0.40
codegen_flags: <defaults>
</compile_context>

<pallas_src>
import functools

import jax
import jax.numpy as jnp
from jax.experimental import pallas as pl
from jax.experimental.pallas import tpu as pltpu


# ---------------------------------------------------------------------------
# Pallas kernel: one grid step == TB (batch*timestep) sequences of shape (L, D)
# ---------------------------------------------------------------------------
def token_learner_kernel(
    x_ref,       # (TB, L, D)   bf16 input tokens for this grid step
    pe_ref,      # (L, D)       f32 positional embedding (already sliced to L)
    ln0s_ref,    # (1, D)       pre-MAPHead LayerNorm scale
    ln0b_ref,    # (1, D)       pre-MAPHead LayerNorm bias
    qm_ref,      # (nt*H, D)    bf16 precomputed scaled + head-masked queries
    hmask_ref,   # (H, D)       f32 per-head channel mask (1.0 on head h's slice)
    wkv_ref,     # (D, 2D)      bf16 fused K|V projection weight
    bkv_ref,     # (1, 2D)      f32 fused K|V bias
    wo_ref, bo_ref,             # (D, D) bf16, (1, D) f32   output projection
    ln1s_ref, ln1b_ref,         # (1, D), (1, D)            LayerNorm inside MAPHead
    w1_ref, b1_ref,             # (D, M) bf16, (1, M)       MLP up-projection
    w2_ref, b2_ref,             # (M, D) bf16, (1, D)       MLP down-projection
    o_ref,       # (TB, nt, D)  f32 output
    *,
    num_heads: int,
    eps: float = 1e-6,
):
    f32 = jnp.float32
    bf16 = jnp.bfloat16
    TB, L, D = x_ref.shape
    ntH = qm_ref.shape[0]
    H = num_heads
    nt = ntH // H

    # --- add positional embedding + LayerNorm (eps=1e-6, f32 math) ----------
    x3 = x_ref[...].astype(f32) + pe_ref[...][None, :, :]                  # (TB, L, D)
    mu = jnp.mean(x3, axis=-1, keepdims=True)
    var = jnp.mean(jnp.square(x3 - mu), axis=-1, keepdims=True)
    x3 = (x3 - mu) * jax.lax.rsqrt(var + eps)
    x3 = x3 * ln0s_ref[...] + ln0b_ref[...]
    x2 = x3.reshape(TB * L, D).astype(bf16)                                # (TB*L, D)

    # --- fused K|V projection: one tall bf16 MXU matmul, f32 accumulate ------
    kv = jnp.dot(x2, wkv_ref[...], preferred_element_type=f32) + bkv_ref[...]
    k3 = kv[:, :D].reshape(TB, L, D).astype(bf16)                          # (TB, L, D)
    v3 = kv[:, D:].reshape(TB, L, D).astype(bf16)                          # (TB, L, D)

    # --- masked-query multi-head attention -----------------------------------
    # qm[(q*H + h), d] = (probe@Wq + bq)[q, d] * mask_h[d] / sqrt(head_dim)
    # (precomputed in the wrapper).  Leading-dim broadcast keeps the contraction
    # in the standard batched 'bqd,bkd->bqk' form (vreg replicate, no relayout).
    q_b = jnp.broadcast_to(qm_ref[...][None, :, :], (TB, ntH, D))
    s = jnp.einsum('bqd,bkd->bqk', q_b, k3,
                   preferred_element_type=f32)                             # (TB, ntH, L)
    m = jnp.max(s, axis=-1, keepdims=True)
    p = jnp.exp(s - m)
    denom = jnp.sum(p, axis=-1, keepdims=True)
    p = p * pl.reciprocal(denom, approx=True)   # EUP; use approx=False for strict parity

    attn_full = jnp.einsum('bqk,bkd->bqd', p.astype(bf16), v3,
                           preferred_element_type=f32)                     # (TB, ntH, D)
    # recombine heads: keep head h(d)'s row for each channel d
    att4 = attn_full.reshape(TB * nt, H, D)
    attn = jnp.sum(att4 * hmask_ref[...][None, :, :], axis=1)              # (TB*nt, D)

    # --- output projection ----------------------------------------------------
    out = jnp.dot(attn.astype(bf16), wo_ref[...],
                  preferred_element_type=f32) + bo_ref[...]                # (TB*nt, D)

    # --- MAPHead LayerNorm + MLP residual -------------------------------------
    mu2 = jnp.mean(out, axis=-1, keepdims=True)
    var2 = jnp.mean(jnp.square(out - mu2), axis=-1, keepdims=True)
    y = (out - mu2) * jax.lax.rsqrt(var2 + eps)
    y = y * ln1s_ref[...] + ln1b_ref[...]

    h1 = jnp.dot(y.astype(bf16), w1_ref[...], preferred_element_type=f32) + b1_ref[...]
    h1 = jax.nn.gelu(h1)                          # tanh approximation (flax/octo default)
    mlp = jnp.dot(h1.astype(bf16), w2_ref[...], preferred_element_type=f32) + b2_ref[...]

    o_ref[...] = (out + mlp).reshape(TB, nt, D).astype(o_ref.dtype)


# ---------------------------------------------------------------------------
# Wrapper
# ---------------------------------------------------------------------------
def token_learner_forward(inputs, params, *, num_tokens, num_heads, block_size=64):
    """inputs: (B, T, L, D) float32 -> (B, T, num_tokens, D) float32."""
    bs, t, L, D = inputs.shape
    assert D % num_heads == 0
    H = num_heads
    hd = D // H
    N = bs * t

    # >= 2 grid steps whenever N > 1 so the "parallel" axis can use both v7x TCs;
    # TB otherwise as large as block_size allows (amortizes per-step overhead).
    TB = max(1, min(block_size, pl.cdiv(N, 2)))
    n_blocks = pl.cdiv(N, TB)
    N_pad = n_blocks * TB

    bf16 = jnp.bfloat16
    # Stream activations in bf16 (halves the dominant HBM read); LN math is f32 in-kernel.
    x = inputs.reshape(N, L, D).astype(bf16)
    if N_pad != N:
        # Padded all-zero rows are finite through LN/attention and sliced off below.
        x = jnp.pad(x, ((0, N_pad - N), (0, 0), (0, 0)))

    head_mask = jnp.repeat(jnp.eye(H, dtype=jnp.float32), hd, axis=1)       # (H, D)

    # Hoisted grid-invariant query path: q = probe @ Wq + bq, scaled, head-masked, bf16.
    q = params["probe"] @ params["wq"] + params["bq"]                       # (nt, D)
    q = q * (1.0 / float(hd) ** 0.5)
    qm = (q[:, None, :] * head_mask[None, :, :]).reshape(num_tokens * H, D).astype(bf16)

    # Fused K|V projection weight/bias.
    wkv = jnp.concatenate([params["wk"], params["wv"]], axis=1).astype(bf16)  # (D, 2D)
    bkv = jnp.concatenate([params["bk"], params["bv"]], axis=1)               # (1, 2D)

    pe = params["pos_embed"][:L]                                              # (L, D)

    weights = [
        pe,
        params["ln0_scale"], params["ln0_bias"],
        qm, head_mask,
        wkv, bkv,
        params["wo"].astype(bf16), params["bo"],
        params["ln1_scale"], params["ln1_bias"],
        params["w1"].astype(bf16), params["b1"],
        params["w2"].astype(bf16), params["b2"],
    ]

    kernel = functools.partial(token_learner_kernel, num_heads=num_heads)

    # Explicit VMEM budget: single-buffered weights + double-buffered x/out blocks +
    # activation working set, with headroom; clamped to be safe on v7x (64 MiB phys).
    weight_bytes = sum(int(w.size) * w.dtype.itemsize for w in weights)
    blk_bytes = TB * L * D * 2 + TB * num_tokens * D * 4
    act_bytes = (4 * TB * L * D * 4
                 + 3 * TB * num_tokens * H * max(L, D) * 4
                 + 2 * TB * num_tokens * 4 * D * 4)
    vmem_limit = int(min(64 << 20,
                         max(24 << 20,
                             2 * weight_bytes + 2 * blk_bytes + act_bytes + (8 << 20))))

    def run(single_buffer_weights):
        def rep_spec(arr):
            zeros = (0,) * arr.ndim
            idx = lambda n, _z=zeros: _z
            if single_buffer_weights:
                # Constant-index blocks only need one resident copy (halves weight VMEM).
                return pl.BlockSpec(arr.shape, idx, pipeline_mode=pl.Buffered(1))
            return pl.BlockSpec(arr.shape, idx)

        in_specs = [pl.BlockSpec((TB, L, D), lambda n: (n, 0, 0))] + [
            rep_spec(w) for w in weights
        ]
        out_spec = pl.BlockSpec((TB, num_tokens, D), lambda n: (n, 0, 0))

        return pl.pallas_call(
            kernel,
            out_shape=jax.ShapeDtypeStruct((N_pad, num_tokens, D), jnp.float32),
            grid_spec=pltpu.PrefetchScalarGridSpec(
                num_scalar_prefetch=0,
                grid=(n_blocks,),
                in_specs=in_specs,
                out_specs=out_spec,
            ),
            compiler_params=pltpu.CompilerParams(
                dimension_semantics=("parallel",),
                vmem_limit_bytes=vmem_limit,
            ),
        )(x, *weights)

    try:
        out = run(single_buffer_weights=True)
    except Exception:
        # TODO(synk): pl.Buffered(1) single-buffering of replicated weights is not
        # supported by this jax version; fall back to default double-buffering.
        out = run(single_buffer_weights=False)

    return out[:N].reshape(bs, t, num_tokens, D)


# ---------------------------------------------------------------------------
# Deterministic parameter construction (synthetic weights, module shapes)
# ---------------------------------------------------------------------------
def make_params(key, *, hid_dim, num_tokens, max_len=256):
    D = hid_dim
    M = 4 * D  # MAPHead MlpBlock default mlp_dim = 4 * input_dim
    keys = jax.random.split(key, 10)

    def w(k, shape, scale):
        return jax.random.normal(k, shape, jnp.float32) * scale

    return {
        "pos_embed": w(keys[0], (max_len, D), 0.02),
        "ln0_scale": jnp.ones((1, D), jnp.float32),
        "ln0_bias": jnp.zeros((1, D), jnp.float32),
        "probe": w(keys[1], (num_tokens, D), (1.0 / D) ** 0.5),
        "wq": w(keys[2], (D, D), (1.0 / D) ** 0.5),
        "bq": jnp.zeros((1, D), jnp.float32),
        "wk": w(keys[3], (D, D), (1.0 / D) ** 0.5),
        "bk": jnp.zeros((1, D), jnp.float32),
        "wv": w(keys[4], (D, D), (1.0 / D) ** 0.5),
        "bv": jnp.zeros((1, D), jnp.float32),
        "wo": w(keys[5], (D, D), (1.0 / D) ** 0.5),
        "bo": jnp.zeros((1, D), jnp.float32),
        "ln1_scale": jnp.ones((1, D), jnp.float32),
        "ln1_bias": jnp.zeros((1, D), jnp.float32),
        "w1": w(keys[6], (D, M), (1.0 / D) ** 0.5),
        "b1": jnp.zeros((1, M), jnp.float32),
        "w2": w(keys[7], (M, D), (1.0 / M) ** 0.5),
        "b2": jnp.zeros((1, D), jnp.float32),
    }


if __name__ == "__main__":
    # Small shapes consistent with the module's forward:
    #   inputs: (bs, t, length, hid_dim) -> output (bs, t, num_tokens, hid_dim).
    # D = 128 keeps every tensor lane-dense (full 128-lane vregs, unmasked stores).
    BS, T, L, D = 2, 2, 16, 128
    NUM_TOKENS, NUM_HEADS = 8, 8

    key = jax.random.PRNGKey(0)
    k_in, k_par = jax.random.split(key)

    inputs = jax.random.normal(k_in, (BS, T, L, D), jnp.float32)
    params = make_params(k_par, hid_dim=D, num_tokens=NUM_TOKENS)

    out = token_learner_forward(
        inputs, params, num_tokens=NUM_TOKENS, num_heads=NUM_HEADS, block_size=64
    )
    out = jax.block_until_ready(out)

    assert out.shape == (BS, T, NUM_TOKENS, D), out.shape
    assert bool(jnp.all(jnp.isfinite(out)))
    print("KERNEL_OK")
</pallas_src>

<mosaic_0001>
module attributes {stable_mosaic.version = 11 : i64} {
  func.func @token_learner_kernel(%arg0: i32, %arg1: memref<2x16x128xbf16, #tpu.memory_space<vmem>>, %arg2: memref<16x128xf32, #tpu.memory_space<vmem>>, %arg3: memref<1x128xf32, #tpu.memory_space<vmem>>, %arg4: memref<1x128xf32, #tpu.memory_space<vmem>>, %arg5: memref<64x128xbf16, #tpu.memory_space<vmem>>, %arg6: memref<8x128xf32, #tpu.memory_space<vmem>>, %arg7: memref<128x256xbf16, #tpu.memory_space<vmem>>, %arg8: memref<1x256xf32, #tpu.memory_space<vmem>>, %arg9: memref<128x128xbf16, #tpu.memory_space<vmem>>, %arg10: memref<1x128xf32, #tpu.memory_space<vmem>>, %arg11: memref<1x128xf32, #tpu.memory_space<vmem>>, %arg12: memref<1x128xf32, #tpu.memory_space<vmem>>, %arg13: memref<128x512xbf16, #tpu.memory_space<vmem>>, %arg14: memref<1x512xf32, #tpu.memory_space<vmem>>, %arg15: memref<512x128xbf16, #tpu.memory_space<vmem>>, %arg16: memref<1x128xf32, #tpu.memory_space<vmem>>, %arg17: memref<2x8x128xf32, #tpu.memory_space<vmem>>) attributes {dimension_semantics = [#tpu.dimension_semantics<parallel>], iteration_bounds = array<i64: 2>, scalar_prefetch = 0 : i64, scratch_operands = 0 : i64, tpu.core_type = #tpu.core_type<tc>, window_params = [{transform_indices = @transform_0, window_bounds = array<i64: 2, 16, 128>}, {pipeline_mode = #tpu.pipeline_mode<synchronous>, transform_indices = @transform_1, window_bounds = array<i64: 16, 128>}, {pipeline_mode = #tpu.pipeline_mode<synchronous>, transform_indices = @transform_2, window_bounds = array<i64: 1, 128>}, {pipeline_mode = #tpu.pipeline_mode<synchronous>, transform_indices = @transform_3, window_bounds = array<i64: 1, 128>}, {pipeline_mode = #tpu.pipeline_mode<synchronous>, transform_indices = @transform_4, window_bounds = array<i64: 64, 128>}, {pipeline_mode = #tpu.pipeline_mode<synchronous>, transform_indices = @transform_5, window_bounds = array<i64: 8, 128>}, {pipeline_mode = #tpu.pipeline_mode<synchronous>, transform_indices = @transform_6, window_bounds = array<i64: 128, 256>}, {pipeline_mode = #tpu.pipeline_mode<synchronous>, transform_indices = @transform_7, window_bounds = array<i64: 1, 256>}, {pipeline_mode = #tpu.pipeline_mode<synchronous>, transform_indices = @transform_8, window_bounds = array<i64: 128, 128>}, {pipeline_mode = #tpu.pipeline_mode<synchronous>, transform_indices = @transform_9, window_bounds = array<i64: 1, 128>}, {pipeline_mode = #tpu.pipeline_mode<synchronous>, transform_indices = @transform_10, window_bounds = array<i64: 1, 128>}, {pipeline_mode = #tpu.pipeline_mode<synchronous>, transform_indices = @transform_11, window_bounds = array<i64: 1, 128>}, {pipeline_mode = #tpu.pipeline_mode<synchronous>, transform_indices = @transform_12, window_bounds = array<i64: 128, 512>}, {pipeline_mode = #tpu.pipeline_mode<synchronous>, transform_indices = @transform_13, window_bounds = array<i64: 1, 512>}, {pipeline_mode = #tpu.pipeline_mode<synchronous>, transform_indices = @transform_14, window_bounds = array<i64: 512, 128>}, {pipeline_mode = #tpu.pipeline_mode<synchronous>, transform_indices = @transform_15, window_bounds = array<i64: 1, 128>}, {transform_indices = @transform_16, window_bounds = array<i64: 2, 8, 128>}]} {
    %c0 = arith.constant 0 : index
    %c0_0 = arith.constant 0 : index
    %c0_1 = arith.constant 0 : index
    %0 = vector.load %arg1[%c0, %c0_0, %c0_1] : memref<2x16x128xbf16, #tpu.memory_space<vmem>>, vector<2x16x128xbf16>
    %1 = arith.extf %0 : vector<2x16x128xbf16> to vector<2x16x128xf32>
    %c0_2 = arith.constant 0 : index
    %c0_3 = arith.constant 0 : index
    %2 = vector.load %arg2[%c0_2, %c0_3] : memref<16x128xf32, #tpu.memory_space<vmem>>, vector<16x128xf32>
    %3 = vector.shape_cast %2 : vector<16x128xf32> to vector<1x16x128xf32>
    %4 = vector.broadcast %3 : vector<1x16x128xf32> to vector<2x16x128xf32>
    %5 = arith.addf %1, %4 : vector<2x16x128xf32>
    %cst = arith.constant dense<0.000000e+00> : vector<2x16xf32>
    %6 = vector.multi_reduction <add>, %5, %cst [2] : vector<2x16x128xf32> to vector<2x16xf32>
    %7 = vector.shape_cast %6 : vector<2x16xf32> to vector<2x16x1xf32>
    %cst_4 = arith.constant 1.280000e+02 : f32
    %8 = vector.broadcast %cst_4 : f32 to vector<2x16x1xf32>
    %9 = arith.divf %7, %8 : vector<2x16x1xf32>
    %10 = vector.broadcast %9 : vector<2x16x1xf32> to vector<2x16x128xf32>
    %11 = arith.subf %5, %10 : vector<2x16x128xf32>
    %12 = arith.mulf %11, %11 : vector<2x16x128xf32>
    %cst_5 = arith.constant dense<0.000000e+00> : vector<2x16xf32>
    %13 = vector.multi_reduction <add>, %12, %cst_5 [2] : vector<2x16x128xf32> to vector<2x16xf32>
    %14 = vector.shape_cast %13 : vector<2x16xf32> to vector<2x16x1xf32>
    %cst_6 = arith.constant 1.280000e+02 : f32
    %15 = vector.broadcast %cst_6 : f32 to vector<2x16x1xf32>
    %16 = arith.divf %14, %15 : vector<2x16x1xf32>
    %17 = vector.broadcast %9 : vector<2x16x1xf32> to vector<2x16x128xf32>
    %18 = arith.subf %5, %17 : vector<2x16x128xf32>
    %cst_7 = arith.constant 9.99999997E-7 : f32
    %19 = vector.broadcast %cst_7 : f32 to vector<2x16x1xf32>
    %20 = arith.addf %16, %19 : vector<2x16x1xf32>
    %21 = math.rsqrt %20 : vector<2x16x1xf32>
    %22 = vector.broadcast %21 : vector<2x16x1xf32> to vector<2x16x128xf32>
    %23 = arith.mulf %18, %22 : vector<2x16x128xf32>
    %c0_8 = arith.constant 0 : index
    %c0_9 = arith.constant 0 : index
    %24 = vector.load %arg3[%c0_8, %c0_9] : memref<1x128xf32, #tpu.memory_space<vmem>>, vector<1x128xf32>
    %25 = vector.shape_cast %24 : vector<1x128xf32> to vector<1x1x128xf32>
    %26 = vector.broadcast %25 : vector<1x1x128xf32> to vector<2x16x128xf32>
    %27 = arith.mulf %23, %26 : vector<2x16x128xf32>
    %c0_10 = arith.constant 0 : index
    %c0_11 = arith.constant 0 : index
    %28 = vector.load %arg4[%c0_10, %c0_11] : memref<1x128xf32, #tpu.memory_space<vmem>>, vector<1x128xf32>
    %29 = vector.shape_cast %28 : vector<1x128xf32> to vector<1x1x128xf32>
    %30 = vector.broadcast %29 : vector<1x1x128xf32> to vector<2x16x128xf32>
    %31 = arith.addf %27, %30 : vector<2x16x128xf32>
    %32 = vector.shape_cast %31 : vector<2x16x128xf32> to vector<32x128xf32>
    %33 = arith.truncf %32 : vector<32x128xf32> to vector<32x128xbf16>
    %c0_12 = arith.constant 0 : index
    %c0_13 = arith.constant 0 : index
    %34 = vector.load %arg7[%c0_12, %c0_13] : memref<128x256xbf16, #tpu.memory_space<vmem>>, vector<128x256xbf16>
    %cst_14 = arith.constant dense<0.000000e+00> : vector<32x256xf32>
    %35 = tpu.matmul %33, %34, %cst_14 {dimension_numbers = #tpu.dot_dimension_numbers<[1], [0], [0], [1], [0, 0, 1, 1], [], []>} : vector<32x128xbf16>, vector<128x256xbf16>, vector<32x256xf32> -> vector<32x256xf32>
    %c0_15 = arith.constant 0 : index
    %c0_16 = arith.constant 0 : index
    %36 = vector.load %arg8[%c0_15, %c0_16] : memref<1x256xf32, #tpu.memory_space<vmem>>, vector<1x256xf32>
    %37 = vector.broadcast %36 : vector<1x256xf32> to vector<32x256xf32>
    %38 = arith.addf %35, %37 : vector<32x256xf32>
    %39 = vector.extract_strided_slice %38 {offsets = [0, 0], sizes = [32, 128], strides = [1, 1]} : vector<32x256xf32> to vector<32x128xf32>
    %40 = vector.shape_cast %39 : vector<32x128xf32> to vector<2x16x128xf32>
    %41 = arith.truncf %40 : vector<2x16x128xf32> to vector<2x16x128xbf16>
    %42 = vector.extract_strided_slice %38 {offsets = [0, 128], sizes = [32, 128], strides = [1, 1]} : vector<32x256xf32> to vector<32x128xf32>
    %43 = vector.shape_cast %42 : vector<32x128xf32> to vector<2x16x128xf32>
    %44 = arith.truncf %43 : vector<2x16x128xf32> to vector<2x16x128xbf16>
    %c0_17 = arith.constant 0 : index
    %c0_18 = arith.constant 0 : index
    %45 = vector.load %arg5[%c0_17, %c0_18] : memref<64x128xbf16, #tpu.memory_space<vmem>>, vector<64x128xbf16>
    %46 = vector.shape_cast %45 : vector<64x128xbf16> to vector<1x64x128xbf16>
    %47 = vector.shape_cast %46 : vector<1x64x128xbf16> to vector<1x64x128xbf16>
    %48 = vector.broadcast %47 : vector<1x64x128xbf16> to vector<2x64x128xbf16>
    "tpu.trace_start"() <{level = 10 : i32, message = "bqd,bkd->bqk"}> : () -> ()
    %cst_19 = arith.constant dense<0.000000e+00> : vector<2x64x16xf32>
    %49 = tpu.matmul %48, %41, %cst_19 {dimension_numbers = #tpu.dot_dimension_numbers<[2], [2], [1], [1], [0, 0, 0, 1, 1, 1], [0], [0]>} : vector<2x64x128xbf16>, vector<2x16x128xbf16>, vector<2x64x16xf32> -> vector<2x64x16xf32>
    "tpu.trace_stop"() : () -> ()
    %cst_20 = arith.constant dense<0xFF800000> : vector<2x64xf32>
    %50 = vector.multi_reduction <maximumf>, %49, %cst_20 [2] : vector<2x64x16xf32> to vector<2x64xf32>
    %51 = vector.shape_cast %50 : vector<2x64xf32> to vector<2x64x1xf32>
    %52 = vector.broadcast %51 : vector<2x64x1xf32> to vector<2x64x16xf32>
    %53 = arith.subf %49, %52 : vector<2x64x16xf32>
    %54 = math.exp %53 : vector<2x64x16xf32>
    %cst_21 = arith.constant dense<0.000000e+00> : vector<2x64xf32>
    %55 = vector.multi_reduction <add>, %54, %cst_21 [2] : vector<2x64x16xf32> to vector<2x64xf32>
    %56 = vector.shape_cast %55 : vector<2x64xf32> to vector<2x64x1xf32>
    %57 = tpu.reciprocal %56 {approx = true} : vector<2x64x1xf32> -> vector<2x64x1xf32>
    %58 = vector.broadcast %57 : vector<2x64x1xf32> to vector<2x64x16xf32>
    %59 = arith.mulf %54, %58 : vector<2x64x16xf32>
    %60 = arith.truncf %59 : vector<2x64x16xf32> to vector<2x64x16xbf16>
    "tpu.trace_start"() <{level = 10 : i32, message = "bqk,bkd->bqd"}> : () -> ()
    %cst_22 = arith.constant dense<0.000000e+00> : vector<2x64x128xf32>
    %61 = tpu.matmul %60, %44, %cst_22 {dimension_numbers = #tpu.dot_dimension_numbers<[2], [1], [1], [2], [0, 0, 0, 1, 1, 2], [0], [0]>} : vector<2x64x16xbf16>, vector<2x16x128xbf16>, vector<2x64x128xf32> -> vector<2x64x128xf32>
    "tpu.trace_stop"() : () -> ()
    %62 = vector.shape_cast %61 : vector<2x64x128xf32> to vector<16x8x128xf32>
    %c0_23 = arith.constant 0 : index
    %c0_24 = arith.constant 0 : index
    %63 = vector.load %arg6[%c0_23, %c0_24] : memref<8x128xf32, #tpu.memory_space<vmem>>, vector<8x128xf32>
    %64 = vector.shape_cast %63 : vector<8x128xf32> to vector<1x8x128xf32>
    %65 = vector.broadcast %64 : vector<1x8x128xf32> to vector<16x8x128xf32>
    %66 = arith.mulf %62, %65 : vector<16x8x128xf32>
    %cst_25 = arith.constant dense<0.000000e+00> : vector<16x128xf32>
    %67 = vector.multi_reduction <add>, %66, %cst_25 [1] : vector<16x8x128xf32> to vector<16x128xf32>
    %68 = arith.truncf %67 : vector<16x128xf32> to vector<16x128xbf16>
    %c0_26 = arith.constant 0 : index
    %c0_27 = arith.constant 0 : index
    %69 = vector.load %arg9[%c0_26, %c0_27] : memref<128x128xbf16, #tpu.memory_space<vmem>>, vector<128x128xbf16>
    %cst_28 = arith.constant dense<0.000000e+00> : vector<16x128xf32>
    %70 = tpu.matmul %68, %69, %cst_28 {dimension_numbers = #tpu.dot_dimension_numbers<[1], [0], [0], [1], [0, 0, 1, 1], [], []>} : vector<16x128xbf16>, vector<128x128xbf16>, vector<16x128xf32> -> vector<16x128xf32>
    %c0_29 = arith.constant 0 : index
    %c0_30 = arith.constant 0 : index
    %71 = vector.load %arg10[%c0_29, %c0_30] : memref<1x128xf32, #tpu.memory_space<vmem>>, vector<1x128xf32>
    %72 = vector.broadcast %71 : vector<1x128xf32> to vector<16x128xf32>
    %73 = arith.addf %70, %72 : vector<16x128xf32>
    %cst_31 = arith.constant dense<0.000000e+00> : vector<16xf32>
    %74 = vector.multi_reduction <add>, %73, %cst_31 [1] : vector<16x128xf32> to vector<16xf32>
    %75 = vector.shape_cast %74 : vector<16xf32> to vector<16x1xf32>
    %cst_32 = arith.constant 1.280000e+02 : f32
    %76 = vector.broadcast %cst_32 : f32 to vector<16x1xf32>
    %77 = arith.divf %75, %76 : vector<16x1xf32>
    %78 = vector.broadcast %77 : vector<16x1xf32> to vector<16x128xf32>
    %79 = arith.subf %73, %78 : vector<16x128xf32>
    %80 = arith.mulf %79, %79 : vector<16x128xf32>
    %cst_33 = arith.constant dense<0.000000e+00> : vector<16xf32>
    %81 = vector.multi_reduction <add>, %80, %cst_33 [1] : vector<16x128xf32> to vector<16xf32>
    %82 = vector.shape_cast %81 : vector<16xf32> to vector<16x1xf32>
    %cst_34 = arith.constant 1.280000e+02 : f32
    %83 = vector.broadcast %cst_34 : f32 to vector<16x1xf32>
    %84 = arith.divf %82, %83 : vector<16x1xf32>
    %85 = vector.broadcast %77 : vector<16x1xf32> to vector<16x128xf32>
    %86 = arith.subf %73, %85 : vector<16x128xf32>
    %cst_35 = arith.constant 9.99999997E-7 : f32
    %87 = vector.broadcast %cst_35 : f32 to vector<16x1xf32>
    %88 = arith.addf %84, %87 : vector<16x1xf32>
    %89 = math.rsqrt %88 : vector<16x1xf32>
    %90 = vector.broadcast %89 : vector<16x1xf32> to vector<16x128xf32>
    %91 = arith.mulf %86, %90 : vector<16x128xf32>
    %c0_36 = arith.constant 0 : index
    %c0_37 = arith.constant 0 : index
    %92 = vector.load %arg11[%c0_36, %c0_37] : memref<1x128xf32, #tpu.memory_space<vmem>>, vector<1x128xf32>
    %93 = vector.broadcast %92 : vector<1x128xf32> to vector<16x128xf32>
    %94 = arith.mulf %91, %93 : vector<16x128xf32>
    %c0_38 = arith.constant 0 : index
    %c0_39 = arith.constant 0 : index
    %95 = vector.load %arg12[%c0_38, %c0_39] : memref<1x128xf32, #tpu.memory_space<vmem>>, vector<1x128xf32>
    %96 = vector.broadcast %95 : vector<1x128xf32> to vector<16x128xf32>
    %97 = arith.addf %94, %96 : vector<16x128xf32>
    %98 = arith.truncf %97 : vector<16x128xf32> to vector<16x128xbf16>
    %c0_40 = arith.constant 0 : index
    %c0_41 = arith.constant 0 : index
    %99 = vector.load %arg13[%c0_40, %c0_41] : memref<128x512xbf16, #tpu.memory_space<vmem>>, vector<128x512xbf16>
    %cst_42 = arith.constant dense<0.000000e+00> : vector<16x512xf32>
    %100 = tpu.matmul %98, %99, %cst_42 {dimension_numbers = #tpu.dot_dimension_numbers<[1], [0], [0], [1], [0, 0, 1, 1], [], []>} : vector<16x128xbf16>, vector<128x512xbf16>, vector<16x512xf32> -> vector<16x512xf32>
    %c0_43 = arith.constant 0 : index
    %c0_44 = arith.constant 0 : index
    %101 = vector.load %arg14[%c0_43, %c0_44] : memref<1x512xf32, #tpu.memory_space<vmem>>, vector<1x512xf32>
    %102 = vector.broadcast %101 : vector<1x512xf32> to vector<16x512xf32>
    %103 = arith.addf %100, %102 : vector<16x512xf32>
    %104 = arith.mulf %103, %103 : vector<16x512xf32>
    %105 = arith.mulf %103, %104 : vector<16x512xf32>
    %cst_45 = arith.constant 4.471500e-02 : f32
    %106 = vector.broadcast %cst_45 : f32 to vector<16x512xf32>
    %107 = arith.mulf %106, %105 : vector<16x512xf32>
    %108 = arith.addf %103, %107 : vector<16x512xf32>
    %cst_46 = arith.constant 0.797884583 : f32
    %109 = vector.broadcast %cst_46 : f32 to vector<16x512xf32>
    %110 = arith.mulf %109, %108 : vector<16x512xf32>
    %111 = math.tanh %110 : vector<16x512xf32>
    %cst_47 = arith.constant 1.000000e+00 : f32
    %112 = vector.broadcast %cst_47 : f32 to vector<16x512xf32>
    %113 = arith.addf %112, %111 : vector<16x512xf32>
    %cst_48 = arith.constant 5.000000e-01 : f32
    %114 = vector.broadcast %cst_48 : f32 to vector<16x512xf32>
    %115 = arith.mulf %114, %113 : vector<16x512xf32>
    %116 = arith.mulf %103, %115 : vector<16x512xf32>
    %117 = arith.truncf %116 : vector<16x512xf32> to vector<16x512xbf16>
    %c0_49 = arith.constant 0 : index
    %c0_50 = arith.constant 0 : index
    %118 = vector.load %arg15[%c0_49, %c0_50] : memref<512x128xbf16, #tpu.memory_space<vmem>>, vector<512x128xbf16>
    %cst_51 = arith.constant dense<0.000000e+00> : vector<16x128xf32>
    %119 = tpu.matmul %117, %118, %cst_51 {dimension_numbers = #tpu.dot_dimension_numbers<[1], [0], [0], [1], [0, 0, 1, 1], [], []>} : vector<16x512xbf16>, vector<512x128xbf16>, vector<16x128xf32> -> vector<16x128xf32>
    %c0_52 = arith.constant 0 : index
    %c0_53 = arith.constant 0 : index
    %120 = vector.load %arg16[%c0_52, %c0_53] : memref<1x128xf32, #tpu.memory_space<vmem>>, vector<1x128xf32>
    %121 = vector.broadcast %120 : vector<1x128xf32> to vector<16x128xf32>
    %122 = arith.addf %119, %121 : vector<16x128xf32>
    %123 = arith.addf %73, %122 : vector<16x128xf32>
    %124 = vector.shape_cast %123 : vector<16x128xf32> to vector<2x8x128xf32>
    %c0_54 = arith.constant 0 : index
    %c0_55 = arith.constant 0 : index
    %c0_56 = arith.constant 0 : index
    %125 = vector.load %arg17[%c0_54, %c0_55, %c0_56] : memref<2x8x128xf32, #tpu.memory_space<vmem>>, vector<2x8x128xf32>
    tpu.vector_store %arg17[%c0_54, %c0_55, %c0_56], %124 {strides = array<i32>} : memref<2x8x128xf32, #tpu.memory_space<vmem>>, vector<2x8x128xf32>,
    return
  }
  func.func @transform_0(%arg0: i32) -> (i32, i32, i32) {
    %c0_i32 = arith.constant 0 : i32
    %c0_i32_0 = arith.constant 0 : i32
    %c0_i32_1 = arith.constant 0 : i32
    return %arg0, %c0_i32, %c0_i32_0 : i32, i32, i32
  }
  func.func @transform_1(%arg0: i32) -> (i32, i32) {
    %c0_i32 = arith.constant 0 : i32
    %c0_i32_0 = arith.constant 0 : i32
    %c0_i32_1 = arith.constant 0 : i32
    return %c0_i32, %c0_i32_0 : i32, i32
  }
  func.func @transform_2(%arg0: i32) -> (i32, i32) {
    %c0_i32 = arith.constant 0 : i32
    %c0_i32_0 = arith.constant 0 : i32
    %c0_i32_1 = arith.constant 0 : i32
    return %c0_i32, %c0_i32_0 : i32, i32
  }
  func.func @transform_3(%arg0: i32) -> (i32, i32) {
    %c0_i32 = arith.constant 0 : i32
    %c0_i32_0 = arith.constant 0 : i32
    %c0_i32_1 = arith.constant 0 : i32
    return %c0_i32, %c0_i32_0 : i32, i32
  }
  func.func @transform_4(%arg0: i32) -> (i32, i32) {
    %c0_i32 = arith.constant 0 : i32
    %c0_i32_0 = arith.constant 0 : i32
    %c0_i32_1 = arith.constant 0 : i32
    return %c0_i32, %c0_i32_0 : i32, i32
  }
  func.func @transform_5(%arg0: i32) -> (i32, i32) {
    %c0_i32 = arith.constant 0 : i32
    %c0_i32_0 = arith.constant 0 : i32
    %c0_i32_1 = arith.constant 0 : i32
    return %c0_i32, %c0_i32_0 : i32, i32
  }
  func.func @transform_6(%arg0: i32) -> (i32, i32) {
    %c0_i32 = arith.constant 0 : i32
    %c0_i32_0 = arith.constant 0 : i32
    %c0_i32_1 = arith.constant 0 : i32
    return %c0_i32, %c0_i32_0 : i32, i32
  }
  func.func @transform_7(%arg0: i32) -> (i32, i32) {
    %c0_i32 = arith.constant 0 : i32
    %c0_i32_0 = arith.constant 0 : i32
    %c0_i32_1 = arith.constant 0 : i32
    return %c0_i32, %c0_i32_0 : i32, i32
  }
  func.func @transform_8(%arg0: i32) -> (i32, i32) {
    %c0_i32 = arith.constant 0 : i32
    %c0_i32_0 = arith.constant 0 : i32
    %c0_i32_1 = arith.constant 0 : i32
    return %c0_i32, %c0_i32_0 : i32, i32
  }
  func.func @transform_9(%arg0: i32) -> (i32, i32) {
    %c0_i32 = arith.constant 0 : i32
    %c0_i32_0 = arith.constant 0 : i32
    %c0_i32_1 = arith.constant 0 : i32
    return %c0_i32, %c0_i32_0 : i32, i32
  }
  func.func @transform_10(%arg0: i32) -> (i32, i32) {
    %c0_i32 = arith.constant 0 : i32
    %c0_i32_0 = arith.constant 0 : i32
    %c0_i32_1 = arith.constant 0 : i32
    return %c0_i32, %c0_i32_0 : i32, i32
  }
  func.func @transform_11(%arg0: i32) -> (i32, i32) {
    %c0_i32 = arith.constant 0 : i32
    %c0_i32_0 = arith.constant 0 : i32
    %c0_i32_1 = arith.constant 0 : i32
    return %c0_i32, %c0_i32_0 : i32, i32
  }
  func.func @transform_12(%arg0: i32) -> (i32, i32) {
    %c0_i32 = arith.constant 0 : i32
    %c0_i32_0 = arith.constant 0 : i32
    %c0_i32_1 = arith.constant 0 : i32
    return %c0_i32, %c0_i32_0 : i32, i32
  }
  func.func @transform_13(%arg0: i32) -> (i32, i32) {
    %c0_i32 = arith.constant 0 : i32
    %c0_i32_0 = arith.constant 0 : i32
    %c0_i32_1 = arith.constant 0 : i32
    return %c0_i32, %c0_i32_0 : i32, i32
  }
  func.func @transform_14(%arg0: i32) -> (i32, i32) {
    %c0_i32 = arith.constant 0 : i32
    %c0_i32_0 = arith.constant 0 : i32
    %c0_i32_1 = arith.constant 0 : i32
    return %c0_i32, %c0_i32_0 : i32, i32
  }
  func.func @transform_15(%arg0: i32) -> (i32, i32) {
    %c0_i32 = arith.constant 0 : i32
    %c0_i32_0 = arith.constant 0 : i32
    %c0_i32_1 = arith.constant 0 : i32
    return %c0_i32, %c0_i32_0 : i32, i32
  }
  func.func @transform_16(%arg0: i32) -> (i32, i32, i32) {
    %c0_i32 = arith.constant 0 : i32
    %c0_i32_0 = arith.constant 0 : i32
    %c0_i32_1 = arith.constant 0 : i32
    return %arg0, %c0_i32, %c0_i32_0 : i32, i32, i32
  }
}

module attributes {stable_mosaic.version = 11 : i64} {
  func.func @token_learner_kernel(%arg0: i32, %arg1: memref<2x16x128xbf16, #tpu.memory_space<vmem>>, %arg2: memref<16x128xf32, #tpu.memory_space<vmem>>, %arg3: memref<1x128xf32, #tpu.memory_space<vmem>>, %arg4: memref<1x128xf32, #tpu.memory_space<vmem>>, %arg5: memref<64x128xbf16, #tpu.memory_space<vmem>>, %arg6: memref<8x128xf32, #tpu.memory_space<vmem>>, %arg7: memref<128x256xbf16, #tpu.memory_space<vmem>>, %arg8: memref<1x256xf32, #tpu.memory_space<vmem>>, %arg9: memref<128x128xbf16, #tpu.memory_space<vmem>>, %arg10: memref<1x128xf32, #tpu.memory_space<vmem>>, %arg11: memref<1x128xf32, #tpu.memory_space<vmem>>, %arg12: memref<1x128xf32, #tpu.memory_space<vmem>>, %arg13: memref<128x512xbf16, #tpu.memory_space<vmem>>, %arg14: memref<1x512xf32, #tpu.memory_space<vmem>>, %arg15: memref<512x128xbf16, #tpu.memory_space<vmem>>, %arg16: memref<1x128xf32, #tpu.memory_space<vmem>>, %arg17: memref<2x8x128xf32, #tpu.memory_space<vmem>>) attributes {dimension_semantics = [#tpu.dimension_semantics<parallel>], iteration_bounds = array<i64: 2>, scalar_prefetch = 0 : i64, scratch_operands = 0 : i64, tpu.core_type = #tpu.core_type<tc>, window_params = [{transform_indices = @transform_0, window_bounds = array<i64: 2, 16, 128>}, {pipeline_mode = #tpu.pipeline_mode<synchronous>, transform_indices = @transform_1, window_bounds = array<i64: 16, 128>}, {pipeline_mode = #tpu.pipeline_mode<synchronous>, transform_indices = @transform_2, window_bounds = array<i64: 1, 128>}, {pipeline_mode = #tpu.pipeline_mode<synchronous>, transform_indices = @transform_3, window_bounds = array<i64: 1, 128>}, {pipeline_mode = #tpu.pipeline_mode<synchronous>, transform_indices = @transform_4, window_bounds = array<i64: 64, 128>}, {pipeline_mode = #tpu.pipeline_mode<synchronous>, transform_indices = @transform_5, window_bounds = array<i64: 8, 128>}, {pipeline_mode = #tpu.pipeline_mode<synchronous>, transform_indices = @transform_6, window_bounds = array<i64: 128, 256>}, {pipeline_mode = #tpu.pipeline_mode<synchronous>, transform_indices = @transform_7, window_bounds = array<i64: 1, 256>}, {pipeline_mode = #tpu.pipeline_mode<synchronous>, transform_indices = @transform_8, window_bounds = array<i64: 128, 128>}, {pipeline_mode = #tpu.pipeline_mode<synchronous>, transform_indices = @transform_9, window_bounds = array<i64: 1, 128>}, {pipeline_mode = #tpu.pipeline_mode<synchronous>, transform_indices = @transform_10, window_bounds = array<i64: 1, 128>}, {pipeline_mode = #tpu.pipeline_mode<synchronous>, transform_indices = @transform_11, window_bounds = array<i64: 1, 128>}, {pipeline_mode = #tpu.pipeline_mode<synchronous>, transform_indices = @transform_12, window_bounds = array<i64: 128, 512>}, {pipeline_mode = #tpu.pipeline_mode<synchronous>, transform_indices = @transform_13, window_bounds = array<i64: 1, 512>}, {pipeline_mode = #tpu.pipeline_mode<synchronous>, transform_indices = @transform_14, window_bounds = array<i64: 512, 128>}, {pipeline_mode = #tpu.pipeline_mode<synchronous>, transform_indices = @transform_15, window_bounds = array<i64: 1, 128>}, {transform_indices = @transform_16, window_bounds = array<i64: 2, 8, 128>}]} {
    %c0 = arith.constant 0 : index
    %c0_0 = arith.constant 0 : index
    %c0_1 = arith.constant 0 : index
    %0 = vector.load %arg1[%c0, %c0_0, %c0_1] : memref<2x16x128xbf16, #tpu.memory_space<vmem>>, vector<2x16x128xbf16>
    %1 = arith.extf %0 : vector<2x16x128xbf16> to vector<2x16x128xf32>
    %c0_2 = arith.constant 0 : index
    %c0_3 = arith.constant 0 : index
    %2 = vector.load %arg2[%c0_2, %c0_3] : memref<16x128xf32, #tpu.memory_space<vmem>>, vector<16x128xf32>
    %3 = vector.shape_cast %2 : vector<16x128xf32> to vector<1x16x128xf32>
    %4 = vector.broadcast %3 : vector<1x16x128xf32> to vector<2x16x128xf32>
    %5 = arith.addf %1, %4 : vector<2x16x128xf32>
    %cst = arith.constant dense<0.000000e+00> : vector<2x16xf32>
    %6 = vector.multi_reduction <add>, %5, %cst [2] : vector<2x16x128xf32> to vector<2x16xf32>
    %7 = vector.shape_cast %6 : vector<2x16xf32> to vector<2x16x1xf32>
    %cst_4 = arith.constant 1.280000e+02 : f32
    %8 = vector.broadcast %cst_4 : f32 to vector<2x16x1xf32>
    %9 = arith.divf %7, %8 : vector<2x16x1xf32>
    %10 = vector.broadcast %9 : vector<2x16x1xf32> to vector<2x16x128xf32>
    %11 = arith.subf %5, %10 : vector<2x16x128xf32>
    %12 = arith.mulf %11, %11 : vector<2x16x128xf32>
    %cst_5 = arith.constant dense<0.000000e+00> : vector<2x16xf32>
    %13 = vector.multi_reduction <add>, %12, %cst_5 [2] : vector<2x16x128xf32> to vector<2x16xf32>
    %14 = vector.shape_cast %13 : vector<2x16xf32> to vector<2x16x1xf32>
    %cst_6 = arith.constant 1.280000e+02 : f32
    %15 = vector.broadcast %cst_6 : f32 to vector<2x16x1xf32>
    %16 = arith.divf %14, %15 : vector<2x16x1xf32>
    %17 = vector.broadcast %9 : vector<2x16x1xf32> to vector<2x16x128xf32>
    %18 = arith.subf %5, %17 : vector<2x16x128xf32>
    %cst_7 = arith.constant 9.99999997E-7 : f32
    %19 = vector.broadcast %cst_7 : f32 to vector<2x16x1xf32>
    %20 = arith.addf %16, %19 : vector<2x16x1xf32>
    %21 = math.rsqrt %20 : vector<2x16x1xf32>
    %22 = vector.broadcast %21 : vector<2x16x1xf32> to vector<2x16x128xf32>
    %23 = arith.mulf %18, %22 : vector<2x16x128xf32>
    %c0_8 = arith.constant 0 : index
    %c0_9 = arith.constant 0 : index
    %24 = vector.load %arg3[%c0_8, %c0_9] : memref<1x128xf32, #tpu.memory_space<vmem>>, vector<1x128xf32>
    %25 = vector.shape_cast %24 : vector<1x128xf32> to vector<1x1x128xf32>
    %26 = vector.broadcast %25 : vector<1x1x128xf32> to vector<2x16x128xf32>
    %27 = arith.mulf %23, %26 : vector<2x16x128xf32>
    %c0_10 = arith.constant 0 : index
    %c0_11 = arith.constant 0 : index
    %28 = vector.load %arg4[%c0_10, %c0_11] : memref<1x128xf32, #tpu.memory_space<vmem>>, vector<1x128xf32>
    %29 = vector.shape_cast %28 : vector<1x128xf32> to vector<1x1x128xf32>
    %30 = vector.broadcast %29 : vector<1x1x128xf32> to vector<2x16x128xf32>
    %31 = arith.addf %27, %30 : vector<2x16x128xf32>
    %32 = vector.shape_cast %31 : vector<2x16x128xf32> to vector<32x128xf32>
    %33 = arith.truncf %32 : vector<32x128xf32> to vector<32x128xbf16>
    %c0_12 = arith.constant 0 : index
    %c0_13 = arith.constant 0 : index
    %34 = vector.load %arg7[%c0_12, %c0_13] : memref<128x256xbf16, #tpu.memory_space<vmem>>, vector<128x256xbf16>
    %cst_14 = arith.constant dense<0.000000e+00> : vector<32x256xf32>
    %35 = tpu.matmul %33, %34, %cst_14 {dimension_numbers = #tpu.dot_dimension_numbers<[1], [0], [0], [1], [0, 0, 1, 1], [], []>} : vector<32x128xbf16>, vector<128x256xbf16>, vector<32x256xf32> -> vector<32x256xf32>
    %c0_15 = arith.constant 0 : index
    %c0_16 = arith.constant 0 : index
    %36 = vector.load %arg8[%c0_15, %c0_16] : memref<1x256xf32, #tpu.memory_space<vmem>>, vector<1x256xf32>
    %37 = vector.broadcast %36 : vector<1x256xf32> to vector<32x256xf32>
    %38 = arith.addf %35, %37 : vector<32x256xf32>
    %39 = vector.extract_strided_slice %38 {offsets = [0, 0], sizes = [32, 128], strides = [1, 1]} : vector<32x256xf32> to vector<32x128xf32>
    %40 = vector.shape_cast %39 : vector<32x128xf32> to vector<2x16x128xf32>
    %41 = arith.truncf %40 : vector<2x16x128xf32> to vector<2x16x128xbf16>
    %42 = vector.extract_strided_slice %38 {offsets = [0, 128], sizes = [32, 128], strides = [1, 1]} : vector<32x256xf32> to vector<32x128xf32>
    %43 = vector.shape_cast %42 : vector<32x128xf32> to vector<2x16x128xf32>
    %44 = arith.truncf %43 : vector<2x16x128xf32> to vector<2x16x128xbf16>
    %c0_17 = arith.constant 0 : index
    %c0_18 = arith.constant 0 : index
    %45 = vector.load %arg5[%c0_17, %c0_18] : memref<64x128xbf16, #tpu.memory_space<vmem>>, vector<64x128xbf16>
    %46 = vector.shape_cast %45 : vector<64x128xbf16> to vector<1x64x128xbf16>
    %47 = vector.shape_cast %46 : vector<1x64x128xbf16> to vector<1x64x128xbf16>
    %48 = vector.broadcast %47 : vector<1x64x128xbf16> to vector<2x64x128xbf16>
    "tpu.trace_start"() <{level = 10 : i32, message = "bqd,bkd->bqk"}> : () -> ()
    %cst_19 = arith.constant dense<0.000000e+00> : vector<2x64x16xf32>
    %49 = tpu.matmul %48, %41, %cst_19 {dimension_numbers = #tpu.dot_dimension_numbers<[2], [2], [1], [1], [0, 0, 0, 1, 1, 1], [0], [0]>} : vector<2x64x128xbf16>, vector<2x16x128xbf16>, vector<2x64x16xf32> -> vector<2x64x16xf32>
    "tpu.trace_stop"() : () -> ()
    %cst_20 = arith.constant dense<0xFF800000> : vector<2x64xf32>
    %50 = vector.multi_reduction <maximumf>, %49, %cst_20 [2] : vector<2x64x16xf32> to vector<2x64xf32>
    %51 = vector.shape_cast %50 : vector<2x64xf32> to vector<2x64x1xf32>
    %52 = vector.broadcast %51 : vector<2x64x1xf32> to vector<2x64x16xf32>
    %53 = arith.subf %49, %52 : vector<2x64x16xf32>
    %54 = math.exp %53 : vector<2x64x16xf32>
    %cst_21 = arith.constant dense<0.000000e+00> : vector<2x64xf32>
    %55 = vector.multi_reduction <add>, %54, %cst_21 [2] : vector<2x64x16xf32> to vector<2x64xf32>
    %56 = vector.shape_cast %55 : vector<2x64xf32> to vector<2x64x1xf32>
    %57 = tpu.reciprocal %56 {approx = true} : vector<2x64x1xf32> -> vector<2x64x1xf32>
    %58 = vector.broadcast %57 : vector<2x64x1xf32> to vector<2x64x16xf32>
    %59 = arith.mulf %54, %58 : vector<2x64x16xf32>
    %60 = arith.truncf %59 : vector<2x64x16xf32> to vector<2x64x16xbf16>
    "tpu.trace_start"() <{level = 10 : i32, message = "bqk,bkd->bqd"}> : () -> ()
    %cst_22 = arith.constant dense<0.000000e+00> : vector<2x64x128xf32>
    %61 = tpu.matmul %60, %44, %cst_22 {dimension_numbers = #tpu.dot_dimension_numbers<[2], [1], [1], [2], [0, 0, 0, 1, 1, 2], [0], [0]>} : vector<2x64x16xbf16>, vector<2x16x128xbf16>, vector<2x64x128xf32> -> vector<2x64x128xf32>
    "tpu.trace_stop"() : () -> ()
    %62 = vector.shape_cast %61 : vector<2x64x128xf32> to vector<16x8x128xf32>
    %c0_23 = arith.constant 0 : index
    %c0_24 = arith.constant 0 : index
    %63 = vector.load %arg6[%c0_23, %c0_24] : memref<8x128xf32, #tpu.memory_space<vmem>>, vector<8x128xf32>
    %64 = vector.shape_cast %63 : vector<8x128xf32> to vector<1x8x128xf32>
    %65 = vector.broadcast %64 : vector<1x8x128xf32> to vector<16x8x128xf32>
    %66 = arith.mulf %62, %65 : vector<16x8x128xf32>
    %cst_25 = arith.constant dense<0.000000e+00> : vector<16x128xf32>
    %67 = vector.multi_reduction <add>, %66, %cst_25 [1] : vector<16x8x128xf32> to vector<16x128xf32>
    %68 = arith.truncf %67 : vector<16x128xf32> to vector<16x128xbf16>
    %c0_26 = arith.constant 0 : index
    %c0_27 = arith.constant 0 : index
    %69 = vector.load %arg9[%c0_26, %c0_27] : memref<128x128xbf16, #tpu.memory_space<vmem>>, vector<128x128xbf16>
    %cst_28 = arith.constant dense<0.000000e+00> : vector<16x128xf32>
    %70 = tpu.matmul %68, %69, %cst_28 {dimension_numbers = #tpu.dot_dimension_numbers<[1], [0], [0], [1], [0, 0, 1, 1], [], []>} : vector<16x128xbf16>, vector<128x128xbf16>, vector<16x128xf32> -> vector<16x128xf32>
    %c0_29 = arith.constant 0 : index
    %c0_30 = arith.constant 0 : index
    %71 = vector.load %arg10[%c0_29, %c0_30] : memref<1x128xf32, #tpu.memory_space<vmem>>, vector<1x128xf32>
    %72 = vector.broadcast %71 : vector<1x128xf32> to vector<16x128xf32>
    %73 = arith.addf %70, %72 : vector<16x128xf32>
    %cst_31 = arith.constant dense<0.000000e+00> : vector<16xf32>
    %74 = vector.multi_reduction <add>, %73, %cst_31 [1] : vector<16x128xf32> to vector<16xf32>
    %75 = vector.shape_cast %74 : vector<16xf32> to vector<16x1xf32>
    %cst_32 = arith.constant 1.280000e+02 : f32
    %76 = vector.broadcast %cst_32 : f32 to vector<16x1xf32>
    %77 = arith.divf %75, %76 : vector<16x1xf32>
    %78 = vector.broadcast %77 : vector<16x1xf32> to vector<16x128xf32>
    %79 = arith.subf %73, %78 : vector<16x128xf32>
    %80 = arith.mulf %79, %79 : vector<16x128xf32>
    %cst_33 = arith.constant dense<0.000000e+00> : vector<16xf32>
    %81 = vector.multi_reduction <add>, %80, %cst_33 [1] : vector<16x128xf32> to vector<16xf32>
    %82 = vector.shape_cast %81 : vector<16xf32> to vector<16x1xf32>
    %cst_34 = arith.constant 1.280000e+02 : f32
    %83 = vector.broadcast %cst_34 : f32 to vector<16x1xf32>
    %84 = arith.divf %82, %83 : vector<16x1xf32>
    %85 = vector.broadcast %77 : vector<16x1xf32> to vector<16x128xf32>
    %86 = arith.subf %73, %85 : vector<16x128xf32>
    %cst_35 = arith.constant 9.99999997E-7 : f32
    %87 = vector.broadcast %cst_35 : f32 to vector<16x1xf32>
    %88 = arith.addf %84, %87 : vector<16x1xf32>
    %89 = math.rsqrt %88 : vector<16x1xf32>
    %90 = vector.broadcast %89 : vector<16x1xf32> to vector<16x128xf32>
    %91 = arith.mulf %86, %90 : vector<16x128xf32>
    %c0_36 = arith.constant 0 : index
    %c0_37 = arith.constant 0 : index
    %92 = vector.load %arg11[%c0_36, %c0_37] : memref<1x128xf32, #tpu.memory_space<vmem>>, vector<1x128xf32>
    %93 = vector.broadcast %92 : vector<1x128xf32> to vector<16x128xf32>
    %94 = arith.mulf %91, %93 : vector<16x128xf32>
    %c0_38 = arith.constant 0 : index
    %c0_39 = arith.constant 0 : index
    %95 = vector.load %arg12[%c0_38, %c0_39] : memref<1x128xf32, #tpu.memory_space<vmem>>, vector<1x128xf32>
    %96 = vector.broadcast %95 : vector<1x128xf32> to vector<16x128xf32>
    %97 = arith.addf %94, %96 : vector<16x128xf32>
    %98 = arith.truncf %97 : vector<16x128xf32> to vector<16x128xbf16>
    %c0_40 = arith.constant 0 : index
    %c0_41 = arith.constant 0 : index
    %99 = vector.load %arg13[%c0_40, %c0_41] : memref<128x512xbf16, #tpu.memory_space<vmem>>, vector<128x512xbf16>
    %cst_42 = arith.constant dense<0.000000e+00> : vector<16x512xf32>
    %100 = tpu.matmul %98, %99, %cst_42 {dimension_numbers = #tpu.dot_dimension_numbers<[1], [0], [0], [1], [0, 0, 1, 1], [], []>} : vector<16x128xbf16>, vector<128x512xbf16>, vector<16x512xf32> -> vector<16x512xf32>
    %c0_43 = arith.constant 0 : index
    %c0_44 = arith.constant 0 : index
    %101 = vector.load %arg14[%c0_43, %c0_44] : memref<1x512xf32, #tpu.memory_space<vmem>>, vector<1x512xf32>
    %102 = vector.broadcast %101 : vector<1x512xf32> to vector<16x512xf32>
    %103 = arith.addf %100, %102 : vector<16x512xf32>
    %104 = arith.mulf %103, %103 : vector<16x512xf32>
    %105 = arith.mulf %103, %104 : vector<16x512xf32>
    %cst_45 = arith.constant 4.471500e-02 : f32
    %106 = vector.broadcast %cst_45 : f32 to vector<16x512xf32>
    %107 = arith.mulf %106, %105 : vector<16x512xf32>
    %108 = arith.addf %103, %107 : vector<16x512xf32>
    %cst_46 = arith.constant 0.797884583 : f32
    %109 = vector.broadcast %cst_46 : f32 to vector<16x512xf32>
    %110 = arith.mulf %109, %108 : vector<16x512xf32>
    %111 = math.tanh %110 : vector<16x512xf32>
    %cst_47 = arith.constant 1.000000e+00 : f32
    %112 = vector.broadcast %cst_47 : f32 to vector<16x512xf32>
    %113 = arith.addf %112, %111 : vector<16x512xf32>
    %cst_48 = arith.constant 5.000000e-01 : f32
    %114 = vector.broadcast %cst_48 : f32 to vector<16x512xf32>
    %115 = arith.mulf %114, %113 : vector<16x512xf32>
    %116 = arith.mulf %103, %115 : vector<16x512xf32>
    %117 = arith.truncf %116 : vector<16x512xf32> to vector<16x512xbf16>
    %c0_49 = arith.constant 0 : index
    %c0_50 = arith.constant 0 : index
    %118 = vector.load %arg15[%c0_49, %c0_50] : memref<512x128xbf16, #tpu.memory_space<vmem>>, vector<512x128xbf16>
    %cst_51 = arith.constant dense<0.000000e+00> : vector<16x128xf32>
    %119 = tpu.matmul %117, %118, %cst_51 {dimension_numbers = #tpu.dot_dimension_numbers<[1], [0], [0], [1], [0, 0, 1, 1], [], []>} : vector<16x512xbf16>, vector<512x128xbf16>, vector<16x128xf32> -> vector<16x128xf32>
    %c0_52 = arith.constant 0 : index
    %c0_53 = arith.constant 0 : index
    %120 = vector.load %arg16[%c0_52, %c0_53] : memref<1x128xf32, #tpu.memory_space<vmem>>, vector<1x128xf32>
    %121 = vector.broadcast %120 : vector<1x128xf32> to vector<16x128xf32>
    %122 = arith.addf %119, %121 : vector<16x128xf32>
    %123 = arith.addf %73, %122 : vector<16x128xf32>
    %124 = vector.shape_cast %123 : vector<16x128xf32> to vector<2x8x128xf32>
    %c0_54 = arith.constant 0 : index
    %c0_55 = arith.constant 0 : index
    %c0_56 = arith.constant 0 : index
    %125 = vector.load %arg17[%c0_54, %c0_55, %c0_56] : memref<2x8x128xf32, #tpu.memory_space<vmem>>, vector<2x8x128xf32>
    tpu.vector_store %arg17[%c0_54, %c0_55, %c0_56], %124 {strides = array<i32>} : memref<2x8x128xf32, #tpu.memory_space<vmem>>, vector<2x8x128xf32>,
    return
  }
  func.func @transform_0(%arg0: i32) -> (i32, i32, i32) {
    %c0_i32 = arith.constant 0 : i32
    %c0_i32_0 = arith.constant 0 : i32
    %c0_i32_1 = arith.constant 0 : i32
    return %arg0, %c0_i32, %c0_i32_0 : i32, i32, i32
  }
  func.func @transform_1(%arg0: i32) -> (i32, i32) {
    %c0_i32 = arith.constant 0 : i32
    %c0_i32_0 = arith.constant 0 : i32
    %c0_i32_1 = arith.constant 0 : i32
    return %c0_i32, %c0_i32_0 : i32, i32
  }
  func.func @transform_2(%arg0: i32) -> (i32, i32) {
    %c0_i32 = arith.constant 0 : i32
    %c0_i32_0 = arith.constant 0 : i32
    %c0_i32_1 = arith.constant 0 : i32
    return %c0_i32, %c0_i32_0 : i32, i32
  }
  func.func @transform_3(%arg0: i32) -> (i32, i32) {
    %c0_i32 = arith.constant 0 : i32
    %c0_i32_0 = arith.constant 0 : i32
    %c0_i32_1 = arith.constant 0 : i32
    return %c0_i32, %c0_i32_0 : i32, i32
  }
  func.func @transform_4(%arg0: i32) -> (i32, i32) {
    %c0_i32 = arith.constant 0 : i32
    %c0_i32_0 = arith.constant 0 : i32
    %c0_i32_1 = arith.constant 0 : i32
    return %c0_i32, %c0_i32_0 : i32, i32
  }
  func.func @transform_5(%arg0: i32) -> (i32, i32) {
    %c0_i32 = arith.constant 0 : i32
    %c0_i32_0 = arith.constant 0 : i32
    %c0_i32_1 = arith.constant 0 : i32
    return %c0_i32, %c0_i32_0 : i32, i32
  }
  func.func @transform_6(%arg0: i32) -> (i32, i32) {
    %c0_i32 = arith.constant 0 : i32
    %c0_i32_0 = arith.constant 0 : i32
    %c0_i32_1 = arith.constant 0 : i32
    return %c0_i32, %c0_i32_0 : i32, i32
  }
  func.func @transform_7(%arg0: i32) -> (i32, i32) {
    %c0_i32 = arith.constant 0 : i32
    %c0_i32_0 = arith.constant 0 : i32
    %c0_i32_1 = arith.constant 0 : i32
    return %c0_i32, %c0_i32_0 : i32, i32
  }
  func.func @transform_8(%arg0: i32) -> (i32, i32) {
    %c0_i32 = arith.constant 0 : i32
    %c0_i32_0 = arith.constant 0 : i32
    %c0_i32_1 = arith.constant 0 : i32
    return %c0_i32, %c0_i32_0 : i32, i32
  }
  func.func @transform_9(%arg0: i32) -> (i32, i32) {
    %c0_i32 = arith.constant 0 : i32
    %c0_i32_0 = arith.constant 0 : i32
    %c0_i32_1 = arith.constant 0 : i32
    return %c0_i32, %c0_i32_0 : i32, i32
  }
  func.func @transform_10(%arg0: i32) -> (i32, i32) {
    %c0_i32 = arith.constant 0 : i32
    %c0_i32_0 = arith.constant 0 : i32
    %c0_i32_1 = arith.constant 0 : i32
    return %c0_i32, %c0_i32_0 : i32, i32
  }
  func.func @transform_11(%arg0: i32) -> (i32, i32) {
    %c0_i32 = arith.constant 0 : i32
    %c0_i32_0 = arith.constant 0 : i32
    %c0_i32_1 = arith.constant 0 : i32
    return %c0_i32, %c0_i32_0 : i32, i32
  }
  func.func @transform_12(%arg0: i32) -> (i32, i32) {
    %c0_i32 = arith.constant 0 : i32
    %c0_i32_0 = arith.constant 0 : i32
    %c0_i32_1 = arith.constant 0 : i32
    return %c0_i32, %c0_i32_0 : i32, i32
  }
  func.func @transform_13(%arg0: i32) -> (i32, i32) {
    %c0_i32 = arith.constant 0 : i32
    %c0_i32_0 = arith.constant 0 : i32
    %c0_i32_1 = arith.constant 0 : i32
    return %c0_i32, %c0_i32_0 : i32, i32
  }
  func.func @transform_14(%arg0: i32) -> (i32, i32) {
    %c0_i32 = arith.constant 0 : i32
    %c0_i32_0 = arith.constant 0 : i32
    %c0_i32_1 = arith.constant 0 : i32
    return %c0_i32, %c0_i32_0 : i32, i32
  }
  func.func @transform_15(%arg0: i32) -> (i32, i32) {
    %c0_i32 = arith.constant 0 : i32
    %c0_i32_0 = arith.constant 0 : i32
    %c0_i32_1 = arith.constant 0 : i32
    return %c0_i32, %c0_i32_0 : i32, i32
  }
  func.func @transform_16(%arg0: i32) -> (i32, i32, i32) {
    %c0_i32 = arith.constant 0 : i32
    %c0_i32_0 = arith.constant 0 : i32
    %c0_i32_1 = arith.constant 0 : i32
    return %arg0, %c0_i32, %c0_i32_0 : i32, i32, i32
  }
}

</mosaic_0001>

<bundles_post_ra>
// kernel: tpu_custom_call.1
= control target key start
LH: loop header
LB: loop body
LE: loop exit
PB: predicated region body
PF: predicated region fallthrough
CT: control target
= control target key end

     0   :  { %s4303_s0 = inlined_call_operand.hbm [shape: bf16[4,16,128], index: 0, kind: input, shape index: {}]   ;;  %s4304_s1 = inlined_call_operand.hbm [shape: f32[16,128], index: 1, kind: input, shape index: {}]   ;;  %s4305_s2 = inlined_call_operand.vmem [shape: f32[1,128], index: 2, kind: input, shape index: {}]   ;;  %s4306_s3 = inlined_call_operand.hbm [shape: f32[1,128], index: 3, kind: input, shape index: {}]   ;;  %s4307_s4 = inlined_call_operand.hbm [shape: bf16[64,128], index: 4, kind: input, shape index: {}]   ;;  %s4308_s5 = inlined_call_operand.vmem [shape: f32[8,128], index: 5, kind: input, shape index: {}]   ;;  %s4309_s6 = inlined_call_operand.hbm [shape: bf16[128,256], index: 6, kind: input, shape index: {}]   ;;  %s4310_s7 = inlined_call_operand.vmem [shape: f32[1,256], index: 7, kind: input, shape index: {}]   ;;  %s4311_s8 = inlined_call_operand.hbm [shape: bf16[128,128], index: 8, kind: input, shape index: {}]   ;;  %s4312_s9 = inlined_call_operand.vmem [shape: f32[1,128], index: 9, kind: input, shape index: {}]   ;;  %s4313_s10 = inlined_call_operand.vmem [shape: f32[1,128], index: 10, kind: input, shape index: {}]   ;;  %s4314_s11 = inlined_call_operand.vmem [shape: f32[1,128], index: 11, kind: input, shape index: {}]   ;;  %s4315_s12 = inlined_call_operand.hbm [shape: bf16[128,512], index: 12, kind: input, shape index: {}]   ;;  %s4316_s13 = inlined_call_operand.vmem [shape: f32[1,512], index: 13, kind: input, shape index: {}]   ;;  %s4317_s14 = inlined_call_operand.hbm [shape: bf16[512,128], index: 14, kind: input, shape index: {}]   ;;  %s4318_s15 = inlined_call_operand.vmem [shape: f32[1,128], index: 15, kind: input, shape index: {}]   ;;  %s4319_s16 = inlined_call_operand.hbm [shape: f32[4,8,128], index: 16, kind: output, shape index: {}]  }
   0x1   :  { %4330 = sst [smem:[#allocation23_spill]] %s4303_s0 }
   0x2   :  { %4331 = sst [smem:[#allocation24_spill]] %s4304_s1 }
   0x3   :  { %4332 = sst [smem:[#allocation25_spill]] %s4306_s3 }
   0x4   :  { %4333 = sst [smem:[#allocation26_spill]] %s4308_s5 }
   0x5   :  { %4334 = sst [smem:[#allocation27_spill]] %s4312_s9 }
   0x6   :  { %4335 = sst [smem:[#allocation28_spill]] %s4313_s10 }
   0x7   :  { %4336 = sst [smem:[#allocation29_spill]] %s4314_s11 }
   0x8   :  { %4337 = sst [smem:[#allocation30_spill]] %s4316_s13 }
   0x9   :  { %4338 = sst [smem:[#allocation31_spill]] %s4318_s15 }
   0xa   :  { %4339 = sst [smem:[#allocation32_spill]] %s4319_s16 }
   0xb   :  { %21 = vsyncpa [#allocation3], 0 }
   0xc   :  { %23 = vsyncpa [#allocation3 + $0x1], 0 }
   0xd   :  { %24 = vsyncpa [#allocation6], 0 }
   0xe   :  { %25 = vsyncpa [#allocation9], 0 }
   0xf   :  { %26 = vsyncpa [#allocation12], 0 }
  0x10   :  { %27 = vsyncpa [#allocation15], 0 }
  0x11   :  { %28 = vsyncpa [#allocation4], 0 }
  0x12   :  { %30 = vsyncpa [#allocation4 + $0x1], 0  ;;  %s3640_s21 = smov 0   ;;  %s3642_s22 = smov 0  }
  0x13   :  { %s3644_s23 = smov 0   ;;  %s3646_s24 = smov 0  }
  0x14 LB: > { %s3535_s25 = smov [#allocation5]   ;;  %s3661_s27 = sadd.s32 4294967295, %s3533_s24   ;;  %s3533_s24 = sphi %s3646_s24, %s4377_s24   ;;  %s3529_s23 = sphi %s3644_s23, %s4376_s23   ;;  %s3525_s22 = sphi %s3642_s22, %s4375_s22   ;;  %s3521_s21 = sphi %s3640_s21, %s4374_s21  }
  0x15   : > { %s420_s26 = sshll.u32 %s3535_s25, 4  ;;  %p2610_p0 = scmp.ge.s32.totalorder %s3533_s24, 1  ;;  %s3666_s26 = int_to_ptr.vmem [resolvable:$true] %s420_s26 }
  0x16   : > { %p4323_p1 = scmp.eq.s32.totalorder %s3661_s27, 0  ;;  %p408_p2 = scmp.lt.s32.totalorder %s3533_s24, 3 }
  0x17   : > { %s3536_s29 = smov [#allocation8]   ;;  %s3537_s17 = smov [#allocation11]  }
  0x18   : > { %p3668_p3 = pnand %p2610_p0, %p408_p2  ;;  %s447_s30 = sshll.u32 %s3536_s29, 4  ;;  %s3681_s30 = int_to_ptr.vmem [resolvable:$true] %s447_s30 }
  0x19   : > { %s3683_s18 = sshll.u32 %s3537_s17, 4  ;;  %s4342_s1 = sld [smem:[#allocation24_spill]]  ;;  %s480_s18 = int_to_ptr.vmem [resolvable:$true] %s3683_s18 }
  0x1a   : > { %s4340_s28 = scalar_select %p3668_p3, 1, 0 }
  0x1b   : > { %p2921_p5 = pneg %p3668_p3 }
  0x1d   : > { %p3677_p6 = pnand %p2921_p5, %p4323_p1 }
  0x1f   : > { %s3225_s25 = scalar_lea.hbm %s4342_s1, 256  ;;  %p3693_p8 = pneg %p3677_p6 }
  0x20   : > { %p3226_p7 = scmp.ne.s32.totalorder %s4342_s1, %s3225_s25  ;;  %p3232_p11 = scmp.lt.u32.totalorder %s3225_s25, %s4342_s1 }
  0x22   : > { %p3228_p9 = pnand %p3693_p8, %p3226_p7 }
  0x24   : > { %p3229_p10 = pneg %p3228_p9 }
  0x26   : > { %p3234_p12 = pnand %p3232_p11, %p3229_p10 }
  0x28   : > { %3237 = shalt.err (!%p3234_p12)
}
  0x29   : > { %s3238_s15 = scalar_lea.vmem %s3666_s26, 256  ;;  %p3246_p5 = scmp.lt.s32.totalorder %s3666_s26, %s3666_s26 }
  0x2a   : > { %p3239_p13 = scmp.ne.s32.totalorder %s3666_s26, %s3238_s15  ;;  %p3247_p4 = scmp.lt.s32.totalorder %s3238_s15, %s3238_s15 }
  0x2c   : > { %p3241_p0 = pnand %p3239_p13, %p3693_p8  ;;  %p3248_p7 = por %p3247_p4, %p3246_p5 }
  0x2e   : > { %p3242_p2 = pneg %p3241_p0 }
  0x30   : > { %p3249_p9 = pnand %p3248_p7, %p3242_p2 }
  0x32   : > { %3252 = shalt.err (!%p3249_p9)
}
  0x33   : > { %s4322_s16 = smov 128   ;;  %s4325_s13 = smov 8  }
  0x34   : > { %2924 = dma.hbm_to_vmem [thread:$0]  (!%p3677_p6), %s4342_s1, 256, %s3666_s26, [#allocation6], %s4322_s16, %s4322_s16, %s4325_s13  }
  0x35   : > { %s3253_s15 = scalar_lea.hbm %s4307_s4, 512 }
  0x36   : > { %p3254_p4 = scmp.ne.s32.totalorder %s4307_s4, %s3253_s15  ;;  %p3260_p12 = scmp.lt.u32.totalorder %s3253_s15, %s4307_s4 }
  0x38   : > { %p3256_p10 = pnand %p3254_p4, %p3693_p8 }
  0x3a   : > { %p3257_p11 = pneg %p3256_p10 }
  0x3c   : > { %p3262_p13 = pnand %p3260_p12, %p3257_p11 }
  0x3e   : > { %3265 = shalt.err (!%p3262_p13)
}
  0x3f   : > { %s3266_s26 = scalar_lea.vmem %s3681_s30, 512  ;;  %p3274_p7 = scmp.lt.s32.totalorder %s3681_s30, %s3681_s30 }
  0x40   : > { %p3267_p0 = scmp.ne.s32.totalorder %s3681_s30, %s3266_s26  ;;  %p3275_p9 = scmp.lt.s32.totalorder %s3266_s26, %s3266_s26 }
  0x42   : > { %p3269_p2 = pnand %p3267_p0, %p3693_p8  ;;  %p3276_p4 = por %p3275_p9, %p3274_p7 }
  0x44   : > { %p3270_p5 = pneg %p3269_p2 }
  0x46   : > { %p3277_p10 = pnand %p3276_p4, %p3270_p5 }
  0x48   : > { %3280 = shalt.err (!%p3277_p10)
}
  0x49   : > { %s4326_s10 = smov 64   ;;  %s4328_s5 = smov 4  }
  0x4a   : > { %2930 = dma.hbm_to_vmem [thread:$0]  (!%p3677_p6), %s4307_s4, 512, %s3681_s30, [#allocation9], %s4326_s10, %s4326_s10, %s4328_s5  }
  0x4b   : > { %s3281_s25 = scalar_lea.hbm %s4311_s8, 1024 }
  0x4c   : > { %p3282_p11 = scmp.ne.s32.totalorder %s4311_s8, %s3281_s25  ;;  %p3288_p0 = scmp.lt.u32.totalorder %s3281_s25, %s4311_s8 }
  0x4e   : > { %p3284_p12 = pnand %p3282_p11, %p3693_p8 }
  0x50   : > { %p3285_p13 = pneg %p3284_p12 }
  0x52   : > { %p3290_p2 = pnand %p3288_p0, %p3285_p13 }
  0x54   : > { %3293 = shalt.err (!%p3290_p2)
}
  0x55   : > { %s3294_s9 = scalar_lea.vmem %s480_s18, 1024  ;;  %p3302_p4 = scmp.lt.s32.totalorder %s480_s18, %s480_s18 }
  0x56   : > { %p3295_p5 = scmp.ne.s32.totalorder %s480_s18, %s3294_s9  ;;  %p3303_p10 = scmp.lt.s32.totalorder %s3294_s9, %s3294_s9 }
  0x58   : > { %p3297_p7 = pnand %p3295_p5, %p3693_p8  ;;  %p3304_p1 = por %p3303_p10, %p3302_p4 }
  0x5a   : > { %p3298_p9 = pneg %p3297_p7 }
  0x5c   : > { %p3305_p3 = pnand %p3304_p1, %p3298_p9 }
  0x5e   : > { %3308 = shalt.err (!%p3305_p3)
}
  0x5f   : > { %2936 = dma.hbm_to_vmem [thread:$0]  (!%p3677_p6), %s4311_s8, 1024, %s480_s18, [#allocation12], %s4326_s10, %s4326_s10, %s4328_s5  }
  0x60   : > { %s3542_s11 = smov [#allocation7]   ;;  %s3543_s20 = smov [#allocation10]  }
  0x61   : > { %s437_s19 = sshll.u32 %s3542_s11, 4  ;;  %s463_s25 = sshll.u32 %s3543_s20, 4  ;;  %s438_s19 = int_to_ptr.vmem [resolvable:$true] %s437_s19  ;;  %s464_s25 = int_to_ptr.vmem [resolvable:$true] %s463_s25 }
  0x62   : > { %s4344_s3 = sld [smem:[#allocation25_spill]] }
  0x68   : > { %s3309_s26 = scalar_lea.hbm %s4344_s3, 16 }
  0x69   : > { %p3310_p1 = scmp.ne.s32.totalorder %s4344_s3, %s3309_s26  ;;  %p3316_p12 = scmp.lt.u32.totalorder %s3309_s26, %s4344_s3 }
  0x6b   : > { %p3312_p3 = pnand %p3310_p1, %p3693_p8 }
  0x6d   : > { %p3313_p11 = pneg %p3312_p3 }
  0x6f   : > { %p3318_p13 = pnand %p3316_p12, %p3313_p11 }
  0x71   : > { %3321 = shalt.err (!%p3318_p13)
}
  0x72   : > { %s3322_s18 = scalar_lea.vmem %s438_s19, 16  ;;  %s3329_s16 = scalar_lea.vmem %s438_s19, 32 }
  0x73   : > { %p3323_p0 = scmp.ne.s32.totalorder %s438_s19, %s3322_s18  ;;  %p3330_p7 = scmp.lt.s32.totalorder %s438_s19, %s438_s19 }
  0x74   : > { %p3331_p9 = scmp.lt.s32.totalorder %s3329_s16, %s3322_s18 }
  0x75   : > { %p3325_p2 = pnand %p3323_p0, %p3693_p8 }
  0x76   : > { %p3332_p4 = por %p3331_p9, %p3330_p7 }
  0x77   : > { %p3326_p5 = pneg %p3325_p2 }
  0x79   : > { %p3333_p10 = pnand %p3332_p4, %p3326_p5 }
  0x7b   : > { %3336 = shalt.err (!%p3333_p10)
}
  0x7c   : > { %2927 = dma.hbm_to_vmem [thread:$0]  (!%p3677_p6), %s4344_s3, 16, %s438_s19, [#allocation6]  }
  0x7d   : > { %s3337_s17 = scalar_lea.hbm %s4309_s6, 2048 }
  0x7e   : > { %p3338_p1 = scmp.ne.s32.totalorder %s4309_s6, %s3337_s17  ;;  %p3344_p12 = scmp.lt.u32.totalorder %s3337_s17, %s4309_s6 }
  0x80   : > { %p3340_p3 = pnand %p3338_p1, %p3693_p8 }
  0x82   : > { %p3341_p11 = pneg %p3340_p3 }
  0x84   : > { %p3346_p13 = pnand %p3344_p12, %p3341_p11 }
  0x86   : > { %3349 = shalt.err (!%p3346_p13)
}
  0x87   : > { %s3350_s18 = scalar_lea.vmem %s464_s25, 2048  ;;  %p3358_p7 = scmp.lt.s32.totalorder %s464_s25, %s464_s25 }
  0x88   : > { %p3351_p0 = scmp.ne.s32.totalorder %s464_s25, %s3350_s18  ;;  %p3359_p9 = scmp.lt.s32.totalorder %s3350_s18, %s3350_s18 }
  0x8a   : > { %p3353_p2 = pnand %p3351_p0, %p3693_p8  ;;  %p3360_p4 = por %p3359_p9, %p3358_p7 }
  0x8c   : > { %p3354_p5 = pneg %p3353_p2 }
  0x8e   : > { %p3361_p10 = pnand %p3360_p4, %p3354_p5 }
  0x90   : > { %3364 = shalt.err (!%p3361_p10)
}
  0x91   : > { %s4345_s19 = smov 8   ;;  %s4346_s16 = smov 128  }
  0x92   : > { %2933 = dma.hbm_to_vmem [thread:$0]  (!%p3677_p6), %s4309_s6, 2048, %s464_s25, [#allocation9], %s4346_s16, %s4346_s16, %s4345_s19  }
  0x93   : > { %s3544_s1 = smov [#allocation13]   ;;  %s3365_s26 = scalar_lea.hbm %s4315_s12, 4096 }
  0x94   : > { %s501_s20 = sshll.u32 %s3544_s1, 4  ;;  %p3366_p1 = scmp.ne.s32.totalorder %s4315_s12, %s3365_s26  ;;  %s502_s20 = int_to_ptr.vmem [resolvable:$true] %s501_s20 }
  0x95   : > { %p3372_p12 = scmp.lt.u32.totalorder %s3365_s26, %s4315_s12 }
  0x96   : > { %p3368_p3 = pnand %p3366_p1, %p3693_p8 }
  0x98   : > { %p3369_p11 = pneg %p3368_p3 }
  0x9a   : > { %p3374_p13 = pnand %p3372_p12, %p3369_p11 }
  0x9c   : > { %3377 = shalt.err (!%p3374_p13)
}
  0x9d   : > { %s3378_s25 = scalar_lea.vmem %s502_s20, 4096  ;;  %p3386_p7 = scmp.lt.s32.totalorder %s502_s20, %s502_s20 }
  0x9e   : > { %p3379_p0 = scmp.ne.s32.totalorder %s502_s20, %s3378_s25  ;;  %p3387_p9 = scmp.lt.s32.totalorder %s3378_s25, %s3378_s25 }
  0xa0   : > { %p3381_p2 = pnand %p3379_p0, %p3693_p8  ;;  %p3388_p4 = por %p3387_p9, %p3386_p7 }
  0xa2   : > { %p3382_p5 = pneg %p3381_p2 }
  0xa4   : > { %p3389_p10 = pnand %p3388_p4, %p3382_p5 }
  0xa6   : > { %3392 = shalt.err (!%p3389_p10)
}
  0xa7   : > { %s3545_s19 = smov 256   ;;  %s3546_s16 = smov 16  }
  0xa8   : > { %2939 = dma.hbm_to_vmem [thread:$0]  (!%p3677_p6), %s4315_s12, 4096, %s502_s20, [#allocation12], %s3545_s19, %s3545_s19, %s3546_s16  }
  0xa9   : > { %s3547_s11 = smov [#allocation14]   ;;  %s3393_s26 = scalar_lea.hbm %s4317_s14, 4096 }
  0xaa   : > { %s517_s1 = sshll.u32 %s3547_s11, 4  ;;  %p3394_p1 = scmp.ne.s32.totalorder %s4317_s14, %s3393_s26  ;;  %s518_s1 = int_to_ptr.vmem [resolvable:$true] %s517_s1 }
  0xab   : > { %p3400_p12 = scmp.lt.u32.totalorder %s3393_s26, %s4317_s14 }
  0xac   : > { %p3396_p3 = pnand %p3394_p1, %p3693_p8 }
  0xae   : > { %p3397_p11 = pneg %p3396_p3 }
  0xb0   : > { %p3402_p13 = pnand %p3400_p12, %p3397_p11 }
  0xb2   : > { %3405 = shalt.err (!%p3402_p13)
}
  0xb3   : > { %s3406_s20 = scalar_lea.vmem %s518_s1, 4096  ;;  %p3414_p7 = scmp.lt.s32.totalorder %s518_s1, %s518_s1 }
  0xb4   : > { %p3407_p0 = scmp.ne.s32.totalorder %s518_s1, %s3406_s20  ;;  %p3415_p9 = scmp.lt.s32.totalorder %s3406_s20, %s3406_s20 }
  0xb6   : > { %p3409_p2 = pnand %p3407_p0, %p3693_p8  ;;  %p3416_p4 = por %p3415_p9, %p3414_p7 }
  0xb8   : > { %p3410_p5 = pneg %p3409_p2 }
  0xba   : > { %p3417_p10 = pnand %p3416_p4, %p3410_p5 }
  0xbc   : > { %3420 = shalt.err (!%p3417_p10)
}
  0xbd   : > { %s4347_s19 = smov 64   ;;  %s2609_s0 = sadd.s32 4294967294, %s3533_s24  }
  0xbe   : > { %2942 = dma.hbm_to_vmem [thread:$0]  (!%p3677_p6), %s4317_s14, 4096, %s518_s1, [#allocation15], %s4347_s19, %s4347_s19, %s4328_s5  }
  0xbf   : > { %s3845_s29 = sadd.s32 1, %s3533_s24   ;;  %s43_s13 = sadd.s32 1, %s3529_s23 }
  0xc0   : > { %s40_s11 = ssub.s32 %s3533_s24, %s3845_s29  ;;  %p50_p8 = scmp.ne.s32.totalorder %s3529_s23, %s3525_s22 }
  0xc1   : > { %p41_p1 = scmp.eq.s32.totalorder %s40_s11, 0  ;;  %p51_p3 = scmp.eq.s32.totalorder %s3533_s24, 0 }
  0xc2   : > { %p56_p11 = scmp.ne.s32.totalorder %s3525_s22, %s3521_s21  ;;  %p395_p12 = scmp.eq.s32.totalorder %s3661_s27, 1 }
  0xc3   : > { %s3857_s17 = scalar_select %p41_p1, %s3529_s23, %s43_s13  }
  0xc4   : > { %p52_p13 = por %p51_p3, %p50_p8  ;;  %p4348_p0 = scmp.eq.s32.totalorder %s3661_s27, 0 }
  0xc5   : > { %p3865_p6 = por %p395_p12, %p50_p8  ;;  %p401_p5 = scmp.eq.s32.totalorder %s2609_s0, 1 }
  0xc6   : > { %p3861_p2 = por %p4348_p0, %p56_p11  ;;  %p2958_p7 = scmp.lt.s32.totalorder %s3533_s24, 2 }
  0xc7   : > { %s4350_s1 = scalar_select %p3865_p6, 1, 0 }
  0xc8   : > { %s534_s26 = sand.u32 1, %s3529_s23   ;;  %p3871_p9 = por %p401_p5, %p56_p11 }
  0xc9   : > { %s2619_s30 = sshll.u32 %s534_s26, 4  ;;  %s2745_s18 = sshll.u32 %s3533_s24, 8 }
  0xca   : > { %s4351_s9 = scalar_select %p3871_p9, 1, 0 }
  0xcb   : > { %s4352_s16 = sld [smem:[#allocation23_spill]]  ;;  %s538_s13 = scalar_lea.vmem [#allocation2], %s2619_s30 }
  0xcc   : > { %s546_s11 = sshll.u32 %s538_s13, 4  ;;  %p3881_p4 = pnand %p2958_p7, %p52_p13  ;;  %s3885_s11 = int_to_ptr.vmem [resolvable:$true] %s546_s11 }
  0xcd   : > { %s3887_s5 = scalar_lea.sflag [#allocation3], %s534_s26 }
  0xce   : > { %p3423_p8 = pneg %p3881_p4 }
  0xd1   : > { %s3879_s10 = scalar_lea.hbm %s4352_s16, %s2745_s18  ;;  %s3426_s25 = scalar_lea.hbm %s4352_s16, 512 }
  0xd2   : > { %s3421_s3 = scalar_lea.hbm %s3879_s10, 256  ;;  %p3427_p11 = scmp.lt.u32.totalorder %s3879_s10, %s4352_s16 }
  0xd3   : > { %p3422_p10 = scmp.ne.s32.totalorder %s3879_s10, %s3421_s3  ;;  %p3428_p12 = scmp.lt.u32.totalorder %s3426_s25, %s3421_s3 }
  0xd4   : > { %p3430_p0 = scmp.lt.u32.totalorder %s3421_s3, %s3879_s10 }
  0xd5   : > { %p3424_p1 = pnand %p3423_p8, %p3422_p10  ;;  %p3429_p13 = por %p3428_p12, %p3427_p11 }
  0xd7   : > { %p3425_p3 = pneg %p3424_p1  ;;  %p3431_p5 = por %p3430_p0, %p3429_p13 }
  0xd9   : > { %p3432_p7 = pnand %p3431_p5, %p3425_p3 }
  0xdb   : > { %3435 = shalt.err (!%p3432_p7)
}
  0xdc   : > { %s3436_s26 = scalar_lea.vmem %s3885_s11, 256  ;;  %s3548_s30 = smov [#allocation2]  }
  0xdd   : > { %p3437_p10 = scmp.ne.s32.totalorder %s3885_s11, %s3436_s26  ;;  %s3441_s18 = sshll.u32 %s3548_s30, 4  ;;  %s3442_s18 = int_to_ptr.vmem [resolvable:$false] %s3441_s18 }
  0xde   : > { %s3443_s20 = scalar_lea.vmem %s3442_s18, 512  ;;  %p3444_p6 = scmp.lt.s32.totalorder %s3885_s11, %s3442_s18 }
  0xdf   : > { %p3439_p1 = pnand %p3437_p10, %p3423_p8  ;;  %p3445_p11 = scmp.lt.s32.totalorder %s3443_s20, %s3436_s26 }
  0xe1   : > { %p3440_p9 = pneg %p3439_p1  ;;  %p3446_p12 = por %p3445_p11, %p3444_p6 }
  0xe3   : > { %p3447_p13 = pnand %p3446_p12, %p3440_p9 }
  0xe5   : > { %3450 = shalt.err (!%p3447_p13)
}
  0xe6   : > { %s4354_s3 = smov 4   ;;  %p4355_p8 = scmp.ne.s32.totalorder %s4340_s28, 0 }
  0xe7   : > { %2946 = dma.hbm_to_vmem [thread:$0]  (!%p3881_p4), %s3879_s10, 256, %s3885_s11, %s3887_s5, %s4347_s19, %s4347_s19, %s4354_s3  }
  0xe8   : > { %558 = sbr.rel (%p4355_p8) target bundleno = 2623 (0xa3f), region = 84  ;;  %s3921_s25 = sand.u32 (!%p4355_p8), 1, %s3525_s22  }
  0xe9   : > { %s2624_s13 = sshll.u32 (!%p4355_p8), %s3921_s25, 4  ;;  %s561_s26 = scalar_lea.sflag (!%p4355_p8), [#allocation3], %s3921_s25 }
  0xea   : > { %s564_s0 = scalar_lea.vmem (!%p4355_p8), [#allocation2], %s2624_s13 }
  0xef   : > { %3496 = dma.done.wait (%p3861_p2), %s561_s26, 256  }
  0xf0   : > { %3498 = vsyncadd (%p3861_p2), %s561_s26, 4294967040  ;;  %p4356_p6 = scmp.eq.s32.totalorder %s3661_s27, 0 }
  0xf2   : > { %3500 = dma.done.wait (%p4356_p6), [#allocation6], 272   ;;  %p4357_p9 = pmov %p4356_p6 }
  0xf3   : > { %p4358_p4 = pmov %p4356_p6 }
  0xf4   : > { %3502 = vsyncadd (%p4357_p9), [#allocation6], 4294967024 }
  0xf5   : > { %3504 = dma.done.wait (%p4358_p4), [#allocation9], 2560   ;;  %p4359_p3 = pmov %p4358_p4 }
  0xf7   : > { %3506 = vsyncadd (%p4359_p3), [#allocation9], 4294964736  ;;  %p4360_p0 = pmov %p4359_p3 }
  0xf9   : > { %3508 = dma.done.wait (%p4360_p0), [#allocation12], 5120   ;;  %p4361_p5 = pmov %p4360_p0 }
  0xfa   : > { %p4362_p2 = pmov %p4360_p0 }
  0xfb   : > { %3510 = vsyncadd (%p4361_p5), [#allocation12], 4294962176 }
  0xfc   : > { %3512 = dma.done.wait (%p4362_p2), [#allocation15], 4096   ;;  %p4363_p7 = pmov %p4360_p0 }
  0xfd   : > { %v2748_v0 = vld [vmem:[%s564_s0] sm:$0xff]   ;;  %v2755_v2 = vld [vmem:[%s564_s0 + $0x8] sm:$0xff]   ;;  %v3549_v41 = vmov 0   ;;  %vm1054_vm0 = vcmask 130048   ;;  %vm3551_vm1 = vmmov 0   ;;  %s4364_s30 = sld [smem:[#allocation26_spill]] }
  0xfe   : > { %3514 = vsyncadd (%p4363_p7), [#allocation15], 4294963200  ;;  %v652_v1 = vld [vmem:[#allocation5] sm:$0xff]  ;;  %v2749_v3 = vunpack.c.l.bf16 %v2748_v0  ;;  %v2753_v4 = vunpack.c.l.bf16 %v2755_v2  ;;  %v2750_v5 = vunpack.c.h.bf16 %v2748_v0  ;;  %v653_v6 = vld [vmem:[#allocation5 + $0x8] sm:$0xff]  ;;  %v2754_v7 = vunpack.c.h.bf16 %v2755_v2  ;;  %867 = vmatprep.mubr.bf16.mxu0 %v3549_v41  ;;  %s4365_s3 = sld [smem:[#allocation27_spill]]  ;;  %s4366_s28 = sld [smem:[#allocation28_spill]] }
  0xff   : > { %v3017_v12 = vld [vmem:[#allocation10 + $0x4] ss:$8 sps:$4 sm:$0xff]   ;;  %v3019_v13 = vld [vmem:[#allocation10] ss:$8 sps:$4 sm:$0xff]   ;;  %v3020_v14 = vld [vmem:[#allocation10 + $0x14] ss:$8 sps:$4 sm:$0xff]  }
 0x100   : > { %v654_v8 = vadd.f32 %v2749_v3, %v652_v1  ;;  %v656_v9 = vadd.f32 %v2753_v4, %v652_v1  ;;  %v655_v10 = vadd.f32 %v2750_v5, %v653_v6  ;;  %v657_v11 = vadd.f32 %v2754_v7, %v653_v6  ;;  %835 = vmatprep.subr.bf16.mxu0 %v3017_v12  ;;  %v3022_v31 = vld [vmem:[#allocation10 + $0x10] ss:$8 sps:$4 sm:$0xff]   ;;  %v3023_v32 = vld [vmem:[#allocation10 + $0x24] ss:$8 sps:$4 sm:$0xff]   ;;  %v3025_v33 = vld [vmem:[#allocation10 + $0x20] ss:$8 sps:$4 sm:$0xff]  }
 0x101   : > { %836 = vmatpush1.bf16.msra.mxu0 %v3019_v13  ;;  %v3026_v34 = vld [vmem:[#allocation10 + $0x34] ss:$8 sps:$4 sm:$0xff]   ;;  %v3028_v35 = vld [vmem:[#allocation10 + $0x30] ss:$8 sps:$4 sm:$0xff]   ;;  %v3029_v36 = vld [vmem:[#allocation10 + $0x44] ss:$8 sps:$4 sm:$0xff]  }
 0x102   : > { %658 = vadd.xlane.f32.xlu0 %v654_v8  ;;  %662 = vadd.xlane.f32.xlu1 %v656_v9  ;;  %v3031_v37 = vld [vmem:[#allocation10 + $0x40] ss:$8 sps:$4 sm:$0xff]   ;;  %v3032_v38 = vld [vmem:[#allocation10 + $0x54] ss:$8 sps:$4 sm:$0xff]   ;;  %v3034_v39 = vld [vmem:[#allocation10 + $0x50] ss:$8 sps:$4 sm:$0xff]  }
 0x103   : > { %837 = vmatprep.subr.bf16.mxu0 %v3020_v14  ;;  %v3035_v40 = vld [vmem:[#allocation10 + $0x64] ss:$8 sps:$4 sm:$0xff]   ;;  %v3037_v42 = vld [vmem:[#allocation10 + $0x60] ss:$8 sps:$4 sm:$0xff]   ;;  %v3038_v43 = vld [vmem:[#allocation10 + $0x74] ss:$8 sps:$4 sm:$0xff]   ;;  %v745_v14 = vlaneseq }
 0x104   : > { %v3040_v44 = vld [vmem:[#allocation10 + $0x70] ss:$8 sps:$4 sm:$0xff]   ;;  %v2633_v59 = vld [vmem:[%s4305_s2] ss:$0 sm:$0xff]  ;;  %v2634_v0 = vld [vmem:[#allocation7] ss:$0 sm:$0xff] }
 0x105   : > { %838 = vmatpush1.bf16.msra.mxu0 %v3022_v31  ;;  %v3041_v13 = vld [vmem:[#allocation8] sm:$0xff]   ;;  %vm1577_vm2 = vcmask 1041409   ;;  %vm1579_vm3 = vcmask 1042434   ;;  %vm1581_vm4 = vcmask 1043459   ;;  %vm1583_vm5 = vcmask 1044484   ;;  %s4367_s15 = sld [smem:[#allocation29_spill]] }
 0x106   : > { %660 = vadd.xlane.f32.xlu0 %v655_v10  ;;  %664 = vadd.xlane.f32.xlu1 %v657_v11  ;;  %vm1585_vm6 = vcmask 1045509   ;;  %vm1587_vm7 = vcmask 1046534   ;;  %vm1589_vm8 = vcmask 1047559   ;;  %s640_s26 = scalar_lea.vmem [#allocation16], %s2624_s13  ;;  %s2456_s13 = scalar_lea.sflag [#allocation4], %s3921_s25 }
 0x107   : > { %839 = vmatprep.subr.bf16.mxu0 %v3023_v32  ;;  %2841 = vmatprep.mubr.bf16.mxu1 %v3041_v13  ;;  %s2469_s0 = sshll.u32 %s640_s26, 4  ;;  %p4371_p1 = scmp.ne.s32.totalorder %s4350_s1, 0  ;;  %s4253_s0 = int_to_ptr.vmem [resolvable:$true] %s2469_s0 }
 0x108   : > { %s3451_s11 = scalar_lea.vmem %s4253_s0, 256 }
 0x109   : > { %840 = vmatpush1.bf16.msra.mxu0 %v3025_v33  ;;  %p3452_p10 = scmp.ne.s32.totalorder %s4253_s0, %s3451_s11 }
 0x10a   : > { %841 = vmatprep.subr.bf16.mxu0 %v3026_v34 }
 0x10b   : > { %p3453_p11 = pnand %p3452_p10, %p4371_p1 }
 0x10d   : > { %842 = vmatpush1.bf16.msra.mxu0 %v3028_v35  ;;  %p3454_p12 = pneg %p3453_p11 }
 0x10e   : > { %843 = vmatprep.subr.bf16.mxu0 %v3029_v36 }
 0x111   : > { %844 = vmatpush1.bf16.msra.mxu0 %v3031_v37  ;;  %v3042_v37 = vld [vmem:[#allocation8 + $0x8] sm:$0xff]  }
 0x112   : > { %845 = vmatprep.subr.bf16.mxu0 %v3032_v38 }
 0x115   : > { %846 = vmatpush1.bf16.msra.mxu0 %v3034_v39 }
 0x116   : > { %847 = vmatprep.subr.bf16.mxu0 %v3035_v40 }
 0x119   : > { %848 = vmatpush1.bf16.msra.mxu0 %v3037_v42 }
 0x11a   : > { %849 = vmatprep.subr.bf16.mxu0 %v3038_v43  ;;  %v3043_v43 = vld [vmem:[#allocation8 + $0x10] sm:$0xff]  }
 0x11d   : > { %850 = vmatpush1.bf16.msra.mxu0 %v3040_v44  ;;  %v3044_v44 = vld [vmem:[#allocation8 + $0x18] sm:$0xff]  }
 0x18f   : > { %v659_v15 = vpop.xlane.xlu0 %658  ;;  %v663_v16 = vpop.xlane.xlu1 %662 }
 0x190   : > { %v667_v17 = vmul.f32 0.0078125, %v659_v15  ;;  %v669_v18 = vmul.f32 0.0078125, %v663_v16  ;;  %v3962_v15 = vshrl.u32 %v745_v14, 7 }
 0x192   : > { %v671_v19 = vsub.f32 %v654_v8, %v667_v17  ;;  %v3947_v20 = vsub.f32 %v656_v9, %v669_v18  ;;  %v747_v16 = vsub.s32 0, %v3962_v15  ;;  %v743_v17 = vld [vmem:[%s4310_s7] sm:$0x3]  ;;  %v751_v18 = vsub.s32 1, %v3962_v15 }
 0x193   : > { %v661_v21 = vpop.xlane.xlu0 %660  ;;  %v665_v22 = vpop.xlane.xlu1 %664 }
 0x194   : > { %v668_v23 = vmul.f32 0.0078125, %v661_v21  ;;  %v675_v24 = vmul.f32 %v671_v19, %v671_v19  ;;  %v670_v25 = vmul.f32 0.0078125, %v665_v22  ;;  %v677_v28 = vmul.f32 %v3947_v20, %v3947_v20 }
 0x195   : > { %v752_v21 = vrot.slane %v743_v17, %v751_v18 }
 0x196   : > { %v672_v26 = vsub.f32 %v655_v10, %v668_v23  ;;  %679 = vadd.xlane.f32.xlu0 %v675_v24  ;;  %v3949_v27 = vsub.f32 %v657_v11, %v670_v25 }
 0x198   : > { %v676_v29 = vmul.f32 %v672_v26, %v672_v26  ;;  %v678_v30 = vmul.f32 %v3949_v27, %v3949_v27 }
 0x19a   : > { %683 = vadd.xlane.f32.xlu0 %v677_v28  ;;  %681 = vadd.xlane.f32.xlu1 %v676_v29 }
 0x19e   : > { %685 = vadd.xlane.f32.xlu1 %v678_v30 }
 0x223   : > { %v680_v45 = vpop.xlane.xlu0 %679 }
 0x224   : > { %v687_v46 = vmul.f32 0.0078125, %v680_v45 }
 0x226   : > { %v691_v47 = vadd.f32 1e-06, %v687_v46 }
 0x227   : > { %v682_v48 = vpop.xlane.xlu1 %681  ;;  %v684_v49 = vpop.xlane.xlu0 %683 }
 0x228   : > { %3133 = vrsqrt.f32 %v691_v47  ;;  %v688_v50 = vmul.f32 0.0078125, %v682_v48  ;;  %v689_v51 = vmul.f32 0.0078125, %v684_v49 }
 0x22a   : > { %v692_v52 = vadd.f32 1e-06, %v688_v50  ;;  %v693_v53 = vadd.f32 1e-06, %v689_v51 }
 0x22b   : > { %v686_v54 = vpop.xlane.xlu1 %685 }
 0x22c   : > { %3135 = vrsqrt.f32 %v692_v52  ;;  %v690_v55 = vmul.f32 0.0078125, %v686_v54 }
 0x22d   : > { %3137 = vrsqrt.f32 %v693_v53 }
 0x22e   : > { %v694_v56 = vadd.f32 1e-06, %v690_v55 }
 0x230   : > { %3139 = vrsqrt.f32 %v694_v56 }
 0x232   : > { %v3134_v57 = vpop.eup %3133 }
 0x233   : > { %v699_v58 = vmul.f32 %v3134_v57, %v671_v19  ;;  %v748_v19 = vrot.slane %v743_v17, %v747_v16 }
 0x235   : > { %v710_v62 = vmul.f32 %v2633_v59, %v699_v58 }
 0x236   : > { %v3136_v60 = vpop.eup %3135 }
 0x237   : > { %v700_v61 = vmul.f32 %v3136_v60, %v672_v26  ;;  %v3138_v63 = vpop.eup %3137  ;;  %v721_v3 = vadd.f32 %v2634_v0, %v710_v62 }
 0x238   : > { %v701_v5 = vmul.f32 %v3138_v63, %v3947_v20 }
 0x239   : > { %v711_v1 = vmul.f32 %v2633_v59, %v700_v61 }
 0x23a   : > { %v3140_v2 = vpop.eup %3139  ;;  %v712_v9 = vmul.f32 %v2633_v59, %v701_v5 }
 0x23b   : > { %v722_v4 = vadd.f32 %v2634_v0, %v711_v1  ;;  %v702_v6 = vmul.f32 %v3140_v2, %v3949_v27 }
 0x23c   : > { %v723_v11 = vadd.f32 %v2634_v0, %v712_v9 }
 0x23d   : > { %v725_v7 = vpack.c.bf16 %v722_v4, %v721_v3  ;;  %v713_v8 = vmul.f32 %v2633_v59, %v702_v6 }
 0x23f   : > { %868 = vmatmul.mubr.bf16.vlgmr.msra.gmra.mrb[0].mxu0 %v725_v7  ;;  %v724_v10 = vadd.f32 %v2634_v0, %v713_v8 }
 0x240   : > { %877 = vmatprep.mubr.bf16.mxu0 %v3549_v41 }
 0x241   : > { %v726_v12 = vpack.c.bf16 %v724_v10, %v723_v11 }
 0x247   : > { %878 = vmatmul.mubr.bf16.gmra.mrb[4].mxu0 %v726_v12 }
 0x248   : > { %2831 = vmatprep.mubr.bf16.mxu0 %v3041_v13 }
 0x312   : > { %v869_v20 = vpop.f32.mrb[0].mxu0 }
 0x313   : > { %v871_v22 = vpop.f32.mrb[1].mxu0  ;;  %v870_v24 = vadd.f32 %v869_v20, %v748_v19 }
 0x314   : > { %v873_v23 = vpop.f32.mrb[2].mxu0  ;;  %v872_v27 = vadd.f32 %v871_v22, %v752_v21 }
 0x315   : > { %v874_v25 = vadd.f32 %v873_v23, %v748_v19  ;;  %v875_v26 = vpop.f32.mrb[3].mxu0 }
 0x316   : > { %v876_v28 = vadd.f32 %v875_v26, %v752_v21 }
 0x317   : > { %v888_v29 = vpack.c.bf16 %v874_v25, %v870_v24 }
 0x318   : > { %v890_v30 = vpack.c.bf16 %v876_v28, %v872_v27 }
 0x319   : > { %2829 = vmatprep.subr.bf16.mxu0 %v888_v29 }
 0x31a   : > { %v879_v31 = vpop.f32.mrb[4].mxu0  ;;  %2830 = vmatpush3.bf16.xpose.msra.mxu0 %v888_v29 }
 0x31b   : > { %v881_v32 = vpop.f32.mrb[5].mxu0  ;;  %v880_v34 = vadd.f32 %v879_v31, %v748_v19 }
 0x31c   : > { %v883_v33 = vpop.f32.mrb[6].mxu0  ;;  %v882_v38 = vadd.f32 %v881_v32, %v752_v21 }
 0x31d   : > { %v884_v35 = vadd.f32 %v883_v33, %v748_v19  ;;  %v885_v36 = vpop.f32.mrb[7].mxu0 }
 0x31e   : > { %v886_v39 = vadd.f32 %v885_v36, %v752_v21 }
 0x31f   : > { %v889_v40 = vpack.c.bf16 %v884_v35, %v880_v34 }
 0x320   : > { %v891_v42 = vpack.c.bf16 %v886_v39, %v882_v38 }
 0x321   : > { %2832 = vmatmul.mubr.bf16.vlgmr.msra.gmra.mrb[8].mxu0 %v3042_v37  ;;  %2839 = vmatprep.subr.bf16.mxu1 %v889_v40 }
 0x322   : > { %2840 = vmatpush3.bf16.xpose.msra.mxu1 %v889_v40  ;;  %2859 = vmatprep.subr.bf16.mxu0 %v891_v42 }
 0x323   : > { %2849 = vmatprep.subr.bf16.mxu1 %v890_v30  ;;  %2860 = vmatpush3.bf16.msra.mxu0 %v891_v42 }
 0x324   : > { %2835 = vmatprep.mubr.bf16.mxu0 %v3043_v43 }
 0x329   : > { %2842 = vmatmul.mubr.bf16.vlgmr.msra.gmra.mrb[0].mxu1 %v3042_v37  ;;  %2836 = vmatmul.mubr.bf16.gmra.mrb[12].mxu0 %v3044_v44 }
 0x32a   : > { %2850 = vmatpush3.bf16.msra.mxu1 %v890_v30  ;;  %2845 = vmatprep.mubr.bf16.mxu1 %v3043_v43 }
 0x331   : > { %2846 = vmatmul.mubr.bf16.gmra.mrb[4].mxu1 %v3044_v44 }
 0x3f4   : > { %v2833_v45 = vpop.f32.mrb[8].mxu0 }
 0x3f5   : > { %v958_v46 = vpop.f32.mrb[9].mxu0  ;;  %v1061_v47 = vsel %vm1054_vm0, %v2833_v45, -inf }
 0x3f6   : > { %1062 = vmax.xlane.f32.xlu0 %v1061_v47  ;;  %v2834_v48 = vpop.f32.mrb[10].mxu0  ;;  %v1055_v51 = vsel %vm1054_vm0, %v958_v46, -inf }
 0x3f7   : > { %v1064_v49 = vsel %vm1054_vm0, %v2834_v48, -inf  ;;  %v961_v50 = vpop.f32.mrb[11].mxu0 }
 0x3f8   : > { %1065 = vmax.xlane.f32.xlu1 %v1064_v49  ;;  %v1058_v52 = vsel %vm1054_vm0, %v961_v50, -inf }
 0x3fa   : > { %1056 = vmax.xlane.f32.xlu0 %v1055_v51 }
 0x3fc   : > { %1059 = vmax.xlane.f32.xlu1 %v1058_v52  ;;  %v2843_v53 = vpop.f32.mrb[0].mxu1  ;;  %v3977_v54 = vpop.f32.mrb[12].mxu0 }
 0x3fd   : > { %v3979_v55 = vpop.f32.mrb[1].mxu1  ;;  %v1085_v56 = vsel %vm1054_vm0, %v2843_v53, -inf  ;;  %v3982_v57 = vpop.f32.mrb[13].mxu0  ;;  %v1073_v61 = vsel %vm1054_vm0, %v3977_v54, -inf }
 0x3fe   : > { %1086 = vmax.xlane.f32.xlu0 %v1085_v56  ;;  %v2844_v58 = vpop.f32.mrb[2].mxu1  ;;  %v3984_v59 = vpop.f32.mrb[14].mxu0  ;;  %v1079_v2 = vsel %vm1054_vm0, %v3979_v55, -inf  ;;  %v1067_v7 = vsel %vm1054_vm0, %v3982_v57, -inf }
 0x3ff   : > { %v1088_v60 = vsel %vm1054_vm0, %v2844_v58, -inf  ;;  %v3989_v62 = vpop.f32.mrb[3].mxu1  ;;  %v3991_v63 = vpop.f32.mrb[15].mxu0  ;;  %v1076_v0 = vsel %vm1054_vm0, %v3984_v59, -inf }
 0x400   : > { %1089 = vmax.xlane.f32.xlu1 %v1088_v60  ;;  %v1082_v5 = vsel %vm1054_vm0, %v3989_v62, -inf  ;;  %v1070_v8 = vsel %vm1054_vm0, %v3991_v63, -inf }
 0x402   : > { %1074 = vmax.xlane.f32.xlu0 %v1073_v61 }
 0x404   : > { %1077 = vmax.xlane.f32.xlu1 %v1076_v0  ;;  %v3995_v1 = vpop.f32.mrb[4].mxu1 }
 0x405   : > { %v3999_v3 = vpop.f32.mrb[5].mxu1  ;;  %v1097_v11 = vsel %vm1054_vm0, %v3995_v1, -inf }
 0x406   : > { %1080 = vmax.xlane.f32.xlu0 %v1079_v2  ;;  %v4001_v4 = vpop.f32.mrb[6].mxu1  ;;  %v1091_v9 = vsel %vm1054_vm0, %v3999_v3, -inf }
 0x407   : > { %v4005_v6 = vpop.f32.mrb[7].mxu1  ;;  %v1100_v12 = vsel %vm1054_vm0, %v4001_v4, -inf }
 0x408   : > { %1083 = vmax.xlane.f32.xlu1 %v1082_v5  ;;  %v1094_v10 = vsel %vm1054_vm0, %v4005_v6, -inf }
 0x40a   : > { %1068 = vmax.xlane.f32.xlu0 %v1067_v7 }
 0x40c   : > { %1071 = vmax.xlane.f32.xlu1 %v1070_v8 }
 0x40e   : > { %1092 = vmax.xlane.f32.xlu0 %v1091_v9 }
 0x410   : > { %1095 = vmax.xlane.f32.xlu1 %v1094_v10 }
 0x412   : > { %1098 = vmax.xlane.f32.xlu0 %v1097_v11 }
 0x414   : > { %1101 = vmax.xlane.f32.xlu1 %v1100_v12 }
 0x483   : > { %v1063_v13 = vpop.xlane.xlu0 %1062 }
 0x484   : > { %v1105_v14 = vsub.f32 %v2833_v45, %v1063_v13 }
 0x485   : > { %v1066_v17 = vpop.xlane.xlu1 %1065 }
 0x486   : > { %v1123_v19 = vmul.f32 1.442695, %v1105_v14  ;;  %v1106_v20 = vsub.f32 %v2834_v48, %v1066_v17 }
 0x487   : > { %v1057_v21 = vpop.xlane.xlu0 %1056 }
 0x488   : > { %3141 = vpow2.f32 %v1123_v19  ;;  %v1125_v22 = vmul.f32 1.442695, %v1106_v20  ;;  %v1103_v23 = vsub.f32 %v958_v46, %v1057_v21 }
 0x489   : > { %v1060_v24 = vpop.xlane.xlu1 %1059 }
 0x48a   : > { %3143 = vpow2.f32 %v1125_v22  ;;  %v1119_v25 = vmul.f32 1.442695, %v1103_v23  ;;  %v1104_v26 = vsub.f32 %v961_v50, %v1060_v24 }
 0x48b   : > { %v1087_v27 = vpop.xlane.xlu0 %1086 }
 0x48c   : > { %3145 = vpow2.f32 %v1119_v25  ;;  %v1121_v28 = vmul.f32 1.442695, %v1104_v26  ;;  %v1113_v29 = vsub.f32 %v2843_v53, %v1087_v27 }
 0x48d   : > { %v1090_v30 = vpop.xlane.xlu1 %1089 }
 0x48e   : > { %3147 = vpow2.f32 %v1121_v28  ;;  %v1139_v31 = vmul.f32 1.442695, %v1113_v29  ;;  %v1114_v32 = vsub.f32 %v2844_v58, %v1090_v30 }
 0x48f   : > { %v1075_v33 = vpop.xlane.xlu0 %1074 }
 0x490   : > { %3149 = vpow2.f32 %v1139_v31  ;;  %v1141_v34 = vmul.f32 1.442695, %v1114_v32  ;;  %v1109_v35 = vsub.f32 %v3977_v54, %v1075_v33 }
 0x491   : > { %v1078_v36 = vpop.xlane.xlu1 %1077 }
 0x492   : > { %v4020_v37 = vpop.eup %3141  ;;  %3151 = vpow2.f32 %v1141_v34  ;;  %v1131_v38 = vmul.f32 1.442695, %v1109_v35  ;;  %v1110_v39 = vsub.f32 %v3984_v59, %v1078_v36 }
 0x493   : > { %v1081_v40 = vpop.xlane.xlu0 %1080  ;;  %v1157_v42 = vsel %vm1054_vm0, %v4020_v37, 0.0 }
 0x494   : > { %v4025_v43 = vpop.eup %3143  ;;  %3153 = vpow2.f32 %v1131_v38  ;;  %v1133_v44 = vmul.f32 1.442695, %v1110_v39  ;;  %v1111_v45 = vsub.f32 %v3979_v55, %v1081_v40  ;;  %1158 = vadd.xlane.f32.xlu0 %v1157_v42 }
 0x495   : > { %v1084_v46 = vpop.xlane.xlu1 %1083  ;;  %v1160_v47 = vsel %vm1054_vm0, %v4025_v43, 0.0 }
 0x496   : > { %v4030_v48 = vpop.eup %3145  ;;  %3155 = vpow2.f32 %v1133_v44  ;;  %v1135_v49 = vmul.f32 1.442695, %v1111_v45  ;;  %v1112_v50 = vsub.f32 %v3989_v62, %v1084_v46  ;;  %1161 = vadd.xlane.f32.xlu1 %v1160_v47 }
 0x497   : > { %v1069_v51 = vpop.xlane.xlu0 %1068  ;;  %v1151_v52 = vsel %vm1054_vm0, %v4030_v48, 0.0 }
 0x498   : > { %v4035_v53 = vpop.eup %3147  ;;  %3157 = vpow2.f32 %v1135_v49  ;;  %v1137_v54 = vmul.f32 1.442695, %v1112_v50  ;;  %v1107_v55 = vsub.f32 %v3982_v57, %v1069_v51  ;;  %1152 = vadd.xlane.f32.xlu0 %v1151_v52 }
 0x499   : > { %v1072_v56 = vpop.xlane.xlu1 %1071  ;;  %v1154_v58 = vsel %vm1054_vm0, %v4035_v53, 0.0 }
 0x49a   : > { %v4040_v59 = vpop.eup %3149  ;;  %3159 = vpow2.f32 %v1137_v54  ;;  %v1127_v60 = vmul.f32 1.442695, %v1107_v55  ;;  %v1108_v61 = vsub.f32 %v3991_v63, %v1072_v56  ;;  %1155 = vadd.xlane.f32.xlu1 %v1154_v58 }
 0x49b   : > { %v1093_v62 = vpop.xlane.xlu0 %1092  ;;  %v1181_v0 = vsel %vm1054_vm0, %v4040_v59, 0.0 }
 0x49c   : > { %v4045_v2 = vpop.eup %3151  ;;  %3161 = vpow2.f32 %v1127_v60  ;;  %v1129_v57 = vmul.f32 1.442695, %v1108_v61  ;;  %v1115_v5 = vsub.f32 %v3999_v3, %v1093_v62  ;;  %1182 = vadd.xlane.f32.xlu0 %v1181_v0 }
 0x49d   : > { %v1096_v7 = vpop.xlane.xlu1 %1095  ;;  %v1184_v8 = vsel %vm1054_vm0, %v4045_v2, 0.0 }
 0x49e   : > { %v4050_v9 = vpop.eup %3153  ;;  %3163 = vpow2.f32 %v1129_v57  ;;  %v1143_v63 = vmul.f32 1.442695, %v1115_v5  ;;  %v1116_v10 = vsub.f32 %v4005_v6, %v1096_v7  ;;  %1185 = vadd.xlane.f32.xlu1 %v1184_v8 }
 0x49f   : > { %v1099_v11 = vpop.xlane.xlu0 %1098  ;;  %v1169_v12 = vsel %vm1054_vm0, %v4050_v9, 0.0 }
 0x4a0   : > { %v4055_v13 = vpop.eup %3155  ;;  %3165 = vpow2.f32 %v1143_v63  ;;  %v1145_v3 = vmul.f32 1.442695, %v1116_v10  ;;  %v1117_v14 = vsub.f32 %v3995_v1, %v1099_v11  ;;  %1170 = vadd.xlane.f32.xlu0 %v1169_v12 }
 0x4a1   : > { %v1102_v17 = vpop.xlane.xlu1 %1101  ;;  %v1172_v19 = vsel %vm1054_vm0, %v4055_v13, 0.0 }
 0x4a2   : > { %v4060_v20 = vpop.eup %3157  ;;  %3167 = vpow2.f32 %v1145_v3  ;;  %v1147_v6 = vmul.f32 1.442695, %v1117_v14  ;;  %v1118_v21 = vsub.f32 %v4001_v4, %v1102_v17  ;;  %1173 = vadd.xlane.f32.xlu1 %v1172_v19 }
 0x4a3   : > { %v1175_v22 = vsel %vm1054_vm0, %v4060_v20, 0.0 }
 0x4a4   : > { %v4065_v23 = vpop.eup %3159  ;;  %3169 = vpow2.f32 %v1147_v6  ;;  %v1149_v24 = vmul.f32 1.442695, %v1118_v21  ;;  %1176 = vadd.xlane.f32.xlu0 %v1175_v22 }
 0x4a5   : > { %v1178_v1 = vsel %vm1054_vm0, %v4065_v23, 0.0 }
 0x4a6   : > { %v4069_v25 = vpop.eup %3161  ;;  %3171 = vpow2.f32 %v1149_v24  ;;  %1179 = vadd.xlane.f32.xlu1 %v1178_v1 }
 0x4a7   : > { %v1163_v26 = vsel %vm1054_vm0, %v4069_v25, 0.0 }
 0x4a8   : > { %v4073_v4 = vpop.eup %3163  ;;  %1164 = vadd.xlane.f32.xlu0 %v1163_v26 }
 0x4a9   : > { %v1166_v27 = vsel %vm1054_vm0, %v4073_v4, 0.0 }
 0x4aa   : > { %v4077_v28 = vpop.eup %3165  ;;  %1167 = vadd.xlane.f32.xlu1 %v1166_v27 }
 0x4ab   : > { %v1187_v29 = vsel %vm1054_vm0, %v4077_v28, 0.0 }
 0x4ac   : > { %v4081_v30 = vpop.eup %3167  ;;  %1188 = vadd.xlane.f32.xlu0 %v1187_v29 }
 0x4ad   : > { %v1190_v31 = vsel %vm1054_vm0, %v4081_v30, 0.0 }
 0x4ae   : > { %v4085_v32 = vpop.eup %3169  ;;  %1191 = vadd.xlane.f32.xlu1 %v1190_v31 }
 0x4af   : > { %v1193_v33 = vsel %vm1054_vm0, %v4085_v32, 0.0 }
 0x4b0   : > { %v4089_v34 = vpop.eup %3171  ;;  %1194 = vadd.xlane.f32.xlu0 %v1193_v33 }
 0x4b1   : > { %v1196_v35 = vsel %vm1054_vm0, %v4089_v34, 0.0 }
 0x4b2   : > { %1197 = vadd.xlane.f32.xlu1 %v1196_v35 }
 0x521   : > { %v1159_v36 = vpop.xlane.xlu0 %1158 }
 0x523   : > { %v1162_v38 = vpop.xlane.xlu1 %1161 }
 0x524   : > { %3173 = vrcp.f32 %v1162_v38  ;;  %v3047_v38 = vld [vmem:[#allocation11 + $0x10] sm:$0xff]  }
 0x525   : > { %v1153_v39 = vpop.xlane.xlu0 %1152 }
 0x526   : > { %3175 = vrcp.f32 %v1153_v39  ;;  %v3048_v39 = vld [vmem:[#allocation11 + $0x18] sm:$0xff]  }
 0x527   : > { %3177 = vrcp.f32 %v1159_v36  ;;  %v1156_v40 = vpop.xlane.xlu1 %1155  ;;  %v3550_v36 = vmov 0.0  }
 0x528   : > { %3179 = vrcp.f32 %v1156_v40  ;;  %2869 = vmatprep.subr.bf16.mxu1 %v3550_v36  ;;  %v3051_v40 = vld [vmem:[#allocation11 + $0x30] sm:$0xff]  }
 0x529   : > { %v1183_v42 = vpop.xlane.xlu0 %1182 }
 0x52b   : > { %v1186_v44 = vpop.xlane.xlu1 %1185 }
 0x52c   : > { %3181 = vrcp.f32 %v1186_v44  ;;  %v4121_v44 = vld [vmem:[%s4364_s30] sm:$0xff]  ;;  %s4368_s30 = sld [smem:[#allocation30_spill]] }
 0x52d   : > { %v1171_v45 = vpop.xlane.xlu0 %1170 }
 0x52e   : > { %v3174_v46 = vpop.eup %3173 }
 0x52f   : > { %v1174_v47 = vpop.xlane.xlu1 %1173  ;;  %v1218_v54 = vmul.f32 %v3174_v46, %v4025_v43 }
 0x530   : > { %v3176_v49 = vpop.eup %3175 }
 0x531   : > { %v3178_v50 = vpop.eup %3177  ;;  %v1177_v51 = vpop.xlane.xlu0 %1176  ;;  %v1215_v56 = vmul.f32 %v3176_v49, %v4030_v48 }
 0x532   : > { %v3180_v52 = vpop.eup %3179  ;;  %3183 = vrcp.f32 %v1177_v51  ;;  %v1217_v60 = vmul.f32 %v3178_v50, %v4020_v37 }
 0x533   : > { %3185 = vrcp.f32 %v1183_v42  ;;  %v1180_v55 = vpop.xlane.xlu1 %1179  ;;  %v1216_v58 = vmul.f32 %v3180_v52, %v4035_v53  ;;  %v3052_v42 = vld [vmem:[#allocation11 + $0x38] sm:$0xff]  }
 0x534   : > { %3187 = vrcp.f32 %v1180_v55  ;;  %v1232_v0 = vpack.c.bf16 %v1218_v54, %v1217_v60 }
 0x535   : > { %3189 = vrcp.f32 %v1174_v47  ;;  %v1165_v61 = vpop.xlane.xlu0 %1164  ;;  %v1231_v62 = vpack.c.bf16 %v1216_v58, %v1215_v56 }
 0x536   : > { %3191 = vrcp.f32 %v1165_v61  ;;  %v3182_v48 = vpop.eup %3181 }
 0x537   : > { %3193 = vrcp.f32 %v1171_v45  ;;  %2851 = vmatprep.mubr.msk.bf16.mxu1 %vm1054_vm0, %v1231_v62  ;;  %v1168_v57 = vpop.xlane.xlu1 %1167  ;;  %v1226_v63 = vmul.f32 %v3182_v48, %v4045_v2 }
 0x538   : > { %3195 = vrcp.f32 %v1168_v57  ;;  %2852 = vmatmul.mubr.msk.bf16.vlgmr.msra.gmra.mrb[8].mxu1 %vm1054_vm0, %v1232_v0 }
 0x539   : > { %v1189_v43 = vpop.xlane.xlu0 %1188 }
 0x53a   : > { %3197 = vrcp.f32 %v1189_v43 }
 0x53b   : > { %v1192_v5 = vpop.xlane.xlu1 %1191 }
 0x53c   : > { %v3184_v53 = vpop.eup %3183  ;;  %3199 = vrcp.f32 %v1192_v5 }
 0x53d   : > { %v3186_v37 = vpop.eup %3185  ;;  %v1195_v7 = vpop.xlane.xlu0 %1194  ;;  %v1223_v12 = vmul.f32 %v3184_v53, %v4060_v20 }
 0x53e   : > { %v3188_v8 = vpop.eup %3187  ;;  %3201 = vrcp.f32 %v1195_v7  ;;  %v1225_v17 = vmul.f32 %v3186_v37, %v4040_v59 }
 0x53f   : > { %v3190_v10 = vpop.eup %3189  ;;  %v1198_v11 = vpop.xlane.xlu1 %1197  ;;  %v1224_v3 = vmul.f32 %v3188_v8, %v4065_v23 }
 0x540   : > { %v3192_v14 = vpop.eup %3191  ;;  %3203 = vrcp.f32 %v1198_v11  ;;  %v1236_v22 = vpack.c.bf16 %v1226_v63, %v1225_v17  ;;  %v1222_v24 = vmul.f32 %v3190_v10, %v4055_v13 }
 0x541   : > { %v3194_v19 = vpop.eup %3193  ;;  %v1235_v6 = vpack.c.bf16 %v1224_v3, %v1223_v12  ;;  %v1219_v2 = vmul.f32 %v3192_v14, %v4069_v25 }
 0x542   : > { %v3196_v21 = vpop.eup %3195  ;;  %v1221_v20 = vmul.f32 %v3194_v19, %v4050_v9 }
 0x543   : > { %2861 = vmatprep.mubr.msk.bf16.mxu0 %vm1054_vm0, %v1235_v6  ;;  %v1220_v1 = vmul.f32 %v3196_v21, %v4073_v4 }
 0x544   : > { %v3198_v26 = vpop.eup %3197  ;;  %2862 = vmatmul.mubr.msk.bf16.vlgmr.msra.gmra.mrb[16].mxu0 %vm1054_vm0, %v1236_v22  ;;  %v1234_v27 = vpack.c.bf16 %v1222_v24, %v1221_v20 }
 0x545   : > { %v1233_v23 = vpack.c.bf16 %v1220_v1, %v1219_v2  ;;  %v1227_v29 = vmul.f32 %v3198_v26, %v4077_v28  ;;  %v3045_v28 = vld [vmem:[#allocation11] sm:$0xff]  }
 0x546   : > { %v3200_v59 = vpop.eup %3199  ;;  %2870 = vmatpush3.bf16.msra.mxu1 %v3045_v28 }
 0x547   : > { %2855 = vmatprep.mubr.msk.bf16.mxu1 %vm1054_vm0, %v1233_v23  ;;  %v1228_v13 = vmul.f32 %v3200_v59, %v4081_v30  ;;  %2871 = vmatprep.subr.bf16.mxu1 %v3550_v36  ;;  %v3046_v30 = vld [vmem:[#allocation11 + $0x8] sm:$0xff]  }
 0x548   : > { %v3202_v31 = vpop.eup %3201  ;;  %2856 = vmatmul.mubr.msk.bf16.gmra.mrb[12].mxu1 %vm1054_vm0, %v1234_v27 }
 0x549   : > { %v1237_v25 = vpack.c.bf16 %v1228_v13, %v1227_v29  ;;  %v1229_v4 = vmul.f32 %v3202_v31, %v4085_v32  ;;  %v3049_v32 = vld [vmem:[#allocation11 + $0x20] sm:$0xff]   ;;  %2885 = vmatprep.mubr.msk.bf16.mxu1 %vm3551_vm1, %v3550_v36 }
 0x54a   : > { %v3204_v33 = vpop.eup %3203  ;;  %2872 = vmatpush3.bf16.msra.mxu1 %v3046_v30 }
 0x54b   : > { %2865 = vmatprep.mubr.msk.bf16.mxu0 %vm1054_vm0, %v1237_v25  ;;  %v1230_v9 = vmul.f32 %v3204_v33, %v4089_v34  ;;  %2873 = vmatprep.subr.bf16.mxu1 %v3550_v36  ;;  %v3050_v34 = vld [vmem:[#allocation11 + $0x28] sm:$0xff]  }
 0x54d   : > { %v1238_v35 = vpack.c.bf16 %v1230_v9, %v1229_v4 }
 0x54e   : > { %2874 = vmatpush3.bf16.msra.mxu1 %v3047_v38 }
 0x54f   : > { %2866 = vmatmul.mubr.msk.bf16.gmra.mrb[20].mxu0 %vm1054_vm0, %v1238_v35  ;;  %2875 = vmatprep.subr.bf16.mxu1 %v3550_v36 }
 0x550   : > { %1976 = vmatprep.mubr.bf16.mxu0 %v3549_v41 }
 0x552   : > { %2876 = vmatpush3.bf16.msra.mxu1 %v3048_v39 }
 0x553   : > { %2877 = vmatprep.subr.bf16.mxu1 %v3550_v36 }
 0x556   : > { %2878 = vmatpush3.bf16.msra.mxu1 %v3049_v32 }
 0x557   : > { %2879 = vmatprep.subr.bf16.mxu1 %v3550_v36 }
 0x55a   : > { %2880 = vmatpush3.bf16.msra.mxu1 %v3050_v34 }
 0x55b   : > { %2881 = vmatprep.subr.bf16.mxu1 %v3550_v36 }
 0x55e   : > { %2882 = vmatpush3.bf16.msra.mxu1 %v3051_v40 }
 0x55f   : > { %2883 = vmatprep.subr.bf16.mxu1 %v3550_v36 }
 0x562   : > { %2884 = vmatpush3.bf16.msra.mxu1 %v3052_v42 }
 0x60b   : > { %v2853_v45 = vpop.f32.mrb[8].mxu1 }
 0x60c   : > { %v1396_v46 = vmul.f32 %v2853_v45, %v4121_v44  ;;  %v1285_v47 = vpop.f32.mrb[9].mxu1 }
 0x60d   : > { %v1394_v49 = vmul.f32 %v4121_v44, %v1285_v47  ;;  %v2854_v50 = vpop.f32.mrb[10].mxu1 }
 0x60e   : > { %v1422_v51 = vrot.slane %v1396_v46, 4  ;;  %v1397_v52 = vmul.f32 %v2854_v50, %v4121_v44  ;;  %v1288_v54 = vpop.f32.mrb[11].mxu1 }
 0x60f   : > { %v1410_v55 = vrot.slane %v1394_v49, 4  ;;  %v1395_v56 = vmul.f32 %v4121_v44, %v1288_v54 }
 0x610   : > { %v1423_v58 = vadd.f32 %v1422_v51, %v1396_v46  ;;  %v1428_v60 = vrot.slane %v1397_v52, 4 }
 0x611   : > { %v1411_v61 = vadd.f32 %v1410_v55, %v1394_v49  ;;  %v1416_v62 = vrot.slane %v1395_v56, 4 }
 0x612   : > { %v1424_v0 = vrot.slane %v1423_v58, 2  ;;  %v1429_v57 = vadd.f32 %v1428_v60, %v1397_v52 }
 0x613   : > { %v1412_v43 = vrot.slane %v1411_v61, 2  ;;  %v1417_v48 = vadd.f32 %v1416_v62, %v1395_v56 }
 0x614   : > { %v1425_v5 = vadd.f32 %v1424_v0, %v1423_v58  ;;  %v1430_v53 = vrot.slane %v1429_v57, 2 }
 0x615   : > { %v1413_v37 = vadd.f32 %v1412_v43, %v1411_v61  ;;  %v1418_v7 = vrot.slane %v1417_v48, 2 }
 0x616   : > { %v1426_v8 = vrot.slane %v1425_v5, 1  ;;  %v1431_v63 = vadd.f32 %v1430_v53, %v1429_v57 }
 0x617   : > { %v1414_v10 = vrot.slane %v1413_v37, 1  ;;  %v1419_v11 = vadd.f32 %v1418_v7, %v1417_v48  ;;  %v2863_v12 = vpop.f32.mrb[16].mxu0 }
 0x618   : > { %v1427_v3 = vadd.f32 %v1426_v8, %v1425_v5  ;;  %v1432_v14 = vrot.slane %v1431_v63, 1  ;;  %v1404_v17 = vmul.f32 %v2863_v12, %v4121_v44  ;;  %v1362_v19 = vpop.f32.mrb[17].mxu0 }
 0x619   : > { %v1415_v6 = vadd.f32 %v1414_v10, %v1413_v37  ;;  %v1420_v21 = vrot.slane %v1419_v11, 1  ;;  %v1402_v22 = vmul.f32 %v4121_v44, %v1362_v19  ;;  %v2864_v24 = vpop.f32.mrb[18].mxu0 }
 0x61a   : > { %v1508_v2 = vpack.c.bf16 %v1427_v3, %v1427_v3  ;;  %v1433_v1 = vadd.f32 %v1432_v14, %v1431_v63  ;;  %v1470_v26 = vrot.slane %v1404_v17, 4  ;;  %v1405_v20 = vmul.f32 %v2864_v24, %v4121_v44  ;;  %v1365_v23 = vpop.f32.mrb[19].mxu0 }
 0x61b   : > { %v1506_v59 = vpack.c.bf16 %v1415_v6, %v1415_v6  ;;  %v1421_v27 = vadd.f32 %v1420_v21, %v1419_v11  ;;  %v1458_v29 = vrot.slane %v1402_v22, 4  ;;  %v1403_v13 = vmul.f32 %v4121_v44, %v1365_v23  ;;  %v2857_v31 = vpop.f32.mrb[12].mxu1 }
 0x61c   : > { %v1563_v25 = vunpack.c.l.b16 %v1508_v2  ;;  %v1509_v33 = vpack.c.bf16 %v1433_v1, %v1433_v1  ;;  %v1471_v4 = vadd.f32 %v1470_v26, %v1404_v17  ;;  %v1476_v9 = vrot.slane %v1405_v20, 4  ;;  %v1301_v35 = vpop.f32.mrb[13].mxu1 }
 0x61d   : > { %v1561_v36 = vunpack.c.l.b16 %v1506_v59  ;;  %v1507_v28 = vpack.c.bf16 %v1421_v27, %v1421_v27  ;;  %v1459_v30 = vadd.f32 %v1458_v29, %v1402_v22  ;;  %v1464_v38 = vrot.slane %v1403_v13, 4  ;;  %v2858_v39 = vpop.f32.mrb[14].mxu1 }
 0x61e   : > { %v1564_v32 = vunpack.c.l.b16 %v1509_v33  ;;  %v1472_v34 = vrot.slane %v1471_v4, 2  ;;  %v1477_v40 = vadd.f32 %v1476_v9, %v1405_v20  ;;  %v1400_v42 = vmul.f32 %v2857_v31, %v4121_v44  ;;  %v1304_v45 = vpop.f32.mrb[15].mxu1 }
 0x61f   : > { %v1562_v46 = vunpack.c.l.b16 %v1507_v28  ;;  %v1460_v47 = vrot.slane %v1459_v30, 2  ;;  %v1465_v49 = vadd.f32 %v1464_v38, %v1403_v13  ;;  %v1398_v50 = vmul.f32 %v4121_v44, %v1301_v35 }
 0x620   : > { %v1473_v51 = vadd.f32 %v1472_v34, %v1471_v4  ;;  %v1478_v52 = vrot.slane %v1477_v40, 2  ;;  %v1446_v54 = vrot.slane %v1400_v42, 4  ;;  %v1401_v55 = vmul.f32 %v2858_v39, %v4121_v44 }
 0x621   : > { %v1578_v56 = vsel %vm1577_vm2, %v1562_v46, %v1561_v36  ;;  %v1461_v58 = vadd.f32 %v1460_v47, %v1459_v30  ;;  %v1466_v60 = vrot.slane %v1465_v49, 2  ;;  %v1434_v61 = vrot.slane %v1398_v50, 4 }
 0x622   : > { %v1580_v62 = vsel %vm1579_vm3, %v1563_v25, %v1578_v56  ;;  %v1474_v0 = vrot.slane %v1473_v51, 1  ;;  %v1479_v57 = vadd.f32 %v1478_v52, %v1477_v40  ;;  %v1447_v43 = vadd.f32 %v1446_v54, %v1400_v42  ;;  %v2867_v48 = vpop.f32.mrb[20].mxu0 }
 0x623   : > { %v1462_v5 = vrot.slane %v1461_v58, 1  ;;  %v1467_v53 = vadd.f32 %v1466_v60, %v1465_v49  ;;  %v1435_v37 = vadd.f32 %v1434_v61, %v1398_v50  ;;  %v1582_v7 = vsel %vm1581_vm4, %v1564_v32, %v1580_v62  ;;  %v1378_v8 = vpop.f32.mrb[21].mxu0 }
 0x624   : > { %v1475_v63 = vadd.f32 %v1474_v0, %v1473_v51  ;;  %v1480_v10 = vrot.slane %v1479_v57, 1  ;;  %v1448_v11 = vrot.slane %v1447_v43, 2  ;;  %v1452_v12 = vrot.slane %v1401_v55, 4  ;;  %v2868_v3 = vpop.f32.mrb[22].mxu0 }
 0x625   : > { %v1463_v14 = vadd.f32 %v1462_v5, %v1461_v58  ;;  %v1468_v17 = vrot.slane %v1467_v53, 1  ;;  %v1436_v19 = vrot.slane %v1435_v37, 2  ;;  %v1399_v6 = vmul.f32 %v4121_v44, %v1304_v45  ;;  %v1381_v21 = vpop.f32.mrb[23].mxu0 }
 0x626   : > { %v1516_v22 = vpack.c.bf16 %v1475_v63, %v1475_v63  ;;  %v1481_v24 = vadd.f32 %v1480_v10, %v1479_v57  ;;  %v1449_v2 = vadd.f32 %v1448_v11, %v1447_v43  ;;  %v1453_v1 = vadd.f32 %v1452_v12, %v1401_v55 }
 0x627   : > { %v1514_v26 = vpack.c.bf16 %v1463_v14, %v1463_v14  ;;  %v1469_v20 = vadd.f32 %v1468_v17, %v1467_v53  ;;  %v1437_v23 = vadd.f32 %v1436_v19, %v1435_v37  ;;  %v1440_v59 = vrot.slane %v1399_v6, 4 }
 0x628   : > { %v1517_v27 = vpack.c.bf16 %v1481_v24, %v1481_v24  ;;  %v1454_v29 = vrot.slane %v1453_v1, 2  ;;  %v1571_v13 = vunpack.c.l.b16 %v1516_v22  ;;  %v1450_v9 = vrot.slane %v1449_v2, 1 }
 0x629   : > { %v1515_v31 = vpack.c.bf16 %v1469_v20, %v1469_v20  ;;  %v1438_v25 = vrot.slane %v1437_v23, 1  ;;  %v1441_v33 = vadd.f32 %v1440_v59, %v1399_v6  ;;  %v1569_v4 = vunpack.c.l.b16 %v1514_v26 }
 0x62a   : > { %v1455_v35 = vadd.f32 %v1454_v29, %v1453_v1  ;;  %v1408_v36 = vmul.f32 %v2867_v48, %v4121_v44  ;;  %v1406_v39 = vmul.f32 %v4121_v44, %v1378_v8  ;;  %v1572_v32 = vunpack.c.l.b16 %v1517_v27 }
 0x62b   : > { %v1570_v28 = vunpack.c.l.b16 %v1515_v31  ;;  %v1439_v30 = vadd.f32 %v1438_v25, %v1437_v23  ;;  %v1442_v38 = vrot.slane %v1441_v33, 2  ;;  %v1409_v42 = vmul.f32 %v2868_v3, %v4121_v44 }
 0x62c   : > { %v1456_v34 = vrot.slane %v1455_v35, 1  ;;  %v1494_v40 = vrot.slane %v1408_v36, 4  ;;  %v1482_v49 = vrot.slane %v1406_v39, 4  ;;  %v1451_v51 = vadd.f32 %v1450_v9, %v1449_v2 }
 0x62d   : > { %v1591_v45 = vsel %vm1577_vm2, %v1570_v28, %v1569_v4  ;;  %v1510_v46 = vpack.c.bf16 %v1439_v30, %v1439_v30  ;;  %v1443_v47 = vadd.f32 %v1442_v38, %v1441_v33  ;;  %v1500_v62 = vrot.slane %v1409_v42, 4 }
 0x62e   : > { %v1592_v50 = vsel %vm1579_vm3, %v1571_v13, %v1591_v45  ;;  %v1457_v52 = vadd.f32 %v1456_v34, %v1455_v35  ;;  %v1495_v54 = vadd.f32 %v1494_v40, %v1408_v36  ;;  %v1483_v58 = vadd.f32 %v1482_v49, %v1406_v39  ;;  %v2663_v34 = vld [vmem:[%s4365_s3] ss:$0 sm:$0xff]  ;;  %s4369_s3 = sld [smem:[#allocation31_spill]] }
 0x62f   : > { %v1565_v55 = vunpack.c.l.b16 %v1510_v46  ;;  %v1444_v56 = vrot.slane %v1443_v47, 1  ;;  %v1593_v60 = vsel %vm1581_vm4, %v1572_v32, %v1592_v50  ;;  %v1407_v0 = vmul.f32 %v4121_v44, %v1381_v21  ;;  %v3053_v50 = vld [vmem:[#allocation13] ss:$16 sps:$4 sm:$0xff]  }
 0x630   : > { %v1496_v61 = vrot.slane %v1495_v54, 2  ;;  %v1484_v48 = vrot.slane %v1483_v58, 2  ;;  %v1512_v5 = vpack.c.bf16 %v1451_v51, %v1451_v51  ;;  %v1501_v37 = vadd.f32 %v1500_v62, %v1409_v42  ;;  %v3055_v51 = vld [vmem:[#allocation13 + $0x4] ss:$16 sps:$4 sm:$0xff]  }
 0x631   : > { %v1584_v57 = vsel %vm1583_vm5, %v1565_v55, %v1582_v7  ;;  %v1445_v43 = vadd.f32 %v1444_v56, %v1443_v47  ;;  %v1488_v8 = vrot.slane %v1407_v0, 4  ;;  %v1513_v63 = vpack.c.bf16 %v1457_v52, %v1457_v52  ;;  %v3056_v52 = vld [vmem:[#allocation13 + $0x8] ss:$16 sps:$4 sm:$0xff]   ;;  %1944 = vmatprep.subr.bf16.mxu0 %v3055_v51  ;;  %v3064_v55 = vld [vmem:[#allocation13 + $0x2c] ss:$16 sps:$4 sm:$0xff]   ;;  %v3104_v51 = vld [vmem:[#allocation14 + $0x80] sm:$0xff]  }
 0x632   : > { %v1497_v53 = vadd.f32 %v1496_v61, %v1495_v54  ;;  %v1485_v11 = vadd.f32 %v1484_v48, %v1483_v58  ;;  %v1502_v12 = vrot.slane %v1501_v37, 2  ;;  %v1567_v6 = vunpack.c.l.b16 %v1512_v5  ;;  %v3061_v54 = vld [vmem:[#allocation13 + $0x24] ss:$16 sps:$4 sm:$0xff]   ;;  %1945 = vmatpush1.bf16.msra.mxu0 %v3053_v50  ;;  %v3059_v56 = vld [vmem:[#allocation13 + $0x20] ss:$16 sps:$4 sm:$0xff]  }
 0x633   : > { %v1511_v10 = vpack.c.bf16 %v1445_v43, %v1445_v43  ;;  %v1489_v3 = vadd.f32 %v1488_v8, %v1407_v0  ;;  %v1568_v7 = vunpack.c.l.b16 %v1513_v63  ;;  %1946 = vmatprep.subr.bf16.mxu0 %v3061_v54  ;;  %v3062_v58 = vld [vmem:[#allocation13 + $0x28] ss:$16 sps:$4 sm:$0xff]   ;;  %v3065_v8 = vld [vmem:[#allocation13 + $0x40] ss:$16 sps:$4 sm:$0xff]  }
 0x634   : > { %v1498_v17 = vrot.slane %v1497_v53, 1  ;;  %v1486_v19 = vrot.slane %v1485_v11, 1  ;;  %v1503_v44 = vadd.f32 %v1502_v12, %v1501_v37  ;;  %v3070_v37 = vld [vmem:[#allocation13 + $0x4c] ss:$16 sps:$4 sm:$0xff]   ;;  %v3068_v63 = vld [vmem:[#allocation13 + $0x48] ss:$16 sps:$4 sm:$0xff]  }
 0x635   : > { %v1566_v14 = vunpack.c.l.b16 %v1511_v10  ;;  %v1490_v21 = vrot.slane %v1489_v3, 2  ;;  %v3073_v10 = vld [vmem:[#allocation13 + $0x64] ss:$16 sps:$4 sm:$0xff]   ;;  %v3071_v12 = vld [vmem:[#allocation13 + $0x60] ss:$16 sps:$4 sm:$0xff]   ;;  %v3107_v54 = vld [vmem:[#allocation14 + $0x8] sm:$0xff]  }
 0x636   : > { %v1487_v24 = vadd.f32 %v1486_v19, %v1485_v11  ;;  %v1504_v1 = vrot.slane %v1503_v44, 1  ;;  %v1499_v20 = vadd.f32 %v1498_v17, %v1497_v53  ;;  %1947 = vmatpush1.bf16.msra.mxu0 %v3059_v56  ;;  %v3067_v53 = vld [vmem:[#allocation13 + $0x44] ss:$16 sps:$4 sm:$0xff]   ;;  %v3076_v11 = vld [vmem:[#allocation13 + $0x6c] ss:$16 sps:$4 sm:$0xff]  }
 0x637   : > { %v1586_v22 = vsel %vm1585_vm6, %v1566_v14, %v1584_v57  ;;  %v1491_v26 = vadd.f32 %v1490_v21, %v1489_v3  ;;  %1948 = vmatprep.subr.bf16.mxu0 %v3067_v53  ;;  %v3074_v3 = vld [vmem:[#allocation13 + $0x68] ss:$16 sps:$4 sm:$0xff]   ;;  %v3079_v14 = vld [vmem:[#allocation13 + $0x84] ss:$16 sps:$4 sm:$0xff]   ;;  %v3082_v17 = vld [vmem:[#allocation13 + $0x8c] ss:$16 sps:$4 sm:$0xff]  }
 0x638   : > { %v1588_v2 = vsel %vm1587_vm7, %v1567_v6, %v1586_v22  ;;  %v1518_v23 = vpack.c.bf16 %v1487_v24, %v1487_v24  ;;  %v1505_v27 = vadd.f32 %v1504_v1, %v1503_v44  ;;  %v1520_v25 = vpack.c.bf16 %v1499_v20, %v1499_v20  ;;  %v3077_v19 = vld [vmem:[#allocation13 + $0x80] ss:$16 sps:$4 sm:$0xff]   ;;  %v3080_v6 = vld [vmem:[#allocation13 + $0x88] ss:$16 sps:$4 sm:$0xff]   ;;  %v3085_v44 = vld [vmem:[#allocation13 + $0xa4] ss:$16 sps:$4 sm:$0xff]  }
 0x639   : > { %v1590_v59 = vsel %vm1589_vm8, %v1568_v7, %v1588_v2  ;;  %v1492_v29 = vrot.slane %v1491_v26, 1  ;;  %v3088_v21 = vld [vmem:[#allocation13 + $0xac] ss:$16 sps:$4 sm:$0xff]   ;;  %v3083_v7 = vld [vmem:[#allocation13 + $0xa0] ss:$16 sps:$4 sm:$0xff]  }
 0x63a   : > { %v1573_v13 = vunpack.c.l.b16 %v1518_v23  ;;  %v1521_v4 = vpack.c.bf16 %v1505_v27, %v1505_v27  ;;  %v1575_v36 = vunpack.c.l.b16 %v1520_v25  ;;  %1949 = vmatpush1.bf16.msra.mxu0 %v3065_v8  ;;  %v3086_v22 = vld [vmem:[#allocation13 + $0xa8] ss:$16 sps:$4 sm:$0xff]   ;;  %v3091_v24 = vld [vmem:[#allocation13 + $0xc4] ss:$16 sps:$4 sm:$0xff]   ;;  %v3094_v2 = vld [vmem:[#allocation13 + $0xcc] ss:$16 sps:$4 sm:$0xff]  }
 0x63b   : > { %v1493_v31 = vadd.f32 %v1492_v29, %v1491_v26  ;;  %1950 = vmatprep.subr.bf16.mxu0 %v3073_v10  ;;  %v3089_v1 = vld [vmem:[#allocation13 + $0xc0] ss:$16 sps:$4 sm:$0xff]   ;;  %v3092_v26 = vld [vmem:[#allocation13 + $0xc8] ss:$16 sps:$4 sm:$0xff]   ;;  %v3097_v23 = vld [vmem:[#allocation13 + $0xe4] ss:$16 sps:$4 sm:$0xff]  }
 0x63c   : > { %v1594_v33 = vsel %vm1583_vm5, %v1573_v13, %v1593_v60  ;;  %v1576_v28 = vunpack.c.l.b16 %v1521_v4  ;;  %v3095_v20 = vld [vmem:[#allocation13 + $0xe0] ss:$16 sps:$4 sm:$0xff]   ;;  %v3100_v27 = vld [vmem:[#allocation13 + $0xec] ss:$16 sps:$4 sm:$0xff]  }
 0x63d   : > { %v1519_v9 = vpack.c.bf16 %v1493_v31, %v1493_v31  ;;  %v3103_v50 = vld [vmem:[#allocation14] sm:$0xff]   ;;  %v3109_v56 = vld [vmem:[#allocation14 + $0x50] sm:$0xff]   ;;  %v3121_v8 = vld [vmem:[#allocation14 + $0x68] sm:$0xff]  }
 0x63e   : > { %1951 = vmatpush1.bf16.msra.mxu0 %v3071_v12  ;;  %v3119_v53 = vld [vmem:[#allocation14 + $0x20] sm:$0xff]   ;;  %v3123_v10 = vld [vmem:[#allocation14 + $0x28] sm:$0xff]   ;;  %v3125_v12 = vld [vmem:[#allocation14 + $0x70] sm:$0xff]  }
 0x63f   : > { %v1574_v35 = vunpack.c.l.b16 %v1519_v9  ;;  %1952 = vmatprep.subr.bf16.mxu0 %v3079_v14  ;;  %v3127_v14 = vld [vmem:[#allocation14 + $0x30] sm:$0xff]  }
 0x641   : > { %v1595_v30 = vsel %vm1585_vm6, %v1574_v35, %v1594_v33  ;;  %v2672_v35 = vld [vmem:[%s4366_s28] ss:$0 sm:$0xff]  ;;  %s2746_s28 = sshll.u32 %s3661_s27, 8  ;;  %s3552_s27 = smov [#allocation16]  }
 0x642   : > { %v1596_v38 = vsel %vm1587_vm7, %v1575_v36, %v1595_v30  ;;  %1953 = vmatpush1.bf16.msra.mxu0 %v3077_v19  ;;  %v3129_v19 = vld [vmem:[#allocation14 + $0x78] sm:$0xff]  }
 0x643   : > { %v1597_v39 = vsel %vm1589_vm8, %v1576_v28, %v1596_v38  ;;  %1954 = vmatprep.subr.bf16.mxu0 %v3085_v44  ;;  %v3131_v44 = vld [vmem:[#allocation14 + $0x38] sm:$0xff]  }
 0x644   : > { %v1598_v32 = vpack.c.b16 %v1597_v39, %v1590_v59  ;;  %v3098_v59 = vld [vmem:[#allocation13 + $0xe8] ss:$16 sps:$4 sm:$0xff]   ;;  %v2673_v39 = vld [vmem:[%s4367_s15] ss:$0 sm:$0xff]  ;;  %s4370_s15 = sld [smem:[#allocation32_spill]] }
 0x646   : > { %2886 = vmatmul.mubr.bf16.vlgmr.msra.gmra.mrb[16].mxu1 %v1598_v32  ;;  %1955 = vmatpush1.bf16.msra.mxu0 %v3083_v7  ;;  %v1774_v7 = vsub.s32 2, %v3962_v15 }
 0x647   : > { %2019 = vmatprep.mubr.bf16.mxu1 %v3549_v41  ;;  %v3058_v41 = vld [vmem:[#allocation13 + $0xc] ss:$16 sps:$4 sm:$0xff]   ;;  %1956 = vmatprep.subr.bf16.mxu0 %v3091_v24  ;;  %v1778_v24 = vsub.s32 3, %v3962_v15 }
 0x648   : > { %1987 = vmatprep.subr.bf16.mxu1 %v3058_v41  ;;  %v3106_v41 = vld [vmem:[#allocation14 + $0xc8] sm:$0xff]  }
 0x649   : > { %1988 = vmatpush1.bf16.msra.mxu1 %v3056_v52  ;;  %v3105_v52 = vld [vmem:[#allocation14 + $0x48] sm:$0xff]  }
 0x64a   : > { %1989 = vmatprep.subr.bf16.mxu1 %v3064_v55  ;;  %1957 = vmatpush1.bf16.msra.mxu0 %v3089_v1  ;;  %v3108_v55 = vld [vmem:[#allocation14 + $0x88] sm:$0xff]   ;;  %s4258_s10 = scalar_lea.hbm %s4370_s15, %s2746_s28 }
 0x64b   : > { %1958 = vmatprep.subr.bf16.mxu0 %v3097_v23 }
 0x64d   : > { %1990 = vmatpush1.bf16.msra.mxu1 %v3062_v58  ;;  %v3110_v58 = vld [vmem:[#allocation14 + $0xd0] sm:$0xff]  }
 0x64e   : > { %1991 = vmatprep.subr.bf16.mxu1 %v3070_v37  ;;  %1959 = vmatpush1.bf16.msra.mxu0 %v3095_v20  ;;  %v3120_v37 = vld [vmem:[#allocation14 + $0xa0] sm:$0xff]  }
 0x651   : > { %1992 = vmatpush1.bf16.msra.mxu1 %v3068_v63  ;;  %v3122_v63 = vld [vmem:[#allocation14 + $0xe8] sm:$0xff]  }
 0x652   : > { %1993 = vmatprep.subr.bf16.mxu1 %v3076_v11  ;;  %v3124_v11 = vld [vmem:[#allocation14 + $0xa8] sm:$0xff]  }
 0x655   : > { %1994 = vmatpush1.bf16.msra.mxu1 %v3074_v3  ;;  %v3126_v3 = vld [vmem:[#allocation14 + $0xf0] sm:$0xff]  }
 0x656   : > { %1995 = vmatprep.subr.bf16.mxu1 %v3082_v17  ;;  %v3128_v17 = vld [vmem:[#allocation14 + $0xb0] sm:$0xff]  }
 0x659   : > { %1996 = vmatpush1.bf16.msra.mxu1 %v3080_v6  ;;  %v3130_v6 = vld [vmem:[#allocation14 + $0xf8] sm:$0xff]  }
 0x65a   : > { %1997 = vmatprep.subr.bf16.mxu1 %v3088_v21  ;;  %v3132_v21 = vld [vmem:[#allocation14 + $0xb8] sm:$0xff]  }
 0x65d   : > { %1998 = vmatpush1.bf16.msra.mxu1 %v3086_v22  ;;  %v1762_v22 = vld [vmem:[%s4368_s30] sm:$0xf]  ;;  %s3455_s30 = sshll.u32 %s3552_s27, 4  ;;  %s3456_s30 = int_to_ptr.vmem [resolvable:$false] %s3455_s30 }
 0x65e   : > { %1999 = vmatprep.subr.bf16.mxu1 %v3094_v2  ;;  %v1767_v2 = vrot.slane %v1762_v22, %v747_v16  ;;  %v1775_v1 = vrot.slane %v1762_v22, %v1774_v7  ;;  %v1779_v20 = vrot.slane %v1762_v22, %v1778_v24  ;;  %s3457_s18 = scalar_lea.vmem %s3456_s30, 512  ;;  %p3458_p13 = scmp.lt.s32.totalorder %s4253_s0, %s3456_s30 }
 0x65f   : > { %p3459_p8 = scmp.lt.s32.totalorder %s3457_s18, %s3451_s11 }
 0x661   : > { %2000 = vmatpush1.bf16.msra.mxu1 %v3092_v26  ;;  %v1771_v26 = vrot.slane %v1762_v22, %v751_v18  ;;  %p3460_p6 = por %p3459_p8, %p3458_p13 }
 0x662   : > { %2001 = vmatprep.subr.bf16.mxu1 %v3100_v27 }
 0x663   : > { %p3461_p9 = pnand %p3460_p6, %p3454_p12 }
 0x665   : > { %2002 = vmatpush1.bf16.msra.mxu1 %v3098_v59 }
 0x719   : > { %v1682_v40 = vpop.f32.mrb[16].mxu1 }
 0x71a   : > { %v4157_v42 = vadd.f32 %v2663_v34, %v1682_v40  ;;  %v2887_v45 = vpop.f32.mrb[17].mxu1 }
 0x71b   : > { %v1685_v46 = vpop.f32.mrb[18].mxu1 }
 0x71c   : > { %v4159_v47 = vadd.f32 %v2663_v34, %v1685_v46  ;;  %1689 = vadd.xlane.f32.xlu0 %v4157_v42  ;;  %v2888_v49 = vpop.f32.mrb[19].mxu1  ;;  %v3101_v46 = vld [vmem:[#allocation14 + $0x40] sm:$0xff]  }
 0x71d   : > { %v3102_v49 = vld [vmem:[#allocation14 + $0xc0] sm:$0xff]   ;;  %2785 = vmatprep.subr.bf16.mxu0 %v3101_v46 }
 0x71e   : > { %1691 = vadd.xlane.f32.xlu1 %v4159_v47  ;;  %2807 = vmatprep.subr.bf16.mxu1 %v3102_v49 }
 0x7a9   : > { %v1690_v60 = vpop.xlane.xlu0 %1689 }
 0x7aa   : > { %v1693_v61 = vmul.f32 0.0078125, %v1690_v60  ;;  %v3111_v60 = vld [vmem:[#allocation14 + $0x10] sm:$0xff]  }
 0x7ab   : > { %v1692_v62 = vpop.xlane.xlu1 %1691 }
 0x7ac   : > { %v4164_v0 = vsub.f32 %v4157_v42, %v1693_v61  ;;  %v1694_v57 = vmul.f32 0.0078125, %v1692_v62  ;;  %v3112_v61 = vld [vmem:[#allocation14 + $0x90] sm:$0xff]   ;;  %v3113_v62 = vld [vmem:[#allocation14 + $0x58] sm:$0xff]  }
 0x7ae   : > { %v4167_v43 = vsub.f32 %v4159_v47, %v1694_v57  ;;  %v1697_v48 = vmul.f32 %v4164_v0, %v4164_v0  ;;  %v3115_v57 = vld [vmem:[#allocation14 + $0x18] sm:$0xff]  }
 0x7b0   : > { %1699 = vadd.xlane.f32.xlu0 %v1697_v48  ;;  %v1698_v5 = vmul.f32 %v4167_v43, %v4167_v43  ;;  %v3117_v48 = vld [vmem:[#allocation14 + $0x60] sm:$0xff]  }
 0x7b2   : > { %1701 = vadd.xlane.f32.xlu1 %v1698_v5  ;;  %v3118_v5 = vld [vmem:[#allocation14 + $0xe0] sm:$0xff]  }
 0x83d   : > { %v1700_v29 = vpop.xlane.xlu0 %1699 }
 0x83e   : > { %v1703_v13 = vmul.f32 0.0078125, %v1700_v29 }
 0x83f   : > { %v1702_v31 = vpop.xlane.xlu1 %1701 }
 0x840   : > { %v1705_v25 = vadd.f32 1e-06, %v1703_v13  ;;  %v1704_v33 = vmul.f32 0.0078125, %v1702_v31 }
 0x842   : > { %3205 = vrsqrt.f32 %v1705_v25  ;;  %v1706_v4 = vadd.f32 1e-06, %v1704_v33 }
 0x844   : > { %3207 = vrsqrt.f32 %v1706_v4 }
 0x84c   : > { %v3206_v9 = vpop.eup %3205 }
 0x84d   : > { %v1709_v36 = vmul.f32 %v3206_v9, %v4164_v0  ;;  %v3114_v0 = vld [vmem:[#allocation14 + $0xd8] sm:$0xff]  }
 0x84e   : > { %v3208_v28 = vpop.eup %3207 }
 0x84f   : > { %v1718_v30 = vmul.f32 %v2672_v35, %v1709_v36  ;;  %v1710_v38 = vmul.f32 %v3208_v28, %v4167_v43  ;;  %v3116_v43 = vld [vmem:[#allocation14 + $0x98] sm:$0xff]  }
 0x851   : > { %v1719_v32 = vmul.f32 %v2672_v35, %v1710_v38  ;;  %v1727_v34 = vadd.f32 %v2673_v39, %v1718_v30 }
 0x853   : > { %v1728_v40 = vadd.f32 %v2673_v39, %v1719_v32 }
 0x855   : > { %v1729_v45 = vpack.c.bf16 %v1728_v40, %v1727_v34 }
 0x857   : > { %1977 = vmatmul.mubr.bf16.vlgmr.msra.gmra.mrb[24].mxu0 %v1729_v45  ;;  %2020 = vmatmul.mubr.bf16.vlgmr.msra.gmra.mrb[20].mxu1 %v1729_v45 }
 0x858   : > { %2786 = vmatpush3.bf16.msra.mxu0 %v3103_v50  ;;  %2808 = vmatpush3.bf16.msra.mxu1 %v3104_v51 }
 0x859   : > { %2787 = vmatprep.subr.bf16.mxu0 %v3105_v52  ;;  %2809 = vmatprep.subr.bf16.mxu1 %v3106_v41 }
 0x85c   : > { %2788 = vmatpush3.bf16.msra.mxu0 %v3107_v54  ;;  %2810 = vmatpush3.bf16.msra.mxu1 %v3108_v55 }
 0x85d   : > { %2789 = vmatprep.subr.bf16.mxu0 %v3109_v56  ;;  %2811 = vmatprep.subr.bf16.mxu1 %v3110_v58 }
 0x860   : > { %2790 = vmatpush3.bf16.msra.mxu0 %v3111_v60  ;;  %2812 = vmatpush3.bf16.msra.mxu1 %v3112_v61 }
 0x861   : > { %2791 = vmatprep.subr.bf16.mxu0 %v3113_v62  ;;  %2813 = vmatprep.subr.bf16.mxu1 %v3114_v0 }
 0x864   : > { %2792 = vmatpush3.bf16.msra.mxu0 %v3115_v57  ;;  %2814 = vmatpush3.bf16.msra.mxu1 %v3116_v43 }
 0x865   : > { %2793 = vmatprep.subr.bf16.mxu0 %v3117_v48  ;;  %2815 = vmatprep.subr.bf16.mxu1 %v3118_v5 }
 0x868   : > { %2794 = vmatpush3.bf16.msra.mxu0 %v3119_v53  ;;  %2816 = vmatpush3.bf16.msra.mxu1 %v3120_v37 }
 0x869   : > { %2795 = vmatprep.subr.bf16.mxu0 %v3121_v8  ;;  %2817 = vmatprep.subr.bf16.mxu1 %v3122_v63 }
 0x86c   : > { %2796 = vmatpush3.bf16.msra.mxu0 %v3123_v10  ;;  %2818 = vmatpush3.bf16.msra.mxu1 %v3124_v11 }
 0x86d   : > { %2797 = vmatprep.subr.bf16.mxu0 %v3125_v12  ;;  %2819 = vmatprep.subr.bf16.mxu1 %v3126_v3 }
 0x870   : > { %2798 = vmatpush3.bf16.msra.mxu0 %v3127_v14  ;;  %2820 = vmatpush3.bf16.msra.mxu1 %v3128_v17 }
 0x871   : > { %2799 = vmatprep.subr.bf16.mxu0 %v3129_v19  ;;  %2821 = vmatprep.subr.bf16.mxu1 %v3130_v6 }
 0x874   : > { %2800 = vmatpush3.bf16.msra.mxu0 %v3131_v44  ;;  %2822 = vmatpush3.bf16.msra.mxu1 %v3132_v21 }
 0x92a   : > { %v1978_v23 = vpop.f32.mrb[24].mxu0  ;;  %v2021_v59 = vpop.f32.mrb[20].mxu1 }
 0x92b   : > { %v4190_v27 = vadd.f32 %v1978_v23, %v1767_v2  ;;  %v4192_v29 = vadd.f32 %v2021_v59, %v1775_v1  ;;  %v1980_v13 = vpop.f32.mrb[25].mxu0  ;;  %v2023_v31 = vpop.f32.mrb[21].mxu1 }
 0x92c   : > { %v4194_v25 = vadd.f32 %v1980_v13, %v1771_v26  ;;  %v4196_v33 = vadd.f32 %v2023_v31, %v1779_v20  ;;  %v1982_v4 = vpop.f32.mrb[26].mxu0  ;;  %v2025_v9 = vpop.f32.mrb[22].mxu1 }
 0x92d   : > { %v2030_v16 = vmul.f32 %v4190_v27, %v4190_v27  ;;  %v2032_v15 = vmul.f32 %v4192_v29, %v4192_v29  ;;  %v4202_v18 = vadd.f32 %v1982_v4, %v1767_v2  ;;  %v4204_v35 = vadd.f32 %v2025_v9, %v1775_v1  ;;  %v1984_v36 = vpop.f32.mrb[27].mxu0  ;;  %v2027_v28 = vpop.f32.mrb[23].mxu1 }
 0x92e   : > { %v2031_v30 = vmul.f32 %v4194_v25, %v4194_v25  ;;  %v2033_v38 = vmul.f32 %v4196_v33, %v4196_v33  ;;  %v4210_v39 = vadd.f32 %v1984_v36, %v1771_v26  ;;  %v4212_v32 = vadd.f32 %v2027_v28, %v1779_v20 }
 0x92f   : > { %v2038_v34 = vmul.f32 %v2030_v16, %v4190_v27  ;;  %v2040_v40 = vmul.f32 %v2032_v15, %v4192_v29  ;;  %v2034_v45 = vmul.f32 %v4202_v18, %v4202_v18  ;;  %v2036_v46 = vmul.f32 %v4204_v35, %v4204_v35 }
 0x930   : > { %v2039_v49 = vmul.f32 %v2031_v30, %v4194_v25  ;;  %v2041_v50 = vmul.f32 %v2033_v38, %v4196_v33  ;;  %v2035_v51 = vmul.f32 %v4210_v39, %v4210_v39  ;;  %v2037_v52 = vmul.f32 %v4212_v32, %v4212_v32 }
 0x931   : > { %v2046_v41 = vmul.f32 0.044715, %v2038_v34  ;;  %v2048_v54 = vmul.f32 0.044715, %v2040_v40  ;;  %v2042_v55 = vmul.f32 %v2034_v45, %v4202_v18  ;;  %v2044_v56 = vmul.f32 %v2036_v46, %v4204_v35 }
 0x932   : > { %v2047_v58 = vmul.f32 0.044715, %v2039_v49  ;;  %v2049_v60 = vmul.f32 0.044715, %v2041_v50  ;;  %v2043_v61 = vmul.f32 %v2035_v51, %v4210_v39  ;;  %v2045_v62 = vmul.f32 %v2037_v52, %v4212_v32 }
 0x933   : > { %v2054_v0 = vadd.f32 %v2046_v41, %v4190_v27  ;;  %v2056_v57 = vadd.f32 %v2048_v54, %v4192_v29  ;;  %v2050_v43 = vmul.f32 0.044715, %v2042_v55  ;;  %v2052_v48 = vmul.f32 0.044715, %v2044_v56 }
 0x934   : > { %v2055_v5 = vadd.f32 %v2047_v58, %v4194_v25  ;;  %v2057_v53 = vadd.f32 %v2049_v60, %v4196_v33  ;;  %v2051_v37 = vmul.f32 0.044715, %v2043_v61  ;;  %v2053_v8 = vmul.f32 0.044715, %v2045_v62 }
 0x935   : > { %v2062_v63 = vmul.f32 0.7978846, %v2054_v0  ;;  %v2064_v10 = vmul.f32 0.7978846, %v2056_v57  ;;  %v2058_v11 = vadd.f32 %v2050_v43, %v4202_v18  ;;  %v2060_v12 = vadd.f32 %v2052_v48, %v4204_v35 }
 0x936   : > { %v2063_v3 = vmul.f32 0.7978846, %v2055_v5  ;;  %v2065_v14 = vmul.f32 0.7978846, %v2057_v53  ;;  %v2059_v17 = vadd.f32 %v2051_v37, %v4210_v39  ;;  %v2061_v19 = vadd.f32 %v2053_v8, %v4212_v32 }
 0x937   : > { %3209 = vtanh.f32 %v2062_v63  ;;  %v2066_v6 = vmul.f32 0.7978846, %v2058_v11  ;;  %v2068_v44 = vmul.f32 0.7978846, %v2060_v12 }
 0x938   : > { %3211 = vtanh.f32 %v2064_v10  ;;  %v2067_v21 = vmul.f32 0.7978846, %v2059_v17  ;;  %v2069_v7 = vmul.f32 0.7978846, %v2061_v19 }
 0x939   : > { %3213 = vtanh.f32 %v2063_v3 }
 0x93a   : > { %3215 = vtanh.f32 %v2065_v14 }
 0x93b   : > { %3217 = vtanh.f32 %v2066_v6 }
 0x93c   : > { %3219 = vtanh.f32 %v2068_v44 }
 0x93d   : > { %3221 = vtanh.f32 %v2067_v21 }
 0x93e   : > { %3223 = vtanh.f32 %v2069_v7 }
 0x941   : > { %v3210_v22 = vpop.eup %3209 }
 0x942   : > { %v3212_v24 = vpop.eup %3211  ;;  %v2078_v2 = vadd.f32 1.0, %v3210_v22 }
 0x943   : > { %v3214_v1 = vpop.eup %3213  ;;  %v2080_v26 = vadd.f32 1.0, %v3212_v24 }
 0x944   : > { %v3216_v20 = vpop.eup %3215  ;;  %v2079_v23 = vadd.f32 1.0, %v3214_v1  ;;  %v2086_v4 = vmul.f32 0.5, %v2078_v2 }
 0x945   : > { %v3218_v59 = vpop.eup %3217  ;;  %v2081_v13 = vadd.f32 1.0, %v3216_v20  ;;  %v2088_v15 = vmul.f32 0.5, %v2080_v26 }
 0x946   : > { %v3220_v31 = vpop.eup %3219  ;;  %v2082_v9 = vadd.f32 1.0, %v3218_v59  ;;  %v2087_v34 = vmul.f32 0.5, %v2079_v23  ;;  %v2094_v49 = vmul.f32 %v2086_v4, %v4190_v27 }
 0x947   : > { %v3222_v16 = vpop.eup %3221  ;;  %v2084_v36 = vadd.f32 1.0, %v3220_v31  ;;  %v2089_v46 = vmul.f32 0.5, %v2081_v13  ;;  %v2096_v52 = vmul.f32 %v2088_v15, %v4192_v29 }
 0x948   : > { %v3224_v28 = vpop.eup %3223  ;;  %v2090_v30 = vmul.f32 0.5, %v2082_v9  ;;  %v2083_v38 = vadd.f32 1.0, %v3222_v16  ;;  %v2095_v55 = vmul.f32 %v2087_v34, %v4194_v25  ;;  %v2706_v25 = vld [vmem:[%s4369_s3] ss:$0 sm:$0xff] }
 0x949   : > { %v2092_v40 = vmul.f32 0.5, %v2084_v36  ;;  %v2085_v45 = vadd.f32 1.0, %v3224_v28  ;;  %v2097_v60 = vmul.f32 %v2089_v46, %v4196_v33 }
 0x94a   : > { %v2098_v50 = vmul.f32 %v2090_v30, %v4202_v18  ;;  %v2091_v51 = vmul.f32 0.5, %v2083_v38 }
 0x94b   : > { %v2100_v41 = vmul.f32 %v2092_v40, %v4204_v35  ;;  %v2093_v54 = vmul.f32 0.5, %v2085_v45 }
 0x94c   : > { %v2099_v56 = vmul.f32 %v2091_v51, %v4210_v39  ;;  %v2102_v58 = vpack.c.bf16 %v2098_v50, %v2094_v49 }
 0x94d   : > { %v2101_v61 = vmul.f32 %v2093_v54, %v4212_v32  ;;  %v2104_v62 = vpack.c.bf16 %v2100_v41, %v2096_v52 }
 0x94e   : > { %v2103_v0 = vpack.c.bf16 %v2099_v56, %v2095_v55 }
 0x94f   : > { %v2105_v27 = vpack.c.bf16 %v2101_v61, %v2097_v60 }
 0x950   : > { %2401 = vmatprep.mubr.bf16.mxu0 %v2103_v0 }
 0x951   : > { %2442 = vmatprep.mubr.bf16.mxu1 %v2105_v27  ;;  %2402 = vmatmul.mubr.bf16.vlgmr.msra.gmra.mrb[28].mxu0 %v2102_v58 }
 0x952   : > { %2443 = vmatmul.mubr.bf16.vlgmr.msra.gmra.mrb[24].mxu1 %v2104_v62 }
 0xa24   : > { %v2801_v29 = vpop.f32.mrb[28].mxu0 }
 0xa25   : > { %v2823_v18 = vpop.f32.mrb[24].mxu1  ;;  %v2802_v35 = vpop.f32.mrb[29].mxu0 }
 0xa26   : > { %v2803_v39 = vadd.f32 %v2802_v35, %v2801_v29  ;;  %v2824_v33 = vpop.f32.mrb[25].mxu1  ;;  %v2804_v57 = vpop.f32.mrb[30].mxu0 }
 0xa27   : > { %v2825_v32 = vadd.f32 %v2824_v33, %v2823_v18  ;;  %v2826_v43 = vpop.f32.mrb[26].mxu1  ;;  %v2805_v48 = vpop.f32.mrb[31].mxu0 }
 0xa28   : > { %v2404_v5 = vadd.f32 %v2803_v39, %v2706_v25  ;;  %v2806_v53 = vadd.f32 %v2805_v48, %v2804_v57  ;;  %v2827_v37 = vpop.f32.mrb[27].mxu1 }
 0xa29   : > { %v2828_v8 = vadd.f32 %v2827_v37, %v2826_v43 }
 0xa2a   : > { %v2445_v63 = vadd.f32 %v2825_v32, %v2404_v5  ;;  %v2407_v10 = vadd.f32 %v2806_v53, %v2706_v25 }
 0xa2c   : > { %v2451_v11 = vadd.f32 %v2445_v63, %v4157_v42  ;;  %v2448_v12 = vadd.f32 %v2828_v8, %v2407_v10 }
 0xa2e   : > { %2453 = vst [vmem:[%s640_s26] sm:$0xff] %v2451_v11  ;;  %v2452_v3 = vadd.f32 %v2448_v12, %v4159_v47 }
 0xa30   : > { %2454 = vst [vmem:[%s640_s26 + $0x8] sm:$0xff] %v2452_v3 }
 0xa31   : > { %3464 = shalt.err (!%p3461_p9)
}
 0xa32   : > { %s3465_s20 = scalar_lea.hbm %s4258_s10, 256  ;;  %s3469_s28 = scalar_lea.hbm %s4370_s15, 512 }
 0xa33   : > { %p3466_p4 = scmp.ne.s32.totalorder %s4258_s10, %s3465_s20  ;;  %p3470_p5 = scmp.lt.u32.totalorder %s4258_s10, %s4370_s15 }
 0xa34   : > { %p3471_p2 = scmp.lt.u32.totalorder %s3469_s28, %s3465_s20  ;;  %p3473_p10 = scmp.lt.u32.totalorder %s3465_s20, %s4258_s10 }
 0xa35   : > { %p3467_p3 = pnand %p3466_p4, %p4371_p1 }
 0xa36   : > { %p3472_p7 = por %p3471_p2, %p3470_p5 }
 0xa37   : > { %p3468_p0 = pneg %p3467_p3 }
 0xa38   : > { %p3474_p11 = por %p3473_p10, %p3472_p7 }
 0xa3a   : > { %p3475_p12 = pnand %p3474_p11, %p3468_p0 }
 0xa3c   : > { %3478 = shalt.err (!%p3475_p12)
}
 0xa3d   : > { %s3553_s11 = smov 128   ;;  %s3554_s27 = smov 8  }
 0xa3e   : > { %2919 = dma.vmem_to_hbm [thread:$0]  (%p4371_p1), %s4253_s0, 256, %s4258_s10, %s2456_s13, %s3553_s11, %s3553_s11, %s3554_s27  }
 0xa3f PF: > { %s2484_s30 = sand.u32 1, %s3521_s21   ;;  %p4372_p13 = scmp.ne.s32.totalorder %s4351_s9, 0 }
 0xa40   : > { %p4373_p8 = scmp.ge.s32.totalorder %s3533_s24, 2  ;;  %s2485_s18 = scalar_lea.sflag [#allocation4], %s2484_s30 }
 0xa42   : > { %p2948_p6 = pnand %p4373_p8, %p4372_p13 }
 0xa44   : > { %3516 = dma.done.wait (!%p2948_p6), %s2485_s18, 256  }
 0xa45   : > { %3518 = vsyncadd (!%p2948_p6), %s2485_s18, 4294967040  ;;  %p33_p9 = scmp.ge.s32.totalorder %s3845_s29, 4   ;;  %s4374_s21 = smov %s3525_s22 }
 0xa46   : > { %s4375_s22 = smov %s3529_s23  ;;  %s4376_s23 = smov %s3857_s17 }
 0xa47   : > { %s4377_s24 = smov %s3845_s29  ;;  %35 = sbr.rel (!%p33_p9) target bundleno = 20 (0x14), region = 157 }
 0xa4e   :  { %2490 = vsyncpa [#allocation3], 1 }
 0xa4f   :  { %2492 = vsyncpa [#allocation3 + $0x1], 1 }
 0xa50   :  { %2493 = vsyncpa [#allocation6], 1 }
 0xa51   :  { %2494 = vsyncpa [#allocation9], 1 }
 0xa52   :  { %2495 = vsyncpa [#allocation12], 1 }
 0xa53   :  { %2496 = vsyncpa [#allocation15], 1 }
 0xa54   :  { %2497 = vsyncpa [#allocation4], 1 }
 0xa55   :  { %2499 = vsyncpa [#allocation4 + $0x1], 1 }

// kernel: tpu_custom_call.1
= control target key start
LH: loop header
LB: loop body
LE: loop exit
PB: predicated region body
PF: predicated region fallthrough
CT: control target
= control target key end

     0   :  { %s4303_s0 = inlined_call_operand.hbm [shape: bf16[4,16,128], index: 0, kind: input, shape index: {}]   ;;  %s4304_s1 = inlined_call_operand.hbm [shape: f32[16,128], index: 1, kind: input, shape index: {}]   ;;  %s4305_s2 = inlined_call_operand.vmem [shape: f32[1,128], index: 2, kind: input, shape index: {}]   ;;  %s4306_s3 = inlined_call_operand.hbm [shape: f32[1,128], index: 3, kind: input, shape index: {}]   ;;  %s4307_s4 = inlined_call_operand.hbm [shape: bf16[64,128], index: 4, kind: input, shape index: {}]   ;;  %s4308_s5 = inlined_call_operand.vmem [shape: f32[8,128], index: 5, kind: input, shape index: {}]   ;;  %s4309_s6 = inlined_call_operand.hbm [shape: bf16[128,256], index: 6, kind: input, shape index: {}]   ;;  %s4310_s7 = inlined_call_operand.vmem [shape: f32[1,256], index: 7, kind: input, shape index: {}]   ;;  %s4311_s8 = inlined_call_operand.hbm [shape: bf16[128,128], index: 8, kind: input, shape index: {}]   ;;  %s4312_s9 = inlined_call_operand.vmem [shape: f32[1,128], index: 9, kind: input, shape index: {}]   ;;  %s4313_s10 = inlined_call_operand.vmem [shape: f32[1,128], index: 10, kind: input, shape index: {}]   ;;  %s4314_s11 = inlined_call_operand.vmem [shape: f32[1,128], index: 11, kind: input, shape index: {}]   ;;  %s4315_s12 = inlined_call_operand.hbm [shape: bf16[128,512], index: 12, kind: input, shape index: {}]   ;;  %s4316_s13 = inlined_call_operand.vmem [shape: f32[1,512], index: 13, kind: input, shape index: {}]   ;;  %s4317_s14 = inlined_call_operand.hbm [shape: bf16[512,128], index: 14, kind: input, shape index: {}]   ;;  %s4318_s15 = inlined_call_operand.vmem [shape: f32[1,128], index: 15, kind: input, shape index: {}]   ;;  %s4319_s16 = inlined_call_operand.hbm [shape: f32[4,8,128], index: 16, kind: output, shape index: {}]  }
   0x1   :  { %4330 = sst [smem:[#allocation23_spill]] %s4303_s0 }
   0x2   :  { %4331 = sst [smem:[#allocation24_spill]] %s4304_s1 }
   0x3   :  { %4332 = sst [smem:[#allocation25_spill]] %s4306_s3 }
   0x4   :  { %4333 = sst [smem:[#allocation26_spill]] %s4308_s5 }
   0x5   :  { %4334 = sst [smem:[#allocation27_spill]] %s4312_s9 }
   0x6   :  { %4335 = sst [smem:[#allocation28_spill]] %s4313_s10 }
   0x7   :  { %4336 = sst [smem:[#allocation29_spill]] %s4314_s11 }
   0x8   :  { %4337 = sst [smem:[#allocation30_spill]] %s4316_s13 }
   0x9   :  { %4338 = sst [smem:[#allocation31_spill]] %s4318_s15 }
   0xa   :  { %4339 = sst [smem:[#allocation32_spill]] %s4319_s16 }
   0xb   :  { %21 = vsyncpa [#allocation3], 0 }
   0xc   :  { %23 = vsyncpa [#allocation3 + $0x1], 0 }
   0xd   :  { %24 = vsyncpa [#allocation6], 0 }
   0xe   :  { %25 = vsyncpa [#allocation9], 0 }
   0xf   :  { %26 = vsyncpa [#allocation12], 0 }
  0x10   :  { %27 = vsyncpa [#allocation15], 0 }
  0x11   :  { %28 = vsyncpa [#allocation4], 0 }
  0x12   :  { %30 = vsyncpa [#allocation4 + $0x1], 0  ;;  %s3640_s21 = smov 0   ;;  %s3642_s22 = smov 0  }
  0x13   :  { %s3644_s23 = smov 0   ;;  %s3646_s24 = smov 0  }
  0x14 LB: > { %s3535_s25 = smov [#allocation5]   ;;  %s3661_s27 = sadd.s32 4294967295, %s3533_s24   ;;  %s3533_s24 = sphi %s3646_s24, %s4377_s24   ;;  %s3529_s23 = sphi %s3644_s23, %s4376_s23   ;;  %s3525_s22 = sphi %s3642_s22, %s4375_s22   ;;  %s3521_s21 = sphi %s3640_s21, %s4374_s21  }
  0x15   : > { %s420_s26 = sshll.u32 %s3535_s25, 4  ;;  %p2610_p0 = scmp.ge.s32.totalorder %s3533_s24, 1  ;;  %s3666_s26 = int_to_ptr.vmem [resolvable:$true] %s420_s26 }
  0x16   : > { %p4323_p1 = scmp.eq.s32.totalorder %s3661_s27, 0  ;;  %p408_p2 = scmp.lt.s32.totalorder %s3533_s24, 3 }
  0x17   : > { %s3536_s29 = smov [#allocation8]   ;;  %s3537_s17 = smov [#allocation11]  }
  0x18   : > { %p3668_p3 = pnand %p2610_p0, %p408_p2  ;;  %s447_s30 = sshll.u32 %s3536_s29, 4  ;;  %s3681_s30 = int_to_ptr.vmem [resolvable:$true] %s447_s30 }
  0x19   : > { %s3683_s18 = sshll.u32 %s3537_s17, 4  ;;  %s4342_s1 = sld [smem:[#allocation24_spill]]  ;;  %s480_s18 = int_to_ptr.vmem [resolvable:$true] %s3683_s18 }
  0x1a   : > { %s4340_s28 = scalar_select %p3668_p3, 1, 0 }
  0x1b   : > { %p2921_p5 = pneg %p3668_p3 }
  0x1d   : > { %p3677_p6 = pnand %p2921_p5, %p4323_p1 }
  0x1f   : > { %s3225_s25 = scalar_lea.hbm %s4342_s1, 256  ;;  %p3693_p8 = pneg %p3677_p6 }
  0x20   : > { %p3226_p7 = scmp.ne.s32.totalorder %s4342_s1, %s3225_s25  ;;  %p3232_p11 = scmp.lt.u32.totalorder %s3225_s25, %s4342_s1 }
  0x22   : > { %p3228_p9 = pnand %p3693_p8, %p3226_p7 }
  0x24   : > { %p3229_p10 = pneg %p3228_p9 }
  0x26   : > { %p3234_p12 = pnand %p3232_p11, %p3229_p10 }
  0x28   : > { %3237 = shalt.err (!%p3234_p12)
}
  0x29   : > { %s3238_s15 = scalar_lea.vmem %s3666_s26, 256  ;;  %p3246_p5 = scmp.lt.s32.totalorder %s3666_s26, %s3666_s26 }
  0x2a   : > { %p3239_p13 = scmp.ne.s32.totalorder %s3666_s26, %s3238_s15  ;;  %p3247_p4 = scmp.lt.s32.totalorder %s3238_s15, %s3238_s15 }
  0x2c   : > { %p3241_p0 = pnand %p3239_p13, %p3693_p8  ;;  %p3248_p7 = por %p3247_p4, %p3246_p5 }
  0x2e   : > { %p3242_p2 = pneg %p3241_p0 }
  0x30   : > { %p3249_p9 = pnand %p3248_p7, %p3242_p2 }
  0x32   : > { %3252 = shalt.err (!%p3249_p9)
}
  0x33   : > { %s4322_s16 = smov 128   ;;  %s4325_s13 = smov 8  }
  0x34   : > { %2924 = dma.hbm_to_vmem [thread:$0]  (!%p3677_p6), %s4342_s1, 256, %s3666_s26, [#allocation6], %s4322_s16, %s4322_s16, %s4325_s13  }
  0x35   : > { %s3253_s15 = scalar_lea.hbm %s4307_s4, 512 }
  0x36   : > { %p3254_p4 = scmp.ne.s32.totalorder %s4307_s4, %s3253_s15  ;;  %p3260_p12 = scmp.lt.u32.totalorder %s3253_s15, %s4307_s4 }
  0x38   : > { %p3256_p10 = pnand %p3254_p4, %p3693_p8 }
  0x3a   : > { %p3257_p11 = pneg %p3256_p10 }
  0x3c   : > { %p3262_p13 = pnand %p3260_p12, %p3257_p11 }
  0x3e   : > { %3265 = shalt.err (!%p3262_p13)
}
  0x3f   : > { %s3266_s26 = scalar_lea.vmem %s3681_s30, 512  ;;  %p3274_p7 = scmp.lt.s32.totalorder %s3681_s30, %s3681_s30 }
  0x40   : > { %p3267_p0 = scmp.ne.s32.totalorder %s3681_s30, %s3266_s26  ;;  %p3275_p9 = scmp.lt.s32.totalorder %s3266_s26, %s3266_s26 }
  0x42   : > { %p3269_p2 = pnand %p3267_p0, %p3693_p8  ;;  %p3276_p4 = por %p3275_p9, %p3274_p7 }
  0x44   : > { %p3270_p5 = pneg %p3269_p2 }
  0x46   : > { %p3277_p10 = pnand %p3276_p4, %p3270_p5 }
  0x48   : > { %3280 = shalt.err (!%p3277_p10)
}
  0x49   : > { %s4326_s10 = smov 64   ;;  %s4328_s5 = smov 4  }
  0x4a   : > { %2930 = dma.hbm_to_vmem [thread:$0]  (!%p3677_p6), %s4307_s4, 512, %s3681_s30, [#allocation9], %s4326_s10, %s4326_s10, %s4328_s5  }
  0x4b   : > { %s3281_s25 = scalar_lea.hbm %s4311_s8, 1024 }
  0x4c   : > { %p3282_p11 = scmp.ne.s32.totalorder %s4311_s8, %s3281_s25  ;;  %p3288_p0 = scmp.lt.u32.totalorder %s3281_s25, %s4311_s8 }
  0x4e   : > { %p3284_p12 = pnand %p3282_p11, %p3693_p8 }
  0x50   : > { %p3285_p13 = pneg %p3284_p12 }
  0x52   : > { %p3290_p2 = pnand %p3288_p0, %p3285_p13 }
  0x54   : > { %3293 = shalt.err (!%p3290_p2)
}
  0x55   : > { %s3294_s9 = scalar_lea.vmem %s480_s18, 1024  ;;  %p3302_p4 = scmp.lt.s32.totalorder %s480_s18, %s480_s18 }
  0x56   : > { %p3295_p5 = scmp.ne.s32.totalorder %s480_s18, %s3294_s9  ;;  %p3303_p10 = scmp.lt.s32.totalorder %s3294_s9, %s3294_s9 }
  0x58   : > { %p3297_p7 = pnand %p3295_p5, %p3693_p8  ;;  %p3304_p1 = por %p3303_p10, %p3302_p4 }
  0x5a   : > { %p3298_p9 = pneg %p3297_p7 }
  0x5c   : > { %p3305_p3 = pnand %p3304_p1, %p3298_p9 }
  0x5e   : > { %3308 = shalt.err (!%p3305_p3)
}
  0x5f   : > { %2936 = dma.hbm_to_vmem [thread:$0]  (!%p3677_p6), %s4311_s8, 1024, %s480_s18, [#allocation12], %s4326_s10, %s4326_s10, %s4328_s5  }
  0x60   : > { %s3542_s11 = smov [#allocation7]   ;;  %s3543_s20 = smov [#allocation10]  }
  0x61   : > { %s437_s19 = sshll.u32 %s3542_s11, 4  ;;  %s463_s25 = sshll.u32 %s3543_s20, 4  ;;  %s438_s19 = int_to_ptr.vmem [resolvable:$true] %s437_s19  ;;  %s464_s25 = int_to_ptr.vmem [resolvable:$true] %s463_s25 }
  0x62   : > { %s4344_s3 = sld [smem:[#allocation25_spill]] }
  0x68   : > { %s3309_s26 = scalar_lea.hbm %s4344_s3, 16 }
  0x69   : > { %p3310_p1 = scmp.ne.s32.totalorder %s4344_s3, %s3309_s26  ;;  %p3316_p12 = scmp.lt.u32.totalorder %s3309_s26, %s4344_s3 }
  0x6b   : > { %p3312_p3 = pnand %p3310_p1, %p3693_p8 }
  0x6d   : > { %p3313_p11 = pneg %p3312_p3 }
  0x6f   : > { %p3318_p13 = pnand %p3316_p12, %p3313_p11 }
  0x71   : > { %3321 = shalt.err (!%p3318_p13)
}
  0x72   : > { %s3322_s18 = scalar_lea.vmem %s438_s19, 16  ;;  %s3329_s16 = scalar_lea.vmem %s438_s19, 32 }
  0x73   : > { %p3323_p0 = scmp.ne.s32.totalorder %s438_s19, %s3322_s18  ;;  %p3330_p7 = scmp.lt.s32.totalorder %s438_s19, %s438_s19 }
  0x74   : > { %p3331_p9 = scmp.lt.s32.totalorder %s3329_s16, %s3322_s18 }
  0x75   : > { %p3325_p2 = pnand %p3323_p0, %p3693_p8 }
  0x76   : > { %p3332_p4 = por %p3331_p9, %p3330_p7 }
  0x77   : > { %p3326_p5 = pneg %p3325_p2 }
  0x79   : > { %p3333_p10 = pnand %p3332_p4, %p3326_p5 }
  0x7b   : > { %3336 = shalt.err (!%p3333_p10)
}
  0x7c   : > { %2927 = dma.hbm_to_vmem [thread:$0]  (!%p3677_p6), %s4344_s3, 16, %s438_s19, [#allocation6]  }
  0x7d   : > { %s3337_s17 = scalar_lea.hbm %s4309_s6, 2048 }
  0x7e   : > { %p3338_p1 = scmp.ne.s32.totalorder %s4309_s6, %s3337_s17  ;;  %p3344_p12 = scmp.lt.u32.totalorder %s3337_s17, %s4309_s6 }
  0x80   : > { %p3340_p3 = pnand %p3338_p1, %p3693_p8 }
  0x82   : > { %p3341_p11 = pneg %p3340_p3 }
  0x84   : > { %p3346_p13 = pnand %p3344_p12, %p3341_p11 }
  0x86   : > { %3349 = shalt.err (!%p3346_p13)
}
  0x87   : > { %s3350_s18 = scalar_lea.vmem %s464_s25, 2048  ;;  %p3358_p7 = scmp.lt.s32.totalorder %s464_s25, %s464_s25 }
  0x88   : > { %p3351_p0 = scmp.ne.s32.totalorder %s464_s25, %s3350_s18  ;;  %p3359_p9 = scmp.lt.s32.totalorder %s3350_s18, %s3350_s18 }
  0x8a   : > { %p3353_p2 = pnand %p3351_p0, %p3693_p8  ;;  %p3360_p4 = por %p3359_p9, %p3358_p7 }
  0x8c   : > { %p3354_p5 = pneg %p3353_p2 }
  0x8e   : > { %p3361_p10 = pnand %p3360_p4, %p3354_p5 }
  0x90   : > { %3364 = shalt.err (!%p3361_p10)
}
  0x91   : > { %s4345_s19 = smov 8   ;;  %s4346_s16 = smov 128  }
  0x92   : > { %2933 = dma.hbm_to_vmem [thread:$0]  (!%p3677_p6), %s4309_s6, 2048, %s464_s25, [#allocation9], %s4346_s16, %s4346_s16, %s4345_s19  }
  0x93   : > { %s3544_s1 = smov [#allocation13]   ;;  %s3365_s26 = scalar_lea.hbm %s4315_s12, 4096 }
  0x94   : > { %s501_s20 = sshll.u32 %s3544_s1, 4  ;;  %p3366_p1 = scmp.ne.s32.totalorder %s4315_s12, %s3365_s26  ;;  %s502_s20 = int_to_ptr.vmem [resolvable:$true] %s501_s20 }
  0x95   : > { %p3372_p12 = scmp.lt.u32.totalorder %s3365_s26, %s4315_s12 }
  0x96   : > { %p3368_p3 = pnand %p3366_p1, %p3693_p8 }
  0x98   : > { %p3369_p11 = pneg %p3368_p3 }
  0x9a   : > { %p3374_p13 = pnand %p3372_p12, %p3369_p11 }
  0x9c   : > { %3377 = shalt.err (!%p3374_p13)
}
  0x9d   : > { %s3378_s25 = scalar_lea.vmem %s502_s20, 4096  ;;  %p3386_p7 = scmp.lt.s32.totalorder %s502_s20, %s502_s20 }
  0x9e   : > { %p3379_p0 = scmp.ne.s32.totalorder %s502_s20, %s3378_s25  ;;  %p3387_p9 = scmp.lt.s32.totalorder %s3378_s25, %s3378_s25 }
  0xa0   : > { %p3381_p2 = pnand %p3379_p0, %p3693_p8  ;;  %p3388_p4 = por %p3387_p9, %p3386_p7 }
  0xa2   : > { %p3382_p5 = pneg %p3381_p2 }
  0xa4   : > { %p3389_p10 = pnand %p3388_p4, %p3382_p5 }
  0xa6   : > { %3392 = shalt.err (!%p3389_p10)
}
  0xa7   : > { %s3545_s19 = smov 256   ;;  %s3546_s16 = smov 16  }
  0xa8   : > { %2939 = dma.hbm_to_vmem [thread:$0]  (!%p3677_p6), %s4315_s12, 4096, %s502_s20, [#allocation12], %s3545_s19, %s3545_s19, %s3546_s16  }
  0xa9   : > { %s3547_s11 = smov [#allocation14]   ;;  %s3393_s26 = scalar_lea.hbm %s4317_s14, 4096 }
  0xaa   : > { %s517_s1 = sshll.u32 %s3547_s11, 4  ;;  %p3394_p1 = scmp.ne.s32.totalorder %s4317_s14, %s3393_s26  ;;  %s518_s1 = int_to_ptr.vmem [resolvable:$true] %s517_s1 }
  0xab   : > { %p3400_p12 = scmp.lt.u32.totalorder %s3393_s26, %s4317_s14 }
  0xac   : > { %p3396_p3 = pnand %p3394_p1, %p3693_p8 }
  0xae   : > { %p3397_p11 = pneg %p3396_p3 }
  0xb0   : > { %p3402_p13 = pnand %p3400_p12, %p3397_p11 }
  0xb2   : > { %3405 = shalt.err (!%p3402_p13)
}
  0xb3   : > { %s3406_s20 = scalar_lea.vmem %s518_s1, 4096  ;;  %p3414_p7 = scmp.lt.s32.totalorder %s518_s1, %s518_s1 }
  0xb4   : > { %p3407_p0 = scmp.ne.s32.totalorder %s518_s1, %s3406_s20  ;;  %p3415_p9 = scmp.lt.s32.totalorder %s3406_s20, %s3406_s20 }
  0xb6   : > { %p3409_p2 = pnand %p3407_p0, %p3693_p8  ;;  %p3416_p4 = por %p3415_p9, %p3414_p7 }
  0xb8   : > { %p3410_p5 = pneg %p3409_p2 }
  0xba   : > { %p3417_p10 = pnand %p3416_p4, %p3410_p5 }
  0xbc   : > { %3420 = shalt.err (!%p3417_p10)
}
  0xbd   : > { %s4347_s19 = smov 64   ;;  %s2609_s0 = sadd.s32 4294967294, %s3533_s24  }
  0xbe   : > { %2942 = dma.hbm_to_vmem [thread:$0]  (!%p3677_p6), %s4317_s14, 4096, %s518_s1, [#allocation15], %s4347_s19, %s4347_s19, %s4328_s5  }
  0xbf   : > { %s3845_s29 = sadd.s32 1, %s3533_s24   ;;  %s43_s13 = sadd.s32 1, %s3529_s23 }
  0xc0   : > { %s40_s11 = ssub.s32 %s3533_s24, %s3845_s29  ;;  %p50_p8 = scmp.ne.s32.totalorder %s3529_s23, %s3525_s22 }
  0xc1   : > { %p41_p1 = scmp.eq.s32.totalorder %s40_s11, 0  ;;  %p51_p3 = scmp.eq.s32.totalorder %s3533_s24, 0 }
  0xc2   : > { %p56_p11 = scmp.ne.s32.totalorder %s3525_s22, %s3521_s21  ;;  %p395_p12 = scmp.eq.s32.totalorder %s3661_s27, 1 }
  0xc3   : > { %s3857_s17 = scalar_select %p41_p1, %s3529_s23, %s43_s13  }
  0xc4   : > { %p52_p13 = por %p51_p3, %p50_p8  ;;  %p4348_p0 = scmp.eq.s32.totalorder %s3661_s27, 0 }
  0xc5   : > { %p3865_p6 = por %p395_p12, %p50_p8  ;;  %p401_p5 = scmp.eq.s32.totalorder %s2609_s0, 1 }
  0xc6   : > { %p3861_p2 = por %p4348_p0, %p56_p11  ;;  %p2958_p7 = scmp.lt.s32.totalorder %s3533_s24, 2 }
  0xc7   : > { %s4350_s1 = scalar_select %p3865_p6, 1, 0 }
  0xc8   : > { %s534_s26 = sand.u32 1, %s3529_s23   ;;  %p3871_p9 = por %p401_p5, %p56_p11 }
  0xc9   : > { %s2619_s30 = sshll.u32 %s534_s26, 4  ;;  %s2745_s18 = sshll.u32 %s3533_s24, 8 }
  0xca   : > { %s4351_s9 = scalar_select %p3871_p9, 1, 0 }
  0xcb   : > { %s4352_s16 = sld [smem:[#allocation23_spill]]  ;;  %s538_s13 = scalar_lea.vmem [#allocation2], %s2619_s30 }
  0xcc   : > { %s546_s11 = sshll.u32 %s538_s13, 4  ;;  %p3881_p4 = pnand %p2958_p7, %p52_p13  ;;  %s3885_s11 = int_to_ptr.vmem [resolvable:$true] %s546_s11 }
  0xcd   : > { %s3887_s5 = scalar_lea.sflag [#allocation3], %s534_s26 }
  0xce   : > { %p3423_p8 = pneg %p3881_p4 }
  0xd1   : > { %s3879_s10 = scalar_lea.hbm %s4352_s16, %s2745_s18  ;;  %s3426_s25 = scalar_lea.hbm %s4352_s16, 512 }
  0xd2   : > { %s3421_s3 = scalar_lea.hbm %s3879_s10, 256  ;;  %p3427_p11 = scmp.lt.u32.totalorder %s3879_s10, %s4352_s16 }
  0xd3   : > { %p3422_p10 = scmp.ne.s32.totalorder %s3879_s10, %s3421_s3  ;;  %p3428_p12 = scmp.lt.u32.totalorder %s3426_s25, %s3421_s3 }
  0xd4   : > { %p3430_p0 = scmp.lt.u32.totalorder %s3421_s3, %s3879_s10 }
  0xd5   : > { %p3424_p1 = pnand %p3423_p8, %p3422_p10  ;;  %p3429_p13 = por %p3428_p12, %p3427_p11 }
  0xd7   : > { %p3425_p3 = pneg %p3424_p1  ;;  %p3431_p5 = por %p3430_p0, %p3429_p13 }
  0xd9   : > { %p3432_p7 = pnand %p3431_p5, %p3425_p3 }
  0xdb   : > { %3435 = shalt.err (!%p3432_p7)
}
  0xdc   : > { %s3436_s26 = scalar_lea.vmem %s3885_s11, 256  ;;  %s3548_s30 = smov [#allocation2]  }
  0xdd   : > { %p3437_p10 = scmp.ne.s32.totalorder %s3885_s11, %s3436_s26  ;;  %s3441_s18 = sshll.u32 %s3548_s30, 4  ;;  %s3442_s18 = int_to_ptr.vmem [resolvable:$false] %s3441_s18 }
  0xde   : > { %s3443_s20 = scalar_lea.vmem %s3442_s18, 512  ;;  %p3444_p6 = scmp.lt.s32.totalorder %s3885_s11, %s3442_s18 }
  0xdf   : > { %p3439_p1 = pnand %p3437_p10, %p3423_p8  ;;  %p3445_p11 = scmp.lt.s32.totalorder %s3443_s20, %s3436_s26 }
  0xe1   : > { %p3440_p9 = pneg %p3439_p1  ;;  %p3446_p12 = por %p3445_p11, %p3444_p6 }
  0xe3   : > { %p3447_p13 = pnand %p3446_p12, %p3440_p9 }
  0xe5   : > { %3450 = shalt.err (!%p3447_p13)
}
  0xe6   : > { %s4354_s3 = smov 4   ;;  %p4355_p8 = scmp.ne.s32.totalorder %s4340_s28, 0 }
  0xe7   : > { %2946 = dma.hbm_to_vmem [thread:$0]  (!%p3881_p4), %s3879_s10, 256, %s3885_s11, %s3887_s5, %s4347_s19, %s4347_s19, %s4354_s3  }
  0xe8   : > { %558 = sbr.rel (%p4355_p8) target bundleno = 2623 (0xa3f), region = 84  ;;  %s3921_s25 = sand.u32 (!%p4355_p8), 1, %s3525_s22  }
  0xe9   : > { %s2624_s13 = sshll.u32 (!%p4355_p8), %s3921_s25, 4  ;;  %s561_s26 = scalar_lea.sflag (!%p4355_p8), [#allocation3], %s3921_s25 }
  0xea   : > { %s564_s0 = scalar_lea.vmem (!%p4355_p8), [#allocation2], %s2624_s13 }
  0xef   : > { %3496 = dma.done.wait (%p3861_p2), %s561_s26, 256  }
  0xf0   : > { %3498 = vsyncadd (%p3861_p2), %s561_s26, 4294967040  ;;  %p4356_p6 = scmp.eq.s32.totalorder %s3661_s27, 0 }
  0xf2   : > { %3500 = dma.done.wait (%p4356_p6), [#allocation6], 272   ;;  %p4357_p9 = pmov %p4356_p6 }
  0xf3   : > { %p4358_p4 = pmov %p4356_p6 }
  0xf4   : > { %3502 = vsyncadd (%p4357_p9), [#allocation6], 4294967024 }
  0xf5   : > { %3504 = dma.done.wait (%p4358_p4), [#allocation9], 2560   ;;  %p4359_p3 = pmov %p4358_p4 }
  0xf7   : > { %3506 = vsyncadd (%p4359_p3), [#allocation9], 4294964736  ;;  %p4360_p0 = pmov %p4359_p3 }
  0xf9   : > { %3508 = dma.done.wait (%p4360_p0), [#allocation12], 5120   ;;  %p4361_p5 = pmov %p4360_p0 }
  0xfa   : > { %p4362_p2 = pmov %p4360_p0 }
  0xfb   : > { %3510 = vsyncadd (%p4361_p5), [#allocation12], 4294962176 }
  0xfc   : > { %3512 = dma.done.wait (%p4362_p2), [#allocation15], 4096   ;;  %p4363_p7 = pmov %p4360_p0 }
  0xfd   : > { %v2748_v0 = vld [vmem:[%s564_s0] sm:$0xff]   ;;  %v2755_v2 = vld [vmem:[%s564_s0 + $0x8] sm:$0xff]   ;;  %v3549_v41 = vmov 0   ;;  %vm1054_vm0 = vcmask 130048   ;;  %vm3551_vm1 = vmmov 0   ;;  %s4364_s30 = sld [smem:[#allocation26_spill]] }
  0xfe   : > { %3514 = vsyncadd (%p4363_p7), [#allocation15], 4294963200  ;;  %v652_v1 = vld [vmem:[#allocation5] sm:$0xff]  ;;  %v2749_v3 = vunpack.c.l.bf16 %v2748_v0  ;;  %v2753_v4 = vunpack.c.l.bf16 %v2755_v2  ;;  %v2750_v5 = vunpack.c.h.bf16 %v2748_v0  ;;  %v653_v6 = vld [vmem:[#allocation5 + $0x8] sm:$0xff]  ;;  %v2754_v7 = vunpack.c.h.bf16 %v2755_v2  ;;  %867 = vmatprep.mubr.bf16.mxu0 %v3549_v41  ;;  %s4365_s3 = sld [smem:[#allocation27_spill]]  ;;  %s4366_s28 = sld [smem:[#allocation28_spill]] }
  0xff   : > { %v3017_v12 = vld [vmem:[#allocation10 + $0x4] ss:$8 sps:$4 sm:$0xff]   ;;  %v3019_v13 = vld [vmem:[#allocation10] ss:$8 sps:$4 sm:$0xff]   ;;  %v3020_v14 = vld [vmem:[#allocation10 + $0x14] ss:$8 sps:$4 sm:$0xff]  }
 0x100   : > { %v654_v8 = vadd.f32 %v2749_v3, %v652_v1  ;;  %v656_v9 = vadd.f32 %v2753_v4, %v652_v1  ;;  %v655_v10 = vadd.f32 %v2750_v5, %v653_v6  ;;  %v657_v11 = vadd.f32 %v2754_v7, %v653_v6  ;;  %835 = vmatprep.subr.bf16.mxu0 %v3017_v12  ;;  %v3022_v31 = vld [vmem:[#allocation10 + $0x10] ss:$8 sps:$4 sm:$0xff]   ;;  %v3023_v32 = vld [vmem:[#allocation10 + $0x24] ss:$8 sps:$4 sm:$0xff]   ;;  %v3025_v33 = vld [vmem:[#allocation10 + $0x20] ss:$8 sps:$4 sm:$0xff]  }
 0x101   : > { %836 = vmatpush1.bf16.msra.mxu0 %v3019_v13  ;;  %v3026_v34 = vld [vmem:[#allocation10 + $0x34] ss:$8 sps:$4 sm:$0xff]   ;;  %v3028_v35 = vld [vmem:[#allocation10 + $0x30] ss:$8 sps:$4 sm:$0xff]   ;;  %v3029_v36 = vld [vmem:[#allocation10 + $0x44] ss:$8 sps:$4 sm:$0xff]  }
 0x102   : > { %658 = vadd.xlane.f32.xlu0 %v654_v8  ;;  %662 = vadd.xlane.f32.xlu1 %v656_v9  ;;  %v3031_v37 = vld [vmem:[#allocation10 + $0x40] ss:$8 sps:$4 sm:$0xff]   ;;  %v3032_v38 = vld [vmem:[#allocation10 + $0x54] ss:$8 sps:$4 sm:$0xff]   ;;  %v3034_v39 = vld [vmem:[#allocation10 + $0x50] ss:$8 sps:$4 sm:$0xff]  }
 0x103   : > { %837 = vmatprep.subr.bf16.mxu0 %v3020_v14  ;;  %v3035_v40 = vld [vmem:[#allocation10 + $0x64] ss:$8 sps:$4 sm:$0xff]   ;;  %v3037_v42 = vld [vmem:[#allocation10 + $0x60] ss:$8 sps:$4 sm:$0xff]   ;;  %v3038_v43 = vld [vmem:[#allocation10 + $0x74] ss:$8 sps:$4 sm:$0xff]   ;;  %v745_v14 = vlaneseq }
 0x104   : > { %v3040_v44 = vld [vmem:[#allocation10 + $0x70] ss:$8 sps:$4 sm:$0xff]   ;;  %v2633_v59 = vld [vmem:[%s4305_s2] ss:$0 sm:$0xff]  ;;  %v2634_v0 = vld [vmem:[#allocation7] ss:$0 sm:$0xff] }
 0x105   : > { %838 = vmatpush1.bf16.msra.mxu0 %v3022_v31  ;;  %v3041_v13 = vld [vmem:[#allocation8] sm:$0xff]   ;;  %vm1577_vm2 = vcmask 1041409   ;;  %vm1579_vm3 = vcmask 1042434   ;;  %vm1581_vm4 = vcmask 1043459   ;;  %vm1583_vm5 = vcmask 1044484   ;;  %s4367_s15 = sld [smem:[#allocation29_spill]] }
 0x106   : > { %660 = vadd.xlane.f32.xlu0 %v655_v10  ;;  %664 = vadd.xlane.f32.xlu1 %v657_v11  ;;  %vm1585_vm6 = vcmask 1045509   ;;  %vm1587_vm7 = vcmask 1046534   ;;  %vm1589_vm8 = vcmask 1047559   ;;  %s640_s26 = scalar_lea.vmem [#allocation16], %s2624_s13  ;;  %s2456_s13 = scalar_lea.sflag [#allocation4], %s3921_s25 }
 0x107   : > { %839 = vmatprep.subr.bf16.mxu0 %v3023_v32  ;;  %2841 = vmatprep.mubr.bf16.mxu1 %v3041_v13  ;;  %s2469_s0 = sshll.u32 %s640_s26, 4  ;;  %p4371_p1 = scmp.ne.s32.totalorder %s4350_s1, 0  ;;  %s4253_s0 = int_to_ptr.vmem [resolvable:$true] %s2469_s0 }
 0x108   : > { %s3451_s11 = scalar_lea.vmem %s4253_s0, 256 }
 0x109   : > { %840 = vmatpush1.bf16.msra.mxu0 %v3025_v33  ;;  %p3452_p10 = scmp.ne.s32.totalorder %s4253_s0, %s3451_s11 }
 0x10a   : > { %841 = vmatprep.subr.bf16.mxu0 %v3026_v34 }
 0x10b   : > { %p3453_p11 = pnand %p3452_p10, %p4371_p1 }
 0x10d   : > { %842 = vmatpush1.bf16.msra.mxu0 %v3028_v35  ;;  %p3454_p12 = pneg %p3453_p11 }
 0x10e   : > { %843 = vmatprep.subr.bf16.mxu0 %v3029_v36 }
 0x111   : > { %844 = vmatpush1.bf16.msra.mxu0 %v3031_v37  ;;  %v3042_v37 = vld [vmem:[#allocation8 + $0x8] sm:$0xff]  }
 0x112   : > { %845 = vmatprep.subr.bf16.mxu0 %v3032_v38 }
 0x115   : > { %846 = vmatpush1.bf16.msra.mxu0 %v3034_v39 }
 0x116   : > { %847 = vmatprep.subr.bf16.mxu0 %v3035_v40 }
 0x119   : > { %848 = vmatpush1.bf16.msra.mxu0 %v3037_v42 }
 0x11a   : > { %849 = vmatprep.subr.bf16.mxu0 %v3038_v43  ;;  %v3043_v43 = vld [vmem:[#allocation8 + $0x10] sm:$0xff]  }
 0x11d   : > { %850 = vmatpush1.bf16.msra.mxu0 %v3040_v44  ;;  %v3044_v44 = vld [vmem:[#allocation8 + $0x18] sm:$0xff]  }
 0x18f   : > { %v659_v15 = vpop.xlane.xlu0 %658  ;;  %v663_v16 = vpop.xlane.xlu1 %662 }
 0x190   : > { %v667_v17 = vmul.f32 0.0078125, %v659_v15  ;;  %v669_v18 = vmul.f32 0.0078125, %v663_v16  ;;  %v3962_v15 = vshrl.u32 %v745_v14, 7 }
 0x192   : > { %v671_v19 = vsub.f32 %v654_v8, %v667_v17  ;;  %v3947_v20 = vsub.f32 %v656_v9, %v669_v18  ;;  %v747_v16 = vsub.s32 0, %v3962_v15  ;;  %v743_v17 = vld [vmem:[%s4310_s7] sm:$0x3]  ;;  %v751_v18 = vsub.s32 1, %v3962_v15 }
 0x193   : > { %v661_v21 = vpop.xlane.xlu0 %660  ;;  %v665_v22 = vpop.xlane.xlu1 %664 }
 0x194   : > { %v668_v23 = vmul.f32 0.0078125, %v661_v21  ;;  %v675_v24 = vmul.f32 %v671_v19, %v671_v19  ;;  %v670_v25 = vmul.f32 0.0078125, %v665_v22  ;;  %v677_v28 = vmul.f32 %v3947_v20, %v3947_v20 }
 0x195   : > { %v752_v21 = vrot.slane %v743_v17, %v751_v18 }
 0x196   : > { %v672_v26 = vsub.f32 %v655_v10, %v668_v23  ;;  %679 = vadd.xlane.f32.xlu0 %v675_v24  ;;  %v3949_v27 = vsub.f32 %v657_v11, %v670_v25 }
 0x198   : > { %v676_v29 = vmul.f32 %v672_v26, %v672_v26  ;;  %v678_v30 = vmul.f32 %v3949_v27, %v3949_v27 }
 0x19a   : > { %683 = vadd.xlane.f32.xlu0 %v677_v28  ;;  %681 = vadd.xlane.f32.xlu1 %v676_v29 }
 0x19e   : > { %685 = vadd.xlane.f32.xlu1 %v678_v30 }
 0x223   : > { %v680_v45 = vpop.xlane.xlu0 %679 }
 0x224   : > { %v687_v46 = vmul.f32 0.0078125, %v680_v45 }
 0x226   : > { %v691_v47 = vadd.f32 1e-06, %v687_v46 }
 0x227   : > { %v682_v48 = vpop.xlane.xlu1 %681  ;;  %v684_v49 = vpop.xlane.xlu0 %683 }
 0x228   : > { %3133 = vrsqrt.f32 %v691_v47  ;;  %v688_v50 = vmul.f32 0.0078125, %v682_v48  ;;  %v689_v51 = vmul.f32 0.0078125, %v684_v49 }
 0x22a   : > { %v692_v52 = vadd.f32 1e-06, %v688_v50  ;;  %v693_v53 = vadd.f32 1e-06, %v689_v51 }
 0x22b   : > { %v686_v54 = vpop.xlane.xlu1 %685 }
 0x22c   : > { %3135 = vrsqrt.f32 %v692_v52  ;;  %v690_v55 = vmul.f32 0.0078125, %v686_v54 }
 0x22d   : > { %3137 = vrsqrt.f32 %v693_v53 }
 0x22e   : > { %v694_v56 = vadd.f32 1e-06, %v690_v55 }
 0x230   : > { %3139 = vrsqrt.f32 %v694_v56 }
 0x232   : > { %v3134_v57 = vpop.eup %3133 }
 0x233   : > { %v699_v58 = vmul.f32 %v3134_v57, %v671_v19  ;;  %v748_v19 = vrot.slane %v743_v17, %v747_v16 }
 0x235   : > { %v710_v62 = vmul.f32 %v2633_v59, %v699_v58 }
 0x236   : > { %v3136_v60 = vpop.eup %3135 }
 0x237   : > { %v700_v61 = vmul.f32 %v3136_v60, %v672_v26  ;;  %v3138_v63 = vpop.eup %3137  ;;  %v721_v3 = vadd.f32 %v2634_v0, %v710_v62 }
 0x238   : > { %v701_v5 = vmul.f32 %v3138_v63, %v3947_v20 }
 0x239   : > { %v711_v1 = vmul.f32 %v2633_v59, %v700_v61 }
 0x23a   : > { %v3140_v2 = vpop.eup %3139  ;;  %v712_v9 = vmul.f32 %v2633_v59, %v701_v5 }
 0x23b   : > { %v722_v4 = vadd.f32 %v2634_v0, %v711_v1  ;;  %v702_v6 = vmul.f32 %v3140_v2, %v3949_v27 }
 0x23c   : > { %v723_v11 = vadd.f32 %v2634_v0, %v712_v9 }
 0x23d   : > { %v725_v7 = vpack.c.bf16 %v722_v4, %v721_v3  ;;  %v713_v8 = vmul.f32 %v2633_v59, %v702_v6 }
 0x23f   : > { %868 = vmatmul.mubr.bf16.vlgmr.msra.gmra.mrb[0].mxu0 %v725_v7  ;;  %v724_v10 = vadd.f32 %v2634_v0, %v713_v8 }
 0x240   : > { %877 = vmatprep.mubr.bf16.mxu0 %v3549_v41 }
 0x241   : > { %v726_v12 = vpack.c.bf16 %v724_v10, %v723_v11 }
 0x247   : > { %878 = vmatmul.mubr.bf16.gmra.mrb[4].mxu0 %v726_v12 }
 0x248   : > { %2831 = vmatprep.mubr.bf16.mxu0 %v3041_v13 }
 0x312   : > { %v869_v20 = vpop.f32.mrb[0].mxu0 }
 0x313   : > { %v871_v22 = vpop.f32.mrb[1].mxu0  ;;  %v870_v24 = vadd.f32 %v869_v20, %v748_v19 }
 0x314   : > { %v873_v23 = vpop.f32.mrb[2].mxu0  ;;  %v872_v27 = vadd.f32 %v871_v22, %v752_v21 }
 0x315   : > { %v874_v25 = vadd.f32 %v873_v23, %v748_v19  ;;  %v875_v26 = vpop.f32.mrb[3].mxu0 }
 0x316   : > { %v876_v28 = vadd.f32 %v875_v26, %v752_v21 }
 0x317   : > { %v888_v29 = vpack.c.bf16 %v874_v25, %v870_v24 }
 0x318   : > { %v890_v30 = vpack.c.bf16 %v876_v28, %v872_v27 }
 0x319   : > { %2829 = vmatprep.subr.bf16.mxu0 %v888_v29 }
 0x31a   : > { %v879_v31 = vpop.f32.mrb[4].mxu0  ;;  %2830 = vmatpush3.bf16.xpose.msra.mxu0 %v888_v29 }
 0x31b   : > { %v881_v32 = vpop.f32.mrb[5].mxu0  ;;  %v880_v34 = vadd.f32 %v879_v31, %v748_v19 }
 0x31c   : > { %v883_v33 = vpop.f32.mrb[6].mxu0  ;;  %v882_v38 = vadd.f32 %v881_v32, %v752_v21 }
 0x31d   : > { %v884_v35 = vadd.f32 %v883_v33, %v748_v19  ;;  %v885_v36 = vpop.f32.mrb[7].mxu0 }
 0x31e   : > { %v886_v39 = vadd.f32 %v885_v36, %v752_v21 }
 0x31f   : > { %v889_v40 = vpack.c.bf16 %v884_v35, %v880_v34 }
 0x320   : > { %v891_v42 = vpack.c.bf16 %v886_v39, %v882_v38 }
 0x321   : > { %2832 = vmatmul.mubr.bf16.vlgmr.msra.gmra.mrb[8].mxu0 %v3042_v37  ;;  %2839 = vmatprep.subr.bf16.mxu1 %v889_v40 }
 0x322   : > { %2840 = vmatpush3.bf16.xpose.msra.mxu1 %v889_v40  ;;  %2859 = vmatprep.subr.bf16.mxu0 %v891_v42 }
 0x323   : > { %2849 = vmatprep.subr.bf16.mxu1 %v890_v30  ;;  %2860 = vmatpush3.bf16.msra.mxu0 %v891_v42 }
 0x324   : > { %2835 = vmatprep.mubr.bf16.mxu0 %v3043_v43 }
 0x329   : > { %2842 = vmatmul.mubr.bf16.vlgmr.msra.gmra.mrb[0].mxu1 %v3042_v37  ;;  %2836 = vmatmul.mubr.bf16.gmra.mrb[12].mxu0 %v3044_v44 }
 0x32a   : > { %2850 = vmatpush3.bf16.msra.mxu1 %v890_v30  ;;  %2845 = vmatprep.mubr.bf16.mxu1 %v3043_v43 }
 0x331   : > { %2846 = vmatmul.mubr.bf16.gmra.mrb[4].mxu1 %v3044_v44 }
 0x3f4   : > { %v2833_v45 = vpop.f32.mrb[8].mxu0 }
 0x3f5   : > { %v958_v46 = vpop.f32.mrb[9].mxu0  ;;  %v1061_v47 = vsel %vm1054_vm0, %v2833_v45, -inf }
 0x3f6   : > { %1062 = vmax.xlane.f32.xlu0 %v1061_v47  ;;  %v2834_v48 = vpop.f32.mrb[10].mxu0  ;;  %v1055_v51 = vsel %vm1054_vm0, %v958_v46, -inf }
 0x3f7   : > { %v1064_v49 = vsel %vm1054_vm0, %v2834_v48, -inf  ;;  %v961_v50 = vpop.f32.mrb[11].mxu0 }
 0x3f8   : > { %1065 = vmax.xlane.f32.xlu1 %v1064_v49  ;;  %v1058_v52 = vsel %vm1054_vm0, %v961_v50, -inf }
 0x3fa   : > { %1056 = vmax.xlane.f32.xlu0 %v1055_v51 }
 0x3fc   : > { %1059 = vmax.xlane.f32.xlu1 %v1058_v52  ;;  %v2843_v53 = vpop.f32.mrb[0].mxu1  ;;  %v3977_v54 = vpop.f32.mrb[12].mxu0 }
 0x3fd   : > { %v3979_v55 = vpop.f32.mrb[1].mxu1  ;;  %v1085_v56 = vsel %vm1054_vm0, %v2843_v53, -inf  ;;  %v3982_v57 = vpop.f32.mrb[13].mxu0  ;;  %v1073_v61 = vsel %vm1054_vm0, %v3977_v54, -inf }
 0x3fe   : > { %1086 = vmax.xlane.f32.xlu0 %v1085_v56  ;;  %v2844_v58 = vpop.f32.mrb[2].mxu1  ;;  %v3984_v59 = vpop.f32.mrb[14].mxu0  ;;  %v1079_v2 = vsel %vm1054_vm0, %v3979_v55, -inf  ;;  %v1067_v7 = vsel %vm1054_vm0, %v3982_v57, -inf }
 0x3ff   : > { %v1088_v60 = vsel %vm1054_vm0, %v2844_v58, -inf  ;;  %v3989_v62 = vpop.f32.mrb[3].mxu1  ;;  %v3991_v63 = vpop.f32.mrb[15].mxu0  ;;  %v1076_v0 = vsel %vm1054_vm0, %v3984_v59, -inf }
 0x400   : > { %1089 = vmax.xlane.f32.xlu1 %v1088_v60  ;;  %v1082_v5 = vsel %vm1054_vm0, %v3989_v62, -inf  ;;  %v1070_v8 = vsel %vm1054_vm0, %v3991_v63, -inf }
 0x402   : > { %1074 = vmax.xlane.f32.xlu0 %v1073_v61 }
 0x404   : > { %1077 = vmax.xlane.f32.xlu1 %v1076_v0  ;;  %v3995_v1 = vpop.f32.mrb[4].mxu1 }
 0x405   : > { %v3999_v3 = vpop.f32.mrb[5].mxu1  ;;  %v1097_v11 = vsel %vm1054_vm0, %v3995_v1, -inf }
 0x406   : > { %1080 = vmax.xlane.f32.xlu0 %v1079_v2  ;;  %v4001_v4 = vpop.f32.mrb[6].mxu1  ;;  %v1091_v9 = vsel %vm1054_vm0, %v3999_v3, -inf }
 0x407   : > { %v4005_v6 = vpop.f32.mrb[7].mxu1  ;;  %v1100_v12 = vsel %vm1054_vm0, %v4001_v4, -inf }
 0x408   : > { %1083 = vmax.xlane.f32.xlu1 %v1082_v5  ;;  %v1094_v10 = vsel %vm1054_vm0, %v4005_v6, -inf }
 0x40a   : > { %1068 = vmax.xlane.f32.xlu0 %v1067_v7 }
 0x40c   : > { %1071 = vmax.xlane.f32.xlu1 %v1070_v8 }
 0x40e   : > { %1092 = vmax.xlane.f32.xlu0 %v1091_v9 }
 0x410   : > { %1095 = vmax.xlane.f32.xlu1 %v1094_v10 }
 0x412   : > { %1098 = vmax.xlane.f32.xlu0 %v1097_v11 }
 0x414   : > { %1101 = vmax.xlane.f32.xlu1 %v1100_v12 }
 0x483   : > { %v1063_v13 = vpop.xlane.xlu0 %1062 }
 0x484   : > { %v1105_v14 = vsub.f32 %v2833_v45, %v1063_v13 }
 0x485   : > { %v1066_v17 = vpop.xlane.xlu1 %1065 }
 0x486   : > { %v1123_v19 = vmul.f32 1.442695, %v1105_v14  ;;  %v1106_v20 = vsub.f32 %v2834_v48, %v1066_v17 }
 0x487   : > { %v1057_v21 = vpop.xlane.xlu0 %1056 }
 0x488   : > { %3141 = vpow2.f32 %v1123_v19  ;;  %v1125_v22 = vmul.f32 1.442695, %v1106_v20  ;;  %v1103_v23 = vsub.f32 %v958_v46, %v1057_v21 }
 0x489   : > { %v1060_v24 = vpop.xlane.xlu1 %1059 }
 0x48a   : > { %3143 = vpow2.f32 %v1125_v22  ;;  %v1119_v25 = vmul.f32 1.442695, %v1103_v23  ;;  %v1104_v26 = vsub.f32 %v961_v50, %v1060_v24 }
 0x48b   : > { %v1087_v27 = vpop.xlane.xlu0 %1086 }
 0x48c   : > { %3145 = vpow2.f32 %v1119_v25  ;;  %v1121_v28 = vmul.f32 1.442695, %v1104_v26  ;;  %v1113_v29 = vsub.f32 %v2843_v53, %v1087_v27 }
 0x48d   : > { %v1090_v30 = vpop.xlane.xlu1 %1089 }
 0x48e   : > { %3147 = vpow2.f32 %v1121_v28  ;;  %v1139_v31 = vmul.f32 1.442695, %v1113_v29  ;;  %v1114_v32 = vsub.f32 %v2844_v58, %v1090_v30 }
 0x48f   : > { %v1075_v33 = vpop.xlane.xlu0 %1074 }
 0x490   : > { %3149 = vpow2.f32 %v1139_v31  ;;  %v1141_v34 = vmul.f32 1.442695, %v1114_v32  ;;  %v1109_v35 = vsub.f32 %v3977_v54, %v1075_v33 }
 0x491   : > { %v1078_v36 = vpop.xlane.xlu1 %1077 }
 0x492   : > { %v4020_v37 = vpop.eup %3141  ;;  %3151 = vpow2.f32 %v1141_v34  ;;  %v1131_v38 = vmul.f32 1.442695, %v1109_v35  ;;  %v1110_v39 = vsub.f32 %v3984_v59, %v1078_v36 }
 0x493   : > { %v1081_v40 = vpop.xlane.xlu0 %1080  ;;  %v1157_v42 = vsel %vm1054_vm0, %v4020_v37, 0.0 }
 0x494   : > { %v4025_v43 = vpop.eup %3143  ;;  %3153 = vpow2.f32 %v1131_v38  ;;  %v1133_v44 = vmul.f32 1.442695, %v1110_v39  ;;  %v1111_v45 = vsub.f32 %v3979_v55, %v1081_v40  ;;  %1158 = vadd.xlane.f32.xlu0 %v1157_v42 }
 0x495   : > { %v1084_v46 = vpop.xlane.xlu1 %1083  ;;  %v1160_v47 = vsel %vm1054_vm0, %v4025_v43, 0.0 }
 0x496   : > { %v4030_v48 = vpop.eup %3145  ;;  %3155 = vpow2.f32 %v1133_v44  ;;  %v1135_v49 = vmul.f32 1.442695, %v1111_v45  ;;  %v1112_v50 = vsub.f32 %v3989_v62, %v1084_v46  ;;  %1161 = vadd.xlane.f32.xlu1 %v1160_v47 }
 0x497   : > { %v1069_v51 = vpop.xlane.xlu0 %1068  ;;  %v1151_v52 = vsel %vm1054_vm0, %v4030_v48, 0.0 }
 0x498   : > { %v4035_v53 = vpop.eup %3147  ;;  %3157 = vpow2.f32 %v1135_v49  ;;  %v1137_v54 = vmul.f32 1.442695, %v1112_v50  ;;  %v1107_v55 = vsub.f32 %v3982_v57, %v1069_v51  ;;  %1152 = vadd.xlane.f32.xlu0 %v1151_v52 }
 0x499   : > { %v1072_v56 = vpop.xlane.xlu1 %1071  ;;  %v1154_v58 = vsel %vm1054_vm0, %v4035_v53, 0.0 }
 0x49a   : > { %v4040_v59 = vpop.eup %3149  ;;  %3159 = vpow2.f32 %v1137_v54  ;;  %v1127_v60 = vmul.f32 1.442695, %v1107_v55  ;;  %v1108_v61 = vsub.f32 %v3991_v63, %v1072_v56  ;;  %1155 = vadd.xlane.f32.xlu1 %v1154_v58 }
 0x49b   : > { %v1093_v62 = vpop.xlane.xlu0 %1092  ;;  %v1181_v0 = vsel %vm1054_vm0, %v4040_v59, 0.0 }
 0x49c   : > { %v4045_v2 = vpop.eup %3151  ;;  %3161 = vpow2.f32 %v1127_v60  ;;  %v1129_v57 = vmul.f32 1.442695, %v1108_v61  ;;  %v1115_v5 = vsub.f32 %v3999_v3, %v1093_v62  ;;  %1182 = vadd.xlane.f32.xlu0 %v1181_v0 }
 0x49d   : > { %v1096_v7 = vpop.xlane.xlu1 %1095  ;;  %v1184_v8 = vsel %vm1054_vm0, %v4045_v2, 0.0 }
 0x49e   : > { %v4050_v9 = vpop.eup %3153  ;;  %3163 = vpow2.f32 %v1129_v57  ;;  %v1143_v63 = vmul.f32 1.442695, %v1115_v5  ;;  %v1116_v10 = vsub.f32 %v4005_v6, %v1096_v7  ;;  %1185 = vadd.xlane.f32.xlu1 %v1184_v8 }
 0x49f   : > { %v1099_v11 = vpop.xlane.xlu0 %1098  ;;  %v1169_v12 = vsel %vm1054_vm0, %v4050_v9, 0.0 }
 0x4a0   : > { %v4055_v13 = vpop.eup %3155  ;;  %3165 = vpow2.f32 %v1143_v63  ;;  %v1145_v3 = vmul.f32 1.442695, %v1116_v10  ;;  %v1117_v14 = vsub.f32 %v3995_v1, %v1099_v11  ;;  %1170 = vadd.xlane.f32.xlu0 %v1169_v12 }
 0x4a1   : > { %v1102_v17 = vpop.xlane.xlu1 %1101  ;;  %v1172_v19 = vsel %vm1054_vm0, %v4055_v13, 0.0 }
 0x4a2   : > { %v4060_v20 = vpop.eup %3157  ;;  %3167 = vpow2.f32 %v1145_v3  ;;  %v1147_v6 = vmul.f32 1.442695, %v1117_v14  ;;  %v1118_v21 = vsub.f32 %v4001_v4, %v1102_v17  ;;  %1173 = vadd.xlane.f32.xlu1 %v1172_v19 }
 0x4a3   : > { %v1175_v22 = vsel %vm1054_vm0, %v4060_v20, 0.0 }
 0x4a4   : > { %v4065_v23 = vpop.eup %3159  ;;  %3169 = vpow2.f32 %v1147_v6  ;;  %v1149_v24 = vmul.f32 1.442695, %v1118_v21  ;;  %1176 = vadd.xlane.f32.xlu0 %v1175_v22 }
 0x4a5   : > { %v1178_v1 = vsel %vm1054_vm0, %v4065_v23, 0.0 }
 0x4a6   : > { %v4069_v25 = vpop.eup %3161  ;;  %3171 = vpow2.f32 %v1149_v24  ;;  %1179 = vadd.xlane.f32.xlu1 %v1178_v1 }
 0x4a7   : > { %v1163_v26 = vsel %vm1054_vm0, %v4069_v25, 0.0 }
 0x4a8   : > { %v4073_v4 = vpop.eup %3163  ;;  %1164 = vadd.xlane.f32.xlu0 %v1163_v26 }
 0x4a9   : > { %v1166_v27 = vsel %vm1054_vm0, %v4073_v4, 0.0 }
 0x4aa   : > { %v4077_v28 = vpop.eup %3165  ;;  %1167 = vadd.xlane.f32.xlu1 %v1166_v27 }
 0x4ab   : > { %v1187_v29 = vsel %vm1054_vm0, %v4077_v28, 0.0 }
 0x4ac   : > { %v4081_v30 = vpop.eup %3167  ;;  %1188 = vadd.xlane.f32.xlu0 %v1187_v29 }
 0x4ad   : > { %v1190_v31 = vsel %vm1054_vm0, %v4081_v30, 0.0 }
 0x4ae   : > { %v4085_v32 = vpop.eup %3169  ;;  %1191 = vadd.xlane.f32.xlu1 %v1190_v31 }
 0x4af   : > { %v1193_v33 = vsel %vm1054_vm0, %v4085_v32, 0.0 }
 0x4b0   : > { %v4089_v34 = vpop.eup %3171  ;;  %1194 = vadd.xlane.f32.xlu0 %v1193_v33 }
 0x4b1   : > { %v1196_v35 = vsel %vm1054_vm0, %v4089_v34, 0.0 }
 0x4b2   : > { %1197 = vadd.xlane.f32.xlu1 %v1196_v35 }
 0x521   : > { %v1159_v36 = vpop.xlane.xlu0 %1158 }
 0x523   : > { %v1162_v38 = vpop.xlane.xlu1 %1161 }
 0x524   : > { %3173 = vrcp.f32 %v1162_v38  ;;  %v3047_v38 = vld [vmem:[#allocation11 + $0x10] sm:$0xff]  }
 0x525   : > { %v1153_v39 = vpop.xlane.xlu0 %1152 }
 0x526   : > { %3175 = vrcp.f32 %v1153_v39  ;;  %v3048_v39 = vld [vmem:[#allocation11 + $0x18] sm:$0xff]  }
 0x527   : > { %3177 = vrcp.f32 %v1159_v36  ;;  %v1156_v40 = vpop.xlane.xlu1 %1155  ;;  %v3550_v36 = vmov 0.0  }
 0x528   : > { %3179 = vrcp.f32 %v1156_v40  ;;  %2869 = vmatprep.subr.bf16.mxu1 %v3550_v36  ;;  %v3051_v40 = vld [vmem:[#allocation11 + $0x30] sm:$0xff]  }
 0x529   : > { %v1183_v42 = vpop.xlane.xlu0 %1182 }
 0x52b   : > { %v1186_v44 = vpop.xlane.xlu1 %1185 }
 0x52c   : > { %3181 = vrcp.f32 %v1186_v44  ;;  %v4121_v44 = vld [vmem:[%s4364_s30] sm:$0xff]  ;;  %s4368_s30 = sld [smem:[#allocation30_spill]] }
 0x52d   : > { %v1171_v45 = vpop.xlane.xlu0 %1170 }
 0x52e   : > { %v3174_v46 = vpop.eup %3173 }
 0x52f   : > { %v1174_v47 = vpop.xlane.xlu1 %1173  ;;  %v1218_v54 = vmul.f32 %v3174_v46, %v4025_v43 }
 0x530   : > { %v3176_v49 = vpop.eup %3175 }
 0x531   : > { %v3178_v50 = vpop.eup %3177  ;;  %v1177_v51 = vpop.xlane.xlu0 %1176  ;;  %v1215_v56 = vmul.f32 %v3176_v49, %v4030_v48 }
 0x532   : > { %v3180_v52 = vpop.eup %3179  ;;  %3183 = vrcp.f32 %v1177_v51  ;;  %v1217_v60 = vmul.f32 %v3178_v50, %v4020_v37 }
 0x533   : > { %3185 = vrcp.f32 %v1183_v42  ;;  %v1180_v55 = vpop.xlane.xlu1 %1179  ;;  %v1216_v58 = vmul.f32 %v3180_v52, %v4035_v53  ;;  %v3052_v42 = vld [vmem:[#allocation11 + $0x38] sm:$0xff]  }
 0x534   : > { %3187 = vrcp.f32 %v1180_v55  ;;  %v1232_v0 = vpack.c.bf16 %v1218_v54, %v1217_v60 }
 0x535   : > { %3189 = vrcp.f32 %v1174_v47  ;;  %v1165_v61 = vpop.xlane.xlu0 %1164  ;;  %v1231_v62 = vpack.c.bf16 %v1216_v58, %v1215_v56 }
 0x536   : > { %3191 = vrcp.f32 %v1165_v61  ;;  %v3182_v48 = vpop.eup %3181 }
 0x537   : > { %3193 = vrcp.f32 %v1171_v45  ;;  %2851 = vmatprep.mubr.msk.bf16.mxu1 %vm1054_vm0, %v1231_v62  ;;  %v1168_v57 = vpop.xlane.xlu1 %1167  ;;  %v1226_v63 = vmul.f32 %v3182_v48, %v4045_v2 }
 0x538   : > { %3195 = vrcp.f32 %v1168_v57  ;;  %2852 = vmatmul.mubr.msk.bf16.vlgmr.msra.gmra.mrb[8].mxu1 %vm1054_vm0, %v1232_v0 }
 0x539   : > { %v1189_v43 = vpop.xlane.xlu0 %1188 }
 0x53a   : > { %3197 = vrcp.f32 %v1189_v43 }
 0x53b   : > { %v1192_v5 = vpop.xlane.xlu1 %1191 }
 0x53c   : > { %v3184_v53 = vpop.eup %3183  ;;  %3199 = vrcp.f32 %v1192_v5 }
 0x53d   : > { %v3186_v37 = vpop.eup %3185  ;;  %v1195_v7 = vpop.xlane.xlu0 %1194  ;;  %v1223_v12 = vmul.f32 %v3184_v53, %v4060_v20 }
 0x53e   : > { %v3188_v8 = vpop.eup %3187  ;;  %3201 = vrcp.f32 %v1195_v7  ;;  %v1225_v17 = vmul.f32 %v3186_v37, %v4040_v59 }
 0x53f   : > { %v3190_v10 = vpop.eup %3189  ;;  %v1198_v11 = vpop.xlane.xlu1 %1197  ;;  %v1224_v3 = vmul.f32 %v3188_v8, %v4065_v23 }
 0x540   : > { %v3192_v14 = vpop.eup %3191  ;;  %3203 = vrcp.f32 %v1198_v11  ;;  %v1236_v22 = vpack.c.bf16 %v1226_v63, %v1225_v17  ;;  %v1222_v24 = vmul.f32 %v3190_v10, %v4055_v13 }
 0x541   : > { %v3194_v19 = vpop.eup %3193  ;;  %v1235_v6 = vpack.c.bf16 %v1224_v3, %v1223_v12  ;;  %v1219_v2 = vmul.f32 %v3192_v14, %v4069_v25 }
 0x542   : > { %v3196_v21 = vpop.eup %3195  ;;  %v1221_v20 = vmul.f32 %v3194_v19, %v4050_v9 }
 0x543   : > { %2861 = vmatprep.mubr.msk.bf16.mxu0 %vm1054_vm0, %v1235_v6  ;;  %v1220_v1 = vmul.f32 %v3196_v21, %v4073_v4 }
 0x544   : > { %v3198_v26 = vpop.eup %3197  ;;  %2862 = vmatmul.mubr.msk.bf16.vlgmr.msra.gmra.mrb[16].mxu0 %vm1054_vm0, %v1236_v22  ;;  %v1234_v27 = vpack.c.bf16 %v1222_v24, %v1221_v20 }
 0x545   : > { %v1233_v23 = vpack.c.bf16 %v1220_v1, %v1219_v2  ;;  %v1227_v29 = vmul.f32 %v3198_v26, %v4077_v28  ;;  %v3045_v28 = vld [vmem:[#allocation11] sm:$0xff]  }
 0x546   : > { %v3200_v59 = vpop.eup %3199  ;;  %2870 = vmatpush3.bf16.msra.mxu1 %v3045_v28 }
 0x547   : > { %2855 = vmatprep.mubr.msk.bf16.mxu1 %vm1054_vm0, %v1233_v23  ;;  %v1228_v13 = vmul.f32 %v3200_v59, %v4081_v30  ;;  %2871 = vmatprep.subr.bf16.mxu1 %v3550_v36  ;;  %v3046_v30 = vld [vmem:[#allocation11 + $0x8] sm:$0xff]  }
 0x548   : > { %v3202_v31 = vpop.eup %3201  ;;  %2856 = vmatmul.mubr.msk.bf16.gmra.mrb[12].mxu1 %vm1054_vm0, %v1234_v27 }
 0x549   : > { %v1237_v25 = vpack.c.bf16 %v1228_v13, %v1227_v29  ;;  %v1229_v4 = vmul.f32 %v3202_v31, %v4085_v32  ;;  %v3049_v32 = vld [vmem:[#allocation11 + $0x20] sm:$0xff]   ;;  %2885 = vmatprep.mubr.msk.bf16.mxu1 %vm3551_vm1, %v3550_v36 }
 0x54a   : > { %v3204_v33 = vpop.eup %3203  ;;  %2872 = vmatpush3.bf16.msra.mxu1 %v3046_v30 }
 0x54b   : > { %2865 = vmatprep.mubr.msk.bf16.mxu0 %vm1054_vm0, %v1237_v25  ;;  %v1230_v9 = vmul.f32 %v3204_v33, %v4089_v34  ;;  %2873 = vmatprep.subr.bf16.mxu1 %v3550_v36  ;;  %v3050_v34 = vld [vmem:[#allocation11 + $0x28] sm:$0xff]  }
 0x54d   : > { %v1238_v35 = vpack.c.bf16 %v1230_v9, %v1229_v4 }
 0x54e   : > { %2874 = vmatpush3.bf16.msra.mxu1 %v3047_v38 }
 0x54f   : > { %2866 = vmatmul.mubr.msk.bf16.gmra.mrb[20].mxu0 %vm1054_vm0, %v1238_v35  ;;  %2875 = vmatprep.subr.bf16.mxu1 %v3550_v36 }
 0x550   : > { %1976 = vmatprep.mubr.bf16.mxu0 %v3549_v41 }
 0x552   : > { %2876 = vmatpush3.bf16.msra.mxu1 %v3048_v39 }
 0x553   : > { %2877 = vmatprep.subr.bf16.mxu1 %v3550_v36 }
 0x556   : > { %2878 = vmatpush3.bf16.msra.mxu1 %v3049_v32 }
 0x557   : > { %2879 = vmatprep.subr.bf16.mxu1 %v3550_v36 }
 0x55a   : > { %2880 = vmatpush3.bf16.msra.mxu1 %v3050_v34 }
 0x55b   : > { %2881 = vmatprep.subr.bf16.mxu1 %v3550_v36 }
 0x55e   : > { %2882 = vmatpush3.bf16.msra.mxu1 %v3051_v40 }
 0x55f   : > { %2883 = vmatprep.subr.bf16.mxu1 %v3550_v36 }
 0x562   : > { %2884 = vmatpush3.bf16.msra.mxu1 %v3052_v42 }
 0x60b   : > { %v2853_v45 = vpop.f32.mrb[8].mxu1 }
 0x60c   : > { %v1396_v46 = vmul.f32 %v2853_v45, %v4121_v44  ;;  %v1285_v47 = vpop.f32.mrb[9].mxu1 }
 0x60d   : > { %v1394_v49 = vmul.f32 %v4121_v44, %v1285_v47  ;;  %v2854_v50 = vpop.f32.mrb[10].mxu1 }
 0x60e   : > { %v1422_v51 = vrot.slane %v1396_v46, 4  ;;  %v1397_v52 = vmul.f32 %v2854_v50, %v4121_v44  ;;  %v1288_v54 = vpop.f32.mrb[11].mxu1 }
 0x60f   : > { %v1410_v55 = vrot.slane %v1394_v49, 4  ;;  %v1395_v56 = vmul.f32 %v4121_v44, %v1288_v54 }
 0x610   : > { %v1423_v58 = vadd.f32 %v1422_v51, %v1396_v46  ;;  %v1428_v60 = vrot.slane %v1397_v52, 4 }
 0x611   : > { %v1411_v61 = vadd.f32 %v1410_v55, %v1394_v49  ;;  %v1416_v62 = vrot.slane %v1395_v56, 4 }
 0x612   : > { %v1424_v0 = vrot.slane %v1423_v58, 2  ;;  %v1429_v57 = vadd.f32 %v1428_v60, %v1397_v52 }
 0x613   : > { %v1412_v43 = vrot.slane %v1411_v61, 2  ;;  %v1417_v48 = vadd.f32 %v1416_v62, %v1395_v56 }
 0x614   : > { %v1425_v5 = vadd.f32 %v1424_v0, %v1423_v58  ;;  %v1430_v53 = vrot.slane %v1429_v57, 2 }
 0x615   : > { %v1413_v37 = vadd.f32 %v1412_v43, %v1411_v61  ;;  %v1418_v7 = vrot.slane %v1417_v48, 2 }
 0x616   : > { %v1426_v8 = vrot.slane %v1425_v5, 1  ;;  %v1431_v63 = vadd.f32 %v1430_v53, %v1429_v57 }
 0x617   : > { %v1414_v10 = vrot.slane %v1413_v37, 1  ;;  %v1419_v11 = vadd.f32 %v1418_v7, %v1417_v48  ;;  %v2863_v12 = vpop.f32.mrb[16].mxu0 }
 0x618   : > { %v1427_v3 = vadd.f32 %v1426_v8, %v1425_v5  ;;  %v1432_v14 = vrot.slane %v1431_v63, 1  ;;  %v1404_v17 = vmul.f32 %v2863_v12, %v4121_v44  ;;  %v1362_v19 = vpop.f32.mrb[17].mxu0 }
 0x619   : > { %v1415_v6 = vadd.f32 %v1414_v10, %v1413_v37  ;;  %v1420_v21 = vrot.slane %v1419_v11, 1  ;;  %v1402_v22 = vmul.f32 %v4121_v44, %v1362_v19  ;;  %v2864_v24 = vpop.f32.mrb[18].mxu0 }
 0x61a   : > { %v1508_v2 = vpack.c.bf16 %v1427_v3, %v1427_v3  ;;  %v1433_v1 = vadd.f32 %v1432_v14, %v1431_v63  ;;  %v1470_v26 = vrot.slane %v1404_v17, 4  ;;  %v1405_v20 = vmul.f32 %v2864_v24, %v4121_v44  ;;  %v1365_v23 = vpop.f32.mrb[19].mxu0 }
 0x61b   : > { %v1506_v59 = vpack.c.bf16 %v1415_v6, %v1415_v6  ;;  %v1421_v27 = vadd.f32 %v1420_v21, %v1419_v11  ;;  %v1458_v29 = vrot.slane %v1402_v22, 4  ;;  %v1403_v13 = vmul.f32 %v4121_v44, %v1365_v23  ;;  %v2857_v31 = vpop.f32.mrb[12].mxu1 }
 0x61c   : > { %v1563_v25 = vunpack.c.l.b16 %v1508_v2  ;;  %v1509_v33 = vpack.c.bf16 %v1433_v1, %v1433_v1  ;;  %v1471_v4 = vadd.f32 %v1470_v26, %v1404_v17  ;;  %v1476_v9 = vrot.slane %v1405_v20, 4  ;;  %v1301_v35 = vpop.f32.mrb[13].mxu1 }
 0x61d   : > { %v1561_v36 = vunpack.c.l.b16 %v1506_v59  ;;  %v1507_v28 = vpack.c.bf16 %v1421_v27, %v1421_v27  ;;  %v1459_v30 = vadd.f32 %v1458_v29, %v1402_v22  ;;  %v1464_v38 = vrot.slane %v1403_v13, 4  ;;  %v2858_v39 = vpop.f32.mrb[14].mxu1 }
 0x61e   : > { %v1564_v32 = vunpack.c.l.b16 %v1509_v33  ;;  %v1472_v34 = vrot.slane %v1471_v4, 2  ;;  %v1477_v40 = vadd.f32 %v1476_v9, %v1405_v20  ;;  %v1400_v42 = vmul.f32 %v2857_v31, %v4121_v44  ;;  %v1304_v45 = vpop.f32.mrb[15].mxu1 }
 0x61f   : > { %v1562_v46 = vunpack.c.l.b16 %v1507_v28  ;;  %v1460_v47 = vrot.slane %v1459_v30, 2  ;;  %v1465_v49 = vadd.f32 %v1464_v38, %v1403_v13  ;;  %v1398_v50 = vmul.f32 %v4121_v44, %v1301_v35 }
 0x620   : > { %v1473_v51 = vadd.f32 %v1472_v34, %v1471_v4  ;;  %v1478_v52 = vrot.slane %v1477_v40, 2  ;;  %v1446_v54 = vrot.slane %v1400_v42, 4  ;;  %v1401_v55 = vmul.f32 %v2858_v39, %v4121_v44 }
 0x621   : > { %v1578_v56 = vsel %vm1577_vm2, %v1562_v46, %v1561_v36  ;;  %v1461_v58 = vadd.f32 %v1460_v47, %v1459_v30  ;;  %v1466_v60 = vrot.slane %v1465_v49, 2  ;;  %v1434_v61 = vrot.slane %v1398_v50, 4 }
 0x622   : > { %v1580_v62 = vsel %vm1579_vm3, %v1563_v25, %v1578_v56  ;;  %v1474_v0 = vrot.slane %v1473_v51, 1  ;;  %v1479_v57 = vadd.f32 %v1478_v52, %v1477_v40  ;;  %v1447_v43 = vadd.f32 %v1446_v54, %v1400_v42  ;;  %v2867_v48 = vpop.f32.mrb[20].mxu0 }
 0x623   : > { %v1462_v5 = vrot.slane %v1461_v58, 1  ;;  %v1467_v53 = vadd.f32 %v1466_v60, %v1465_v49  ;;  %v1435_v37 = vadd.f32 %v1434_v61, %v1398_v50  ;;  %v1582_v7 = vsel %vm1581_vm4, %v1564_v32, %v1580_v62  ;;  %v1378_v8 = vpop.f32.mrb[21].mxu0 }
 0x624   : > { %v1475_v63 = vadd.f32 %v1474_v0, %v1473_v51  ;;  %v1480_v10 = vrot.slane %v1479_v57, 1  ;;  %v1448_v11 = vrot.slane %v1447_v43, 2  ;;  %v1452_v12 = vrot.slane %v1401_v55, 4  ;;  %v2868_v3 = vpop.f32.mrb[22].mxu0 }
 0x625   : > { %v1463_v14 = vadd.f32 %v1462_v5, %v1461_v58  ;;  %v1468_v17 = vrot.slane %v1467_v53, 1  ;;  %v1436_v19 = vrot.slane %v1435_v37, 2  ;;  %v1399_v6 = vmul.f32 %v4121_v44, %v1304_v45  ;;  %v1381_v21 = vpop.f32.mrb[23].mxu0 }
 0x626   : > { %v1516_v22 = vpack.c.bf16 %v1475_v63, %v1475_v63  ;;  %v1481_v24 = vadd.f32 %v1480_v10, %v1479_v57  ;;  %v1449_v2 = vadd.f32 %v1448_v11, %v1447_v43  ;;  %v1453_v1 = vadd.f32 %v1452_v12, %v1401_v55 }
 0x627   : > { %v1514_v26 = vpack.c.bf16 %v1463_v14, %v1463_v14  ;;  %v1469_v20 = vadd.f32 %v1468_v17, %v1467_v53  ;;  %v1437_v23 = vadd.f32 %v1436_v19, %v1435_v37  ;;  %v1440_v59 = vrot.slane %v1399_v6, 4 }
 0x628   : > { %v1517_v27 = vpack.c.bf16 %v1481_v24, %v1481_v24  ;;  %v1454_v29 = vrot.slane %v1453_v1, 2  ;;  %v1571_v13 = vunpack.c.l.b16 %v1516_v22  ;;  %v1450_v9 = vrot.slane %v1449_v2, 1 }
 0x629   : > { %v1515_v31 = vpack.c.bf16 %v1469_v20, %v1469_v20  ;;  %v1438_v25 = vrot.slane %v1437_v23, 1  ;;  %v1441_v33 = vadd.f32 %v1440_v59, %v1399_v6  ;;  %v1569_v4 = vunpack.c.l.b16 %v1514_v26 }
 0x62a   : > { %v1455_v35 = vadd.f32 %v1454_v29, %v1453_v1  ;;  %v1408_v36 = vmul.f32 %v2867_v48, %v4121_v44  ;;  %v1406_v39 = vmul.f32 %v4121_v44, %v1378_v8  ;;  %v1572_v32 = vunpack.c.l.b16 %v1517_v27 }
 0x62b   : > { %v1570_v28 = vunpack.c.l.b16 %v1515_v31  ;;  %v1439_v30 = vadd.f32 %v1438_v25, %v1437_v23  ;;  %v1442_v38 = vrot.slane %v1441_v33, 2  ;;  %v1409_v42 = vmul.f32 %v2868_v3, %v4121_v44 }
 0x62c   : > { %v1456_v34 = vrot.slane %v1455_v35, 1  ;;  %v1494_v40 = vrot.slane %v1408_v36, 4  ;;  %v1482_v49 = vrot.slane %v1406_v39, 4  ;;  %v1451_v51 = vadd.f32 %v1450_v9, %v1449_v2 }
 0x62d   : > { %v1591_v45 = vsel %vm1577_vm2, %v1570_v28, %v1569_v4  ;;  %v1510_v46 = vpack.c.bf16 %v1439_v30, %v1439_v30  ;;  %v1443_v47 = vadd.f32 %v1442_v38, %v1441_v33  ;;  %v1500_v62 = vrot.slane %v1409_v42, 4 }
 0x62e   : > { %v1592_v50 = vsel %vm1579_vm3, %v1571_v13, %v1591_v45  ;;  %v1457_v52 = vadd.f32 %v1456_v34, %v1455_v35  ;;  %v1495_v54 = vadd.f32 %v1494_v40, %v1408_v36  ;;  %v1483_v58 = vadd.f32 %v1482_v49, %v1406_v39  ;;  %v2663_v34 = vld [vmem:[%s4365_s3] ss:$0 sm:$0xff]  ;;  %s4369_s3 = sld [smem:[#allocation31_spill]] }
 0x62f   : > { %v1565_v55 = vunpack.c.l.b16 %v1510_v46  ;;  %v1444_v56 = vrot.slane %v1443_v47, 1  ;;  %v1593_v60 = vsel %vm1581_vm4, %v1572_v32, %v1592_v50  ;;  %v1407_v0 = vmul.f32 %v4121_v44, %v1381_v21  ;;  %v3053_v50 = vld [vmem:[#allocation13] ss:$16 sps:$4 sm:$0xff]  }
 0x630   : > { %v1496_v61 = vrot.slane %v1495_v54, 2  ;;  %v1484_v48 = vrot.slane %v1483_v58, 2  ;;  %v1512_v5 = vpack.c.bf16 %v1451_v51, %v1451_v51  ;;  %v1501_v37 = vadd.f32 %v1500_v62, %v1409_v42  ;;  %v3055_v51 = vld [vmem:[#allocation13 + $0x4] ss:$16 sps:$4 sm:$0xff]  }
 0x631   : > { %v1584_v57 = vsel %vm1583_vm5, %v1565_v55, %v1582_v7  ;;  %v1445_v43 = vadd.f32 %v1444_v56, %v1443_v47  ;;  %v1488_v8 = vrot.slane %v1407_v0, 4  ;;  %v1513_v63 = vpack.c.bf16 %v1457_v52, %v1457_v52  ;;  %v3056_v52 = vld [vmem:[#allocation13 + $0x8] ss:$16 sps:$4 sm:$0xff]   ;;  %1944 = vmatprep.subr.bf16.mxu0 %v3055_v51  ;;  %v3064_v55 = vld [vmem:[#allocation13 + $0x2c] ss:$16 sps:$4 sm:$0xff]   ;;  %v3104_v51 = vld [vmem:[#allocation14 + $0x80] sm:$0xff]  }
 0x632   : > { %v1497_v53 = vadd.f32 %v1496_v61, %v1495_v54  ;;  %v1485_v11 = vadd.f32 %v1484_v48, %v1483_v58  ;;  %v1502_v12 = vrot.slane %v1501_v37, 2  ;;  %v1567_v6 = vunpack.c.l.b16 %v1512_v5  ;;  %v3061_v54 = vld [vmem:[#allocation13 + $0x24] ss:$16 sps:$4 sm:$0xff]   ;;  %1945 = vmatpush1.bf16.msra.mxu0 %v3053_v50  ;;  %v3059_v56 = vld [vmem:[#allocation13 + $0x20] ss:$16 sps:$4 sm:$0xff]  }
 0x633   : > { %v1511_v10 = vpack.c.bf16 %v1445_v43, %v1445_v43  ;;  %v1489_v3 = vadd.f32 %v1488_v8, %v1407_v0  ;;  %v1568_v7 = vunpack.c.l.b16 %v1513_v63  ;;  %1946 = vmatprep.subr.bf16.mxu0 %v3061_v54  ;;  %v3062_v58 = vld [vmem:[#allocation13 + $0x28] ss:$16 sps:$4 sm:$0xff]   ;;  %v3065_v8 = vld [vmem:[#allocation13 + $0x40] ss:$16 sps:$4 sm:$0xff]  }
 0x634   : > { %v1498_v17 = vrot.slane %v1497_v53, 1  ;;  %v1486_v19 = vrot.slane %v1485_v11, 1  ;;  %v1503_v44 = vadd.f32 %v1502_v12, %v1501_v37  ;;  %v3070_v37 = vld [vmem:[#allocation13 + $0x4c] ss:$16 sps:$4 sm:$0xff]   ;;  %v3068_v63 = vld [vmem:[#allocation13 + $0x48] ss:$16 sps:$4 sm:$0xff]  }
 0x635   : > { %v1566_v14 = vunpack.c.l.b16 %v1511_v10  ;;  %v1490_v21 = vrot.slane %v1489_v3, 2  ;;  %v3073_v10 = vld [vmem:[#allocation13 + $0x64] ss:$16 sps:$4 sm:$0xff]   ;;  %v3071_v12 = vld [vmem:[#allocation13 + $0x60] ss:$16 sps:$4 sm:$0xff]   ;;  %v3107_v54 = vld [vmem:[#allocation14 + $0x8] sm:$0xff]  }
 0x636   : > { %v1487_v24 = vadd.f32 %v1486_v19, %v1485_v11  ;;  %v1504_v1 = vrot.slane %v1503_v44, 1  ;;  %v1499_v20 = vadd.f32 %v1498_v17, %v1497_v53  ;;  %1947 = vmatpush1.bf16.msra.mxu0 %v3059_v56  ;;  %v3067_v53 = vld [vmem:[#allocation13 + $0x44] ss:$16 sps:$4 sm:$0xff]   ;;  %v3076_v11 = vld [vmem:[#allocation13 + $0x6c] ss:$16 sps:$4 sm:$0xff]  }
 0x637   : > { %v1586_v22 = vsel %vm1585_vm6, %v1566_v14, %v1584_v57  ;;  %v1491_v26 = vadd.f32 %v1490_v21, %v1489_v3  ;;  %1948 = vmatprep.subr.bf16.mxu0 %v3067_v53  ;;  %v3074_v3 = vld [vmem:[#allocation13 + $0x68] ss:$16 sps:$4 sm:$0xff]   ;;  %v3079_v14 = vld [vmem:[#allocation13 + $0x84] ss:$16 sps:$4 sm:$0xff]   ;;  %v3082_v17 = vld [vmem:[#allocation13 + $0x8c] ss:$16 sps:$4 sm:$0xff]  }
 0x638   : > { %v1588_v2 = vsel %vm1587_vm7, %v1567_v6, %v1586_v22  ;;  %v1518_v23 = vpack.c.bf16 %v1487_v24, %v1487_v24  ;;  %v1505_v27 = vadd.f32 %v1504_v1, %v1503_v44  ;;  %v1520_v25 = vpack.c.bf16 %v1499_v20, %v1499_v20  ;;  %v3077_v19 = vld [vmem:[#allocation13 + $0x80] ss:$16 sps:$4 sm:$0xff]   ;;  %v3080_v6 = vld [vmem:[#allocation13 + $0x88] ss:$16 sps:$4 sm:$0xff]   ;;  %v3085_v44 = vld [vmem:[#allocation13 + $0xa4] ss:$16 sps:$4 sm:$0xff]  }
 0x639   : > { %v1590_v59 = vsel %vm1589_vm8, %v1568_v7, %v1588_v2  ;;  %v1492_v29 = vrot.slane %v1491_v26, 1  ;;  %v3088_v21 = vld [vmem:[#allocation13 + $0xac] ss:$16 sps:$4 sm:$0xff]   ;;  %v3083_v7 = vld [vmem:[#allocation13 + $0xa0] ss:$16 sps:$4 sm:$0xff]  }
 0x63a   : > { %v1573_v13 = vunpack.c.l.b16 %v1518_v23  ;;  %v1521_v4 = vpack.c.bf16 %v1505_v27, %v1505_v27  ;;  %v1575_v36 = vunpack.c.l.b16 %v1520_v25  ;;  %1949 = vmatpush1.bf16.msra.mxu0 %v3065_v8  ;;  %v3086_v22 = vld [vmem:[#allocation13 + $0xa8] ss:$16 sps:$4 sm:$0xff]   ;;  %v3091_v24 = vld [vmem:[#allocation13 + $0xc4] ss:$16 sps:$4 sm:$0xff]   ;;  %v3094_v2 = vld [vmem:[#allocation13 + $0xcc] ss:$16 sps:$4 sm:$0xff]  }
 0x63b   : > { %v1493_v31 = vadd.f32 %v1492_v29, %v1491_v26  ;;  %1950 = vmatprep.subr.bf16.mxu0 %v3073_v10  ;;  %v3089_v1 = vld [vmem:[#allocation13 + $0xc0] ss:$16 sps:$4 sm:$0xff]   ;;  %v3092_v26 = vld [vmem:[#allocation13 + $0xc8] ss:$16 sps:$4 sm:$0xff]   ;;  %v3097_v23 = vld [vmem:[#allocation13 + $0xe4] ss:$16 sps:$4 sm:$0xff]  }
 0x63c   : > { %v1594_v33 = vsel %vm1583_vm5, %v1573_v13, %v1593_v60  ;;  %v1576_v28 = vunpack.c.l.b16 %v1521_v4  ;;  %v3095_v20 = vld [vmem:[#allocation13 + $0xe0] ss:$16 sps:$4 sm:$0xff]   ;;  %v3100_v27 = vld [vmem:[#allocation13 + $0xec] ss:$16 sps:$4 sm:$0xff]  }
 0x63d   : > { %v1519_v9 = vpack.c.bf16 %v1493_v31, %v1493_v31  ;;  %v3103_v50 = vld [vmem:[#allocation14] sm:$0xff]   ;;  %v3109_v56 = vld [vmem:[#allocation14 + $0x50] sm:$0xff]   ;;  %v3121_v8 = vld [vmem:[#allocation14 + $0x68] sm:$0xff]  }
 0x63e   : > { %1951 = vmatpush1.bf16.msra.mxu0 %v3071_v12  ;;  %v3119_v53 = vld [vmem:[#allocation14 + $0x20] sm:$0xff]   ;;  %v3123_v10 = vld [vmem:[#allocation14 + $0x28] sm:$0xff]   ;;  %v3125_v12 = vld [vmem:[#allocation14 + $0x70] sm:$0xff]  }
 0x63f   : > { %v1574_v35 = vunpack.c.l.b16 %v1519_v9  ;;  %1952 = vmatprep.subr.bf16.mxu0 %v3079_v14  ;;  %v3127_v14 = vld [vmem:[#allocation14 + $0x30] sm:$0xff]  }
 0x641   : > { %v1595_v30 = vsel %vm1585_vm6, %v1574_v35, %v1594_v33  ;;  %v2672_v35 = vld [vmem:[%s4366_s28] ss:$0 sm:$0xff]  ;;  %s2746_s28 = sshll.u32 %s3661_s27, 8  ;;  %s3552_s27 = smov [#allocation16]  }
 0x642   : > { %v1596_v38 = vsel %vm1587_vm7, %v1575_v36, %v1595_v30  ;;  %1953 = vmatpush1.bf16.msra.mxu0 %v3077_v19  ;;  %v3129_v19 = vld [vmem:[#allocation14 + $0x78] sm:$0xff]  }
 0x643   : > { %v1597_v39 = vsel %vm1589_vm8, %v1576_v28, %v1596_v38  ;;  %1954 = vmatprep.subr.bf16.mxu0 %v3085_v44  ;;  %v3131_v44 = vld [vmem:[#allocation14 + $0x38] sm:$0xff]  }
 0x644   : > { %v1598_v32 = vpack.c.b16 %v1597_v39, %v1590_v59  ;;  %v3098_v59 = vld [vmem:[#allocation13 + $0xe8] ss:$16 sps:$4 sm:$0xff]   ;;  %v2673_v39 = vld [vmem:[%s4367_s15] ss:$0 sm:$0xff]  ;;  %s4370_s15 = sld [smem:[#allocation32_spill]] }
 0x646   : > { %2886 = vmatmul.mubr.bf16.vlgmr.msra.gmra.mrb[16].mxu1 %v1598_v32  ;;  %1955 = vmatpush1.bf16.msra.mxu0 %v3083_v7  ;;  %v1774_v7 = vsub.s32 2, %v3962_v15 }
 0x647   : > { %2019 = vmatprep.mubr.bf16.mxu1 %v3549_v41  ;;  %v3058_v41 = vld [vmem:[#allocation13 + $0xc] ss:$16 sps:$4 sm:$0xff]   ;;  %1956 = vmatprep.subr.bf16.mxu0 %v3091_v24  ;;  %v1778_v24 = vsub.s32 3, %v3962_v15 }
 0x648   : > { %1987 = vmatprep.subr.bf16.mxu1 %v3058_v41  ;;  %v3106_v41 = vld [vmem:[#allocation14 + $0xc8] sm:$0xff]  }
 0x649   : > { %1988 = vmatpush1.bf16.msra.mxu1 %v3056_v52  ;;  %v3105_v52 = vld [vmem:[#allocation14 + $0x48] sm:$0xff]  }
 0x64a   : > { %1989 = vmatprep.subr.bf16.mxu1 %v3064_v55  ;;  %1957 = vmatpush1.bf16.msra.mxu0 %v3089_v1  ;;  %v3108_v55 = vld [vmem:[#allocation14 + $0x88] sm:$0xff]   ;;  %s4258_s10 = scalar_lea.hbm %s4370_s15, %s2746_s28 }
 0x64b   : > { %1958 = vmatprep.subr.bf16.mxu0 %v3097_v23 }
 0x64d   : > { %1990 = vmatpush1.bf16.msra.mxu1 %v3062_v58  ;;  %v3110_v58 = vld [vmem:[#allocation14 + $0xd0] sm:$0xff]  }
 0x64e   : > { %1991 = vmatprep.subr.bf16.mxu1 %v3070_v37  ;;  %1959 = vmatpush1.bf16.msra.mxu0 %v3095_v20  ;;  %v3120_v37 = vld [vmem:[#allocation14 + $0xa0] sm:$0xff]  }
 0x651   : > { %1992 = vmatpush1.bf16.msra.mxu1 %v3068_v63  ;;  %v3122_v63 = vld [vmem:[#allocation14 + $0xe8] sm:$0xff]  }
 0x652   : > { %1993 = vmatprep.subr.bf16.mxu1 %v3076_v11  ;;  %v3124_v11 = vld [vmem:[#allocation14 + $0xa8] sm:$0xff]  }
 0x655   : > { %1994 = vmatpush1.bf16.msra.mxu1 %v3074_v3  ;;  %v3126_v3 = vld [vmem:[#allocation14 + $0xf0] sm:$0xff]  }
 0x656   : > { %1995 = vmatprep.subr.bf16.mxu1 %v3082_v17  ;;  %v3128_v17 = vld [vmem:[#allocation14 + $0xb0] sm:$0xff]  }
 0x659   : > { %1996 = vmatpush1.bf16.msra.mxu1 %v3080_v6  ;;  %v3130_v6 = vld [vmem:[#allocation14 + $0xf8] sm:$0xff]  }
 0x65a   : > { %1997 = vmatprep.subr.bf16.mxu1 %v3088_v21  ;;  %v3132_v21 = vld [vmem:[#allocation14 + $0xb8] sm:$0xff]  }
 0x65d   : > { %1998 = vmatpush1.bf16.msra.mxu1 %v3086_v22  ;;  %v1762_v22 = vld [vmem:[%s4368_s30] sm:$0xf]  ;;  %s3455_s30 = sshll.u32 %s3552_s27, 4  ;;  %s3456_s30 = int_to_ptr.vmem [resolvable:$false] %s3455_s30 }
 0x65e   : > { %1999 = vmatprep.subr.bf16.mxu1 %v3094_v2  ;;  %v1767_v2 = vrot.slane %v1762_v22, %v747_v16  ;;  %v1775_v1 = vrot.slane %v1762_v22, %v1774_v7  ;;  %v1779_v20 = vrot.slane %v1762_v22, %v1778_v24  ;;  %s3457_s18 = scalar_lea.vmem %s3456_s30, 512  ;;  %p3458_p13 = scmp.lt.s32.totalorder %s4253_s0, %s3456_s30 }
 0x65f   : > { %p3459_p8 = scmp.lt.s32.totalorder %s3457_s18, %s3451_s11 }
 0x661   : > { %2000 = vmatpush1.bf16.msra.mxu1 %v3092_v26  ;;  %v1771_v26 = vrot.slane %v1762_v22, %v751_v18  ;;  %p3460_p6 = por %p3459_p8, %p3458_p13 }
 0x662   : > { %2001 = vmatprep.subr.bf16.mxu1 %v3100_v27 }
 0x663   : > { %p3461_p9 = pnand %p3460_p6, %p3454_p12 }
 0x665   : > { %2002 = vmatpush1.bf16.msra.mxu1 %v3098_v59 }
 0x719   : > { %v1682_v40 = vpop.f32.mrb[16].mxu1 }
 0x71a   : > { %v4157_v42 = vadd.f32 %v2663_v34, %v1682_v40  ;;  %v2887_v45 = vpop.f32.mrb[17].mxu1 }
 0x71b   : > { %v1685_v46 = vpop.f32.mrb[18].mxu1 }
 0x71c   : > { %v4159_v47 = vadd.f32 %v2663_v34, %v1685_v46  ;;  %1689 = vadd.xlane.f32.xlu0 %v4157_v42  ;;  %v2888_v49 = vpop.f32.mrb[19].mxu1  ;;  %v3101_v46 = vld [vmem:[#allocation14 + $0x40] sm:$0xff]  }
 0x71d   : > { %v3102_v49 = vld [vmem:[#allocation14 + $0xc0] sm:$0xff]   ;;  %2785 = vmatprep.subr.bf16.mxu0 %v3101_v46 }
 0x71e   : > { %1691 = vadd.xlane.f32.xlu1 %v4159_v47  ;;  %2807 = vmatprep.subr.bf16.mxu1 %v3102_v49 }
 0x7a9   : > { %v1690_v60 = vpop.xlane.xlu0 %1689 }
 0x7aa   : > { %v1693_v61 = vmul.f32 0.0078125, %v1690_v60  ;;  %v3111_v60 = vld [vmem:[#allocation14 + $0x10] sm:$0xff]  }
 0x7ab   : > { %v1692_v62 = vpop.xlane.xlu1 %1691 }
 0x7ac   : > { %v4164_v0 = vsub.f32 %v4157_v42, %v1693_v61  ;;  %v1694_v57 = vmul.f32 0.0078125, %v1692_v62  ;;  %v3112_v61 = vld [vmem:[#allocation14 + $0x90] sm:$0xff]   ;;  %v3113_v62 = vld [vmem:[#allocation14 + $0x58] sm:$0xff]  }
 0x7ae   : > { %v4167_v43 = vsub.f32 %v4159_v47, %v1694_v57  ;;  %v1697_v48 = vmul.f32 %v4164_v0, %v4164_v0  ;;  %v3115_v57 = vld [vmem:[#allocation14 + $0x18] sm:$0xff]  }
 0x7b0   : > { %1699 = vadd.xlane.f32.xlu0 %v1697_v48  ;;  %v1698_v5 = vmul.f32 %v4167_v43, %v4167_v43  ;;  %v3117_v48 = vld [vmem:[#allocation14 + $0x60] sm:$0xff]  }
 0x7b2   : > { %1701 = vadd.xlane.f32.xlu1 %v1698_v5  ;;  %v3118_v5 = vld [vmem:[#allocation14 + $0xe0] sm:$0xff]  }
 0x83d   : > { %v1700_v29 = vpop.xlane.xlu0 %1699 }
 0x83e   : > { %v1703_v13 = vmul.f32 0.0078125, %v1700_v29 }
 0x83f   : > { %v1702_v31 = vpop.xlane.xlu1 %1701 }
 0x840   : > { %v1705_v25 = vadd.f32 1e-06, %v1703_v13  ;;  %v1704_v33 = vmul.f32 0.0078125, %v1702_v31 }
 0x842   : > { %3205 = vrsqrt.f32 %v1705_v25  ;;  %v1706_v4 = vadd.f32 1e-06, %v1704_v33 }
 0x844   : > { %3207 = vrsqrt.f32 %v1706_v4 }
 0x84c   : > { %v3206_v9 = vpop.eup %3205 }
 0x84d   : > { %v1709_v36 = vmul.f32 %v3206_v9, %v4164_v0  ;;  %v3114_v0 = vld [vmem:[#allocation14 + $0xd8] sm:$0xff]  }
 0x84e   : > { %v3208_v28 = vpop.eup %3207 }
 0x84f   : > { %v1718_v30 = vmul.f32 %v2672_v35, %v1709_v36  ;;  %v1710_v38 = vmul.f32 %v3208_v28, %v4167_v43  ;;  %v3116_v43 = vld [vmem:[#allocation14 + $0x98] sm:$0xff]  }
 0x851   : > { %v1719_v32 = vmul.f32 %v2672_v35, %v1710_v38  ;;  %v1727_v34 = vadd.f32 %v2673_v39, %v1718_v30 }
 0x853   : > { %v1728_v40 = vadd.f32 %v2673_v39, %v1719_v32 }
 0x855   : > { %v1729_v45 = vpack.c.bf16 %v1728_v40, %v1727_v34 }
 0x857   : > { %1977 = vmatmul.mubr.bf16.vlgmr.msra.gmra.mrb[24].mxu0 %v1729_v45  ;;  %2020 = vmatmul.mubr.bf16.vlgmr.msra.gmra.mrb[20].mxu1 %v1729_v45 }
 0x858   : > { %2786 = vmatpush3.bf16.msra.mxu0 %v3103_v50  ;;  %2808 = vmatpush3.bf16.msra.mxu1 %v3104_v51 }
 0x859   : > { %2787 = vmatprep.subr.bf16.mxu0 %v3105_v52  ;;  %2809 = vmatprep.subr.bf16.mxu1 %v3106_v41 }
 0x85c   : > { %2788 = vmatpush3.bf16.msra.mxu0 %v3107_v54  ;;  %2810 = vmatpush3.bf16.msra.mxu1 %v3108_v55 }
 0x85d   : > { %2789 = vmatprep.subr.bf16.mxu0 %v3109_v56  ;;  %2811 = vmatprep.subr.bf16.mxu1 %v3110_v58 }
 0x860   : > { %2790 = vmatpush3.bf16.msra.mxu0 %v3111_v60  ;;  %2812 = vmatpush3.bf16.msra.mxu1 %v3112_v61 }
 0x861   : > { %2791 = vmatprep.subr.bf16.mxu0 %v3113_v62  ;;  %2813 = vmatprep.subr.bf16.mxu1 %v3114_v0 }
 0x864   : > { %2792 = vmatpush3.bf16.msra.mxu0 %v3115_v57  ;;  %2814 = vmatpush3.bf16.msra.mxu1 %v3116_v43 }
 0x865   : > { %2793 = vmatprep.subr.bf16.mxu0 %v3117_v48  ;;  %2815 = vmatprep.subr.bf16.mxu1 %v3118_v5 }
 0x868   : > { %2794 = vmatpush3.bf16.msra.mxu0 %v3119_v53  ;;  %2816 = vmatpush3.bf16.msra.mxu1 %v3120_v37 }
 0x869   : > { %2795 = vmatprep.subr.bf16.mxu0 %v3121_v8  ;;  %2817 = vmatprep.subr.bf16.mxu1 %v3122_v63 }
 0x86c   : > { %2796 = vmatpush3.bf16.msra.mxu0 %v3123_v10  ;;  %2818 = vmatpush3.bf16.msra.mxu1 %v3124_v11 }
 0x86d   : > { %2797 = vmatprep.subr.bf16.mxu0 %v3125_v12  ;;  %2819 = vmatprep.subr.bf16.mxu1 %v3126_v3 }
 0x870   : > { %2798 = vmatpush3.bf16.msra.mxu0 %v3127_v14  ;;  %2820 = vmatpush3.bf16.msra.mxu1 %v3128_v17 }
 0x871   : > { %2799 = vmatprep.subr.bf16.mxu0 %v3129_v19  ;;  %2821 = vmatprep.subr.bf16.mxu1 %v3130_v6 }
 0x874   : > { %2800 = vmatpush3.bf16.msra.mxu0 %v3131_v44  ;;  %2822 = vmatpush3.bf16.msra.mxu1 %v3132_v21 }
 0x92a   : > { %v1978_v23 = vpop.f32.mrb[24].mxu0  ;;  %v2021_v59 = vpop.f32.mrb[20].mxu1 }
 0x92b   : > { %v4190_v27 = vadd.f32 %v1978_v23, %v1767_v2  ;;  %v4192_v29 = vadd.f32 %v2021_v59, %v1775_v1  ;;  %v1980_v13 = vpop.f32.mrb[25].mxu0  ;;  %v2023_v31 = vpop.f32.mrb[21].mxu1 }
 0x92c   : > { %v4194_v25 = vadd.f32 %v1980_v13, %v1771_v26  ;;  %v4196_v33 = vadd.f32 %v2023_v31, %v1779_v20  ;;  %v1982_v4 = vpop.f32.mrb[26].mxu0  ;;  %v2025_v9 = vpop.f32.mrb[22].mxu1 }
 0x92d   : > { %v2030_v16 = vmul.f32 %v4190_v27, %v4190_v27  ;;  %v2032_v15 = vmul.f32 %v4192_v29, %v4192_v29  ;;  %v4202_v18 = vadd.f32 %v1982_v4, %v1767_v2  ;;  %v4204_v35 = vadd.f32 %v2025_v9, %v1775_v1  ;;  %v1984_v36 = vpop.f32.mrb[27].mxu0  ;;  %v2027_v28 = vpop.f32.mrb[23].mxu1 }
 0x92e   : > { %v2031_v30 = vmul.f32 %v4194_v25, %v4194_v25  ;;  %v2033_v38 = vmul.f32 %v4196_v33, %v4196_v33  ;;  %v4210_v39 = vadd.f32 %v1984_v36, %v1771_v26  ;;  %v4212_v32 = vadd.f32 %v2027_v28, %v1779_v20 }
 0x92f   : > { %v2038_v34 = vmul.f32 %v2030_v16, %v4190_v27  ;;  %v2040_v40 = vmul.f32 %v2032_v15, %v4192_v29  ;;  %v2034_v45 = vmul.f32 %v4202_v18, %v4202_v18  ;;  %v2036_v46 = vmul.f32 %v4204_v35, %v4204_v35 }
 0x930   : > { %v2039_v49 = vmul.f32 %v2031_v30, %v4194_v25  ;;  %v2041_v50 = vmul.f32 %v2033_v38, %v4196_v33  ;;  %v2035_v51 = vmul.f32 %v4210_v39, %v4210_v39  ;;  %v2037_v52 = vmul.f32 %v4212_v32, %v4212_v32 }
 0x931   : > { %v2046_v41 = vmul.f32 0.044715, %v2038_v34  ;;  %v2048_v54 = vmul.f32 0.044715, %v2040_v40  ;;  %v2042_v55 = vmul.f32 %v2034_v45, %v4202_v18  ;;  %v2044_v56 = vmul.f32 %v2036_v46, %v4204_v35 }
 0x932   : > { %v2047_v58 = vmul.f32 0.044715, %v2039_v49  ;;  %v2049_v60 = vmul.f32 0.044715, %v2041_v50  ;;  %v2043_v61 = vmul.f32 %v2035_v51, %v4210_v39  ;;  %v2045_v62 = vmul.f32 %v2037_v52, %v4212_v32 }
 0x933   : > { %v2054_v0 = vadd.f32 %v2046_v41, %v4190_v27  ;;  %v2056_v57 = vadd.f32 %v2048_v54, %v4192_v29  ;;  %v2050_v43 = vmul.f32 0.044715, %v2042_v55  ;;  %v2052_v48 = vmul.f32 0.044715, %v2044_v56 }
 0x934   : > { %v2055_v5 = vadd.f32 %v2047_v58, %v4194_v25  ;;  %v2057_v53 = vadd.f32 %v2049_v60, %v4196_v33  ;;  %v2051_v37 = vmul.f32 0.044715, %v2043_v61  ;;  %v2053_v8 = vmul.f32 0.044715, %v2045_v62 }
 0x935   : > { %v2062_v63 = vmul.f32 0.7978846, %v2054_v0  ;;  %v2064_v10 = vmul.f32 0.7978846, %v2056_v57  ;;  %v2058_v11 = vadd.f32 %v2050_v43, %v4202_v18  ;;  %v2060_v12 = vadd.f32 %v2052_v48, %v4204_v35 }
 0x936   : > { %v2063_v3 = vmul.f32 0.7978846, %v2055_v5  ;;  %v2065_v14 = vmul.f32 0.7978846, %v2057_v53  ;;  %v2059_v17 = vadd.f32 %v2051_v37, %v4210_v39  ;;  %v2061_v19 = vadd.f32 %v2053_v8, %v4212_v32 }
 0x937   : > { %3209 = vtanh.f32 %v2062_v63  ;;  %v2066_v6 = vmul.f32 0.7978846, %v2058_v11  ;;  %v2068_v44 = vmul.f32 0.7978846, %v2060_v12 }
 0x938   : > { %3211 = vtanh.f32 %v2064_v10  ;;  %v2067_v21 = vmul.f32 0.7978846, %v2059_v17  ;;  %v2069_v7 = vmul.f32 0.7978846, %v2061_v19 }
 0x939   : > { %3213 = vtanh.f32 %v2063_v3 }
 0x93a   : > { %3215 = vtanh.f32 %v2065_v14 }
 0x93b   : > { %3217 = vtanh.f32 %v2066_v6 }
 0x93c   : > { %3219 = vtanh.f32 %v2068_v44 }
 0x93d   : > { %3221 = vtanh.f32 %v2067_v21 }
 0x93e   : > { %3223 = vtanh.f32 %v2069_v7 }
 0x941   : > { %v3210_v22 = vpop.eup %3209 }
 0x942   : > { %v3212_v24 = vpop.eup %3211  ;;  %v2078_v2 = vadd.f32 1.0, %v3210_v22 }
 0x943   : > { %v3214_v1 = vpop.eup %3213  ;;  %v2080_v26 = vadd.f32 1.0, %v3212_v24 }
 0x944   : > { %v3216_v20 = vpop.eup %3215  ;;  %v2079_v23 = vadd.f32 1.0, %v3214_v1  ;;  %v2086_v4 = vmul.f32 0.5, %v2078_v2 }
 0x945   : > { %v3218_v59 = vpop.eup %3217  ;;  %v2081_v13 = vadd.f32 1.0, %v3216_v20  ;;  %v2088_v15 = vmul.f32 0.5, %v2080_v26 }
 0x946   : > { %v3220_v31 = vpop.eup %3219  ;;  %v2082_v9 = vadd.f32 1.0, %v3218_v59  ;;  %v2087_v34 = vmul.f32 0.5, %v2079_v23  ;;  %v2094_v49 = vmul.f32 %v2086_v4, %v4190_v27 }
 0x947   : > { %v3222_v16 = vpop.eup %3221  ;;  %v2084_v36 = vadd.f32 1.0, %v3220_v31  ;;  %v2089_v46 = vmul.f32 0.5, %v2081_v13  ;;  %v2096_v52 = vmul.f32 %v2088_v15, %v4192_v29 }
 0x948   : > { %v3224_v28 = vpop.eup %3223  ;;  %v2090_v30 = vmul.f32 0.5, %v2082_v9  ;;  %v2083_v38 = vadd.f32 1.0, %v3222_v16  ;;  %v2095_v55 = vmul.f32 %v2087_v34, %v4194_v25  ;;  %v2706_v25 = vld [vmem:[%s4369_s3] ss:$0 sm:$0xff] }
 0x949   : > { %v2092_v40 = vmul.f32 0.5, %v2084_v36  ;;  %v2085_v45 = vadd.f32 1.0, %v3224_v28  ;;  %v2097_v60 = vmul.f32 %v2089_v46, %v4196_v33 }
 0x94a   : > { %v2098_v50 = vmul.f32 %v2090_v30, %v4202_v18  ;;  %v2091_v51 = vmul.f32 0.5, %v2083_v38 }
 0x94b   : > { %v2100_v41 = vmul.f32 %v2092_v40, %v4204_v35  ;;  %v2093_v54 = vmul.f32 0.5, %v2085_v45 }
 0x94c   : > { %v2099_v56 = vmul.f32 %v2091_v51, %v4210_v39  ;;  %v2102_v58 = vpack.c.bf16 %v2098_v50, %v2094_v49 }
 0x94d   : > { %v2101_v61 = vmul.f32 %v2093_v54, %v4212_v32  ;;  %v2104_v62 = vpack.c.bf16 %v2100_v41, %v2096_v52 }
 0x94e   : > { %v2103_v0 = vpack.c.bf16 %v2099_v56, %v2095_v55 }
 0x94f   : > { %v2105_v27 = vpack.c.bf16 %v2101_v61, %v2097_v60 }
 0x950   : > { %2401 = vmatprep.mubr.bf16.mxu0 %v2103_v0 }
 0x951   : > { %2442 = vmatprep.mubr.bf16.mxu1 %v2105_v27  ;;  %2402 = vmatmul.mubr.bf16.vlgmr.msra.gmra.mrb[28].mxu0 %v2102_v58 }
 0x952   : > { %2443 = vmatmul.mubr.bf16.vlgmr.msra.gmra.mrb[24].mxu1 %v2104_v62 }
 0xa24   : > { %v2801_v29 = vpop.f32.mrb[28].mxu0 }
 0xa25   : > { %v2823_v18 = vpop.f32.mrb[24].mxu1  ;;  %v2802_v35 = vpop.f32.mrb[29].mxu0 }
 0xa26   : > { %v2803_v39 = vadd.f32 %v2802_v35, %v2801_v29  ;;  %v2824_v33 = vpop.f32.mrb[25].mxu1  ;;  %v2804_v57 = vpop.f32.mrb[30].mxu0 }
 0xa27   : > { %v2825_v32 = vadd.f32 %v2824_v33, %v2823_v18  ;;  %v2826_v43 = vpop.f32.mrb[26].mxu1  ;;  %v2805_v48 = vpop.f32.mrb[31].mxu0 }
 0xa28   : > { %v2404_v5 = vadd.f32 %v2803_v39, %v2706_v25  ;;  %v2806_v53 = vadd.f32 %v2805_v48, %v2804_v57  ;;  %v2827_v37 = vpop.f32.mrb[27].mxu1 }
 0xa29   : > { %v2828_v8 = vadd.f32 %v2827_v37, %v2826_v43 }
 0xa2a   : > { %v2445_v63 = vadd.f32 %v2825_v32, %v2404_v5  ;;  %v2407_v10 = vadd.f32 %v2806_v53, %v2706_v25 }
 0xa2c   : > { %v2451_v11 = vadd.f32 %v2445_v63, %v4157_v42  ;;  %v2448_v12 = vadd.f32 %v2828_v8, %v2407_v10 }
 0xa2e   : > { %2453 = vst [vmem:[%s640_s26] sm:$0xff] %v2451_v11  ;;  %v2452_v3 = vadd.f32 %v2448_v12, %v4159_v47 }
 0xa30   : > { %2454 = vst [vmem:[%s640_s26 + $0x8] sm:$0xff] %v2452_v3 }
 0xa31   : > { %3464 = shalt.err (!%p3461_p9)
}
 0xa32   : > { %s3465_s20 = scalar_lea.hbm %s4258_s10, 256  ;;  %s3469_s28 = scalar_lea.hbm %s4370_s15, 512 }
 0xa33   : > { %p3466_p4 = scmp.ne.s32.totalorder %s4258_s10, %s3465_s20  ;;  %p3470_p5 = scmp.lt.u32.totalorder %s4258_s10, %s4370_s15 }
 0xa34   : > { %p3471_p2 = scmp.lt.u32.totalorder %s3469_s28, %s3465_s20  ;;  %p3473_p10 = scmp.lt.u32.totalorder %s3465_s20, %s4258_s10 }
 0xa35   : > { %p3467_p3 = pnand %p3466_p4, %p4371_p1 }
 0xa36   : > { %p3472_p7 = por %p3471_p2, %p3470_p5 }
 0xa37   : > { %p3468_p0 = pneg %p3467_p3 }
 0xa38   : > { %p3474_p11 = por %p3473_p10, %p3472_p7 }
 0xa3a   : > { %p3475_p12 = pnand %p3474_p11, %p3468_p0 }
 0xa3c   : > { %3478 = shalt.err (!%p3475_p12)
}
 0xa3d   : > { %s3553_s11 = smov 128   ;;  %s3554_s27 = smov 8  }
 0xa3e   : > { %2919 = dma.vmem_to_hbm [thread:$0]  (%p4371_p1), %s4253_s0, 256, %s4258_s10, %s2456_s13, %s3553_s11, %s3553_s11, %s3554_s27  }
 0xa3f PF: > { %s2484_s30 = sand.u32 1, %s3521_s21   ;;  %p4372_p13 = scmp.ne.s32.totalorder %s4351_s9, 0 }
 0xa40   : > { %p4373_p8 = scmp.ge.s32.totalorder %s3533_s24, 2  ;;  %s2485_s18 = scalar_lea.sflag [#allocation4], %s2484_s30 }
 0xa42   : > { %p2948_p6 = pnand %p4373_p8, %p4372_p13 }
 0xa44   : > { %3516 = dma.done.wait (!%p2948_p6), %s2485_s18, 256  }
 0xa45   : > { %3518 = vsyncadd (!%p2948_p6), %s2485_s18, 4294967040  ;;  %p33_p9 = scmp.ge.s32.totalorder %s3845_s29, 4   ;;  %s4374_s21 = smov %s3525_s22 }
 0xa46   : > { %s4375_s22 = smov %s3529_s23  ;;  %s4376_s23 = smov %s3857_s17 }
 0xa47   : > { %s4377_s24 = smov %s3845_s29  ;;  %35 = sbr.rel (!%p33_p9) target bundleno = 20 (0x14), region = 157 }
 0xa4e   :  { %2490 = vsyncpa [#allocation3], 1 }
 0xa4f   :  { %2492 = vsyncpa [#allocation3 + $0x1], 1 }
 0xa50   :  { %2493 = vsyncpa [#allocation6], 1 }
 0xa51   :  { %2494 = vsyncpa [#allocation9], 1 }
 0xa52   :  { %2495 = vsyncpa [#allocation12], 1 }
 0xa53   :  { %2496 = vsyncpa [#allocation15], 1 }
 0xa54   :  { %2497 = vsyncpa [#allocation4], 1 }
 0xa55   :  { %2499 = vsyncpa [#allocation4 + $0x1], 1 }

</bundles_post_ra>
